<compile_context>
chip_gen: v7x
topology: tpu7x:2x2x1
jax: 0.10.0
libtpu: 0.0.40
codegen_flags: <defaults>
</compile_context>

<pallas_src>
import math

import jax
import jax.numpy as jnp
from jax import lax
from jax.experimental import pallas as pl
from jax.experimental.pallas import tpu as pltpu

SQRT_HALF = 0.7071067811865476  # 1/sqrt(2), same constant as in the torch code


def _round_up(x, m):
    return (x + m - 1) // m * m


# ---------------------------------------------------------------------------
# Fused kernel factory
# ---------------------------------------------------------------------------
def _make_fused_kernel(cin_aug, c1, wp, tile):
    # flat shift of tap (ky, kx) on the padded, flattened feature map
    shifts = tuple(ky * wp + kx for ky in range(3) for kx in range(3))
    v1_shift = wp + 1  # v1 of output pixel p lives at flat index p + wp + 1

    def kernel(x_cur_ref, x_hal_ref, w1_ref, b1_ref, w2s_ref, b2_ref,
               w3_ref, b3_ref, out_ref, v1g_buf, v6_buf, v6_stack):
        def conv1_gelu(xb):
            # xb: (cin_aug, L); last row is the validity mask (its w1 column is 0)
            v1 = jnp.dot(w1_ref[...], xb,
                         preferred_element_type=jnp.float32) + b1_ref[...]
            msk = xb[cin_aug - 1:cin_aug, :]
            v6 = (v1 * 0.5) * (lax.erf(v1 * SQRT_HALF) + 1.0) * msk
            return v1, v6

        # v1/v6 for this tile; v1 is stored pre-shifted to the gate window only.
        v1c, v6c = conv1_gelu(x_cur_ref[...])
        v6_buf[:, :tile] = v6c
        v1g_buf[:, :tile - v1_shift] = v1c[:, v1_shift:]

        # lane-aligned halo recomputed from a small window of the next tile
        v1h, v6h = conv1_gelu(x_hal_ref[...])
        v6_buf[:, tile:] = v6h
        v1g_buf[:, tile - v1_shift:] = v1h[:, :v1_shift]

        # conv2 (3x3, pad=1) as ONE stacked-K matmul:
        # gather the 9 statically-shifted v6 views into (9*c1, tile), then
        # (c1, 9*c1) @ (9*c1, tile) with f32 accumulation.
        for t in range(9):
            s = shifts[t]
            v6_stack[t * c1:(t + 1) * c1, :] = v6_buf[:, s:s + tile]
        v7 = jnp.dot(w2s_ref[...], v6_stack[...],
                     preferred_element_type=jnp.float32) + b2_ref[...]

        # gate with v1 (already the correct window), then conv3 (1x1)
        v10 = v1g_buf[...] * (lax.erf(v7) + 1.0)
        out_ref[...] = jnp.dot(w3_ref[...], v10,
                               preferred_element_type=jnp.float32) + b3_ref[...]

    return kernel


# ---------------------------------------------------------------------------
# Forward pass wrapper: NCHW in / NCHW out, matching the PyTorch module.
# ---------------------------------------------------------------------------
def model_forward(x_nchw, params, *, tile=6656):
    (w1, b1), (w2, b2), (w3, b3) = params
    n, cin, h, w = x_nchw.shape
    c1 = w1.shape[0]
    cout = w3.shape[0]
    hp, wp = h + 2, w + 2
    mp = n * hp * wp
    cin_aug = cin + 1  # + validity-mask channel

    # ---- static tiling parameters -----------------------------------------
    halo = 2 * wp + 2                       # max flat shift needed by the 3x3 conv
    halo_al = _round_up(halo, 128)          # lane-aligned halo window
    # tile is always a multiple of halo_al (no full-tile halo fallback possible),
    # at least one halo window, and no larger than the (rounded) problem.
    tile = min(tile, _round_up(mp, halo_al))
    tile = max(_round_up(tile, halo_al), halo_al)
    assert tile % halo_al == 0 and halo <= halo_al and (wp + 1) <= halo_al
    num_tiles = -(-mp // tile)
    m_out = num_tiles * tile
    m_x = m_out + halo_al
    ratio = tile // halo_al

    # ---- layout: NCHW -> zero-padded, channel-major, flattened (Caug, Mx) --
    x_pad = jnp.pad(x_nchw, ((0, 0), (0, 0), (1, 1), (1, 1)))
    msk = jnp.pad(jnp.ones((n, 1, h, w), x_nchw.dtype),
                  ((0, 0), (0, 0), (1, 1), (1, 1)))
    x_aug = jnp.concatenate([x_pad, msk], axis=1)              # (N, Cin+1, Hp, Wp)
    x_cm = jnp.transpose(x_aug, (1, 0, 2, 3)).reshape(cin_aug, mp)
    x_cm = jnp.pad(x_cm, ((0, 0), (0, m_x - mp))).astype(jnp.float32)

    # ---- weights as channel-major matmul matrices --------------------------
    w1m = jnp.concatenate([w1[:, :, 0, 0],
                           jnp.zeros((c1, 1), w1.dtype)], axis=1)   # (C1, Cin+1)
    w2t = jnp.transpose(w2, (2, 3, 0, 1)).reshape(9, c1, c1)        # tap (ky,kx): (Co,Ci)
    w2s = jnp.transpose(w2t, (1, 0, 2)).reshape(c1, 9 * c1)         # stacked-K (Co, 9*Ci)
    w3m = w3[:, :, 0, 0]                                            # (Cout, C1)
    b1c = b1.reshape(c1, 1)
    b2c = b2.reshape(c1, 1)
    b3c = b3.reshape(cout, 1)

    kernel = _make_fused_kernel(cin_aug, c1, wp, tile)

    cost = pl.CostEstimate(
        flops=int(2 * m_out * (cin_aug * c1 + 9 * c1 * c1 + c1 * cout)),
        transcendentals=int(2 * m_out * c1),
        bytes_accessed=int(4 * (m_x * cin_aug + m_out * cout)),
    )

    out_flat = pl.pallas_call(
        kernel,
        out_shape=jax.ShapeDtypeStruct((cout, m_out), jnp.float32),
        grid=(num_tiles,),
        in_specs=[
            pl.BlockSpec((cin_aug, tile), lambda i: (0, i)),                   # x (tile)
            pl.BlockSpec((cin_aug, halo_al), lambda i: (0, (i + 1) * ratio)),  # x (halo)
            pl.BlockSpec((c1, cin_aug), lambda i: (0, 0)),                     # w1
            pl.BlockSpec((c1, 1), lambda i: (0, 0)),                           # b1
            pl.BlockSpec((c1, 9 * c1), lambda i: (0, 0)),                      # w2 stacked
            pl.BlockSpec((c1, 1), lambda i: (0, 0)),                           # b2
            pl.BlockSpec((cout, c1), lambda i: (0, 0)),                        # w3
            pl.BlockSpec((cout, 1), lambda i: (0, 0)),                         # b3
        ],
        out_specs=pl.BlockSpec((cout, tile), lambda i: (0, i)),
        scratch_shapes=[
            pltpu.VMEM((c1, tile), jnp.float32),              # v1 gate window (pre-shifted)
            pltpu.VMEM((c1, tile + halo_al), jnp.float32),    # v6 (tile + halo)
            pltpu.VMEM((9 * c1, tile), jnp.float32),          # stacked-K v6 taps
        ],
        compiler_params=pltpu.CompilerParams(
            dimension_semantics=("parallel",),
        ),
        cost_estimate=cost,
    )(x_cm, x_cm, w1m, b1c, w2s, b2c, w3m, b3c)

    out = out_flat[:, :mp].reshape(cout, n, hp, wp)[:, :, :h, :w]
    return jnp.transpose(out, (1, 0, 2, 3))                 # back to NCHW


# ---------------------------------------------------------------------------
# Parameter init (deterministic, mimics Conv2d default kaiming-uniform bounds)
# ---------------------------------------------------------------------------
def init_params(key):
    def conv_param(key, cout, cin, k):
        kw, kb = jax.random.split(key)
        bound = 1.0 / math.sqrt(cin * k * k)
        w = jax.random.uniform(kw, (cout, cin, k, k), jnp.float32, -bound, bound)
        b = jax.random.uniform(kb, (cout,), jnp.float32, -bound, bound)
        return w, b

    k1, k2, k3 = jax.random.split(key, 3)
    return (conv_param(k1, 8, 3, 1),
            conv_param(k2, 8, 8, 3),
            conv_param(k3, 3, 8, 1))


# ---------------------------------------------------------------------------
# Pure-JAX reference (NCHW, lax conv, full-precision) for correctness checking
# ---------------------------------------------------------------------------
def reference_forward(x, params):
    (w1, b1), (w2, b2), (w3, b3) = params

    def conv(x, w, b, pad):
        y = lax.conv_general_dilated(
            x, w, window_strides=(1, 1), padding=[(pad, pad), (pad, pad)],
            dimension_numbers=("NCHW", "OIHW", "NCHW"),
            precision=lax.Precision.HIGHEST)
        return y + b.reshape(1, -1, 1, 1)

    v1 = conv(x, w1, b1, 0)
    v6 = (v1 * 0.5) * (lax.erf(v1 * SQRT_HALF) + 1.0)
    v7 = conv(v6, w2, b2, 1)
    v10 = v1 * (lax.erf(v7) + 1.0)
    return conv(v10, w3, b3, 0)


if __name__ == "__main__":
    key = jax.random.PRNGKey(0)
    kx_, kp_ = jax.random.split(key)

    # Shape matches the PyTorch module's example input (1, 3, 112, 112).
    x = jax.random.normal(kx_, (1, 3, 112, 112), jnp.float32)
    params = init_params(kp_)

    fwd = jax.jit(model_forward)
    out = jax.block_until_ready(fwd(x, params))

    ref = reference_forward(x, params)
    assert out.shape == ref.shape == (1, 3, 112, 112)
    max_err = float(jnp.max(jnp.abs(out - ref)))
    assert jnp.allclose(out, ref, atol=2e-4, rtol=2e-4), max_err
    print("KERNEL_OK")
</pallas_src>

<mosaic_0001>
module attributes {stable_mosaic.version = 11 : i64} {
  func.func @kernel(%arg0: i32, %arg1: memref<4x6656xf32, #tpu.memory_space<vmem>>, %arg2: memref<4x256xf32, #tpu.memory_space<vmem>>, %arg3: memref<8x4xf32, #tpu.memory_space<vmem>>, %arg4: memref<8x1xf32, #tpu.memory_space<vmem>>, %arg5: memref<8x72xf32, #tpu.memory_space<vmem>>, %arg6: memref<8x1xf32, #tpu.memory_space<vmem>>, %arg7: memref<3x8xf32, #tpu.memory_space<vmem>>, %arg8: memref<3x1xf32, #tpu.memory_space<vmem>>, %arg9: memref<3x6656xf32, #tpu.memory_space<vmem>>, %arg10: memref<8x6656xf32, #tpu.memory_space<vmem>>, %arg11: memref<8x6912xf32, #tpu.memory_space<vmem>>, %arg12: memref<72x6656xf32, #tpu.memory_space<vmem>>) attributes {dimension_semantics = [#tpu.dimension_semantics<parallel>], iteration_bounds = array<i64: 2>, scalar_prefetch = 0 : i64, scratch_operands = 3 : i64, tpu.core_type = #tpu.core_type<tc>, window_params = [{transform_indices = @transform_0, window_bounds = array<i64: 4, 6656>}, {transform_indices = @transform_1, window_bounds = array<i64: 4, 256>}, {pipeline_mode = #tpu.pipeline_mode<synchronous>, transform_indices = @transform_2, window_bounds = array<i64: 8, 4>}, {pipeline_mode = #tpu.pipeline_mode<synchronous>, transform_indices = @transform_3, window_bounds = array<i64: 8, 1>}, {pipeline_mode = #tpu.pipeline_mode<synchronous>, transform_indices = @transform_4, window_bounds = array<i64: 8, 72>}, {pipeline_mode = #tpu.pipeline_mode<synchronous>, transform_indices = @transform_5, window_bounds = array<i64: 8, 1>}, {pipeline_mode = #tpu.pipeline_mode<synchronous>, transform_indices = @transform_6, window_bounds = array<i64: 3, 8>}, {pipeline_mode = #tpu.pipeline_mode<synchronous>, transform_indices = @transform_7, window_bounds = array<i64: 3, 1>}, {transform_indices = @transform_8, window_bounds = array<i64: 3, 6656>}]} {
    %c0 = arith.constant 0 : index
    %c0_0 = arith.constant 0 : index
    %0 = vector.load %arg1[%c0, %c0_0] : memref<4x6656xf32, #tpu.memory_space<vmem>>, vector<4x6656xf32>
    %c0_1 = arith.constant 0 : index
    %c0_2 = arith.constant 0 : index
    %1 = vector.load %arg3[%c0_1, %c0_2] : memref<8x4xf32, #tpu.memory_space<vmem>>, vector<8x4xf32>
    %cst = arith.constant dense<0.000000e+00> : vector<8x6656xf32>
    %2 = tpu.matmul %1, %0, %cst {dimension_numbers = #tpu.dot_dimension_numbers<[1], [0], [0], [1], [0, 0, 1, 1], [], []>} : vector<8x4xf32>, vector<4x6656xf32>, vector<8x6656xf32> -> vector<8x6656xf32>
    %c0_3 = arith.constant 0 : index
    %c0_4 = arith.constant 0 : index
    %3 = vector.load %arg4[%c0_3, %c0_4] : memref<8x1xf32, #tpu.memory_space<vmem>>, vector<8x1xf32>
    %4 = vector.broadcast %3 : vector<8x1xf32> to vector<8x6656xf32>
    %5 = arith.addf %2, %4 : vector<8x6656xf32>
    %6 = vector.extract_strided_slice %0 {offsets = [3, 0], sizes = [1, 6656], strides = [1, 1]} : vector<4x6656xf32> to vector<1x6656xf32>
    %cst_5 = arith.constant 5.000000e-01 : f32
    %7 = vector.broadcast %cst_5 : f32 to vector<8x6656xf32>
    %8 = arith.mulf %5, %7 : vector<8x6656xf32>
    %cst_6 = arith.constant 0.707106769 : f32
    %9 = vector.broadcast %cst_6 : f32 to vector<8x6656xf32>
    %10 = arith.mulf %5, %9 : vector<8x6656xf32>
    %11 = math.erf %10 : vector<8x6656xf32>
    %cst_7 = arith.constant 1.000000e+00 : f32
    %12 = vector.broadcast %cst_7 : f32 to vector<8x6656xf32>
    %13 = arith.addf %11, %12 : vector<8x6656xf32>
    %14 = arith.mulf %8, %13 : vector<8x6656xf32>
    %15 = vector.broadcast %6 : vector<1x6656xf32> to vector<8x6656xf32>
    %16 = arith.mulf %14, %15 : vector<8x6656xf32>
    %c0_8 = arith.constant 0 : index
    %c0_9 = arith.constant 0 : index
    %17 = vector.load %arg11[%c0_8, %c0_9] : memref<8x6912xf32, #tpu.memory_space<vmem>>, vector<8x6656xf32>
    tpu.vector_store %arg11[%c0_8, %c0_9], %16 {strides = array<i32>} : memref<8x6912xf32, #tpu.memory_space<vmem>>, vector<8x6656xf32>,
    %18 = vector.extract_strided_slice %5 {offsets = [0, 115], sizes = [8, 6541], strides = [1, 1]} : vector<8x6656xf32> to vector<8x6541xf32>
    %c0_10 = arith.constant 0 : index
    %c0_11 = arith.constant 0 : index
    %19 = vector.load %arg10[%c0_10, %c0_11] : memref<8x6656xf32, #tpu.memory_space<vmem>>, vector<8x6541xf32>
    tpu.vector_store %arg10[%c0_10, %c0_11], %18 {strides = array<i32>} : memref<8x6656xf32, #tpu.memory_space<vmem>>, vector<8x6541xf32>,
    %c0_12 = arith.constant 0 : index
    %c0_13 = arith.constant 0 : index
    %20 = vector.load %arg2[%c0_12, %c0_13] : memref<4x256xf32, #tpu.memory_space<vmem>>, vector<4x256xf32>
    %c0_14 = arith.constant 0 : index
    %c0_15 = arith.constant 0 : index
    %21 = vector.load %arg3[%c0_14, %c0_15] : memref<8x4xf32, #tpu.memory_space<vmem>>, vector<8x4xf32>
    %cst_16 = arith.constant dense<0.000000e+00> : vector<8x256xf32>
    %22 = tpu.matmul %21, %20, %cst_16 {dimension_numbers = #tpu.dot_dimension_numbers<[1], [0], [0], [1], [0, 0, 1, 1], [], []>} : vector<8x4xf32>, vector<4x256xf32>, vector<8x256xf32> -> vector<8x256xf32>
    %c0_17 = arith.constant 0 : index
    %c0_18 = arith.constant 0 : index
    %23 = vector.load %arg4[%c0_17, %c0_18] : memref<8x1xf32, #tpu.memory_space<vmem>>, vector<8x1xf32>
    %24 = vector.broadcast %23 : vector<8x1xf32> to vector<8x256xf32>
    %25 = arith.addf %22, %24 : vector<8x256xf32>
    %26 = vector.extract_strided_slice %20 {offsets = [3, 0], sizes = [1, 256], strides = [1, 1]} : vector<4x256xf32> to vector<1x256xf32>
    %cst_19 = arith.constant 5.000000e-01 : f32
    %27 = vector.broadcast %cst_19 : f32 to vector<8x256xf32>
    %28 = arith.mulf %25, %27 : vector<8x256xf32>
    %cst_20 = arith.constant 0.707106769 : f32
    %29 = vector.broadcast %cst_20 : f32 to vector<8x256xf32>
    %30 = arith.mulf %25, %29 : vector<8x256xf32>
    %31 = math.erf %30 : vector<8x256xf32>
    %cst_21 = arith.constant 1.000000e+00 : f32
    %32 = vector.broadcast %cst_21 : f32 to vector<8x256xf32>
    %33 = arith.addf %31, %32 : vector<8x256xf32>
    %34 = arith.mulf %28, %33 : vector<8x256xf32>
    %35 = vector.broadcast %26 : vector<1x256xf32> to vector<8x256xf32>
    %36 = arith.mulf %34, %35 : vector<8x256xf32>
    %c0_22 = arith.constant 0 : index
    %c6656 = arith.constant 6656 : index
    %37 = vector.load %arg11[%c0_22, %c6656] : memref<8x6912xf32, #tpu.memory_space<vmem>>, vector<8x256xf32>
    tpu.vector_store %arg11[%c0_22, %c6656], %36 {strides = array<i32>} : memref<8x6912xf32, #tpu.memory_space<vmem>>, vector<8x256xf32>,
    %38 = vector.extract_strided_slice %25 {offsets = [0, 0], sizes = [8, 115], strides = [1, 1]} : vector<8x256xf32> to vector<8x115xf32>
    %c0_23 = arith.constant 0 : index
    %c6541 = arith.constant 6541 : index
    %39 = vector.load %arg10[%c0_23, %c6541] : memref<8x6656xf32, #tpu.memory_space<vmem>>, vector<8x115xf32>
    tpu.vector_store %arg10[%c0_23, %c6541], %38 {strides = array<i32>} : memref<8x6656xf32, #tpu.memory_space<vmem>>, vector<8x115xf32>,
    %c0_24 = arith.constant 0 : index
    %c0_25 = arith.constant 0 : index
    %40 = vector.load %arg11[%c0_24, %c0_25] : memref<8x6912xf32, #tpu.memory_space<vmem>>, vector<8x6656xf32>
    %c0_26 = arith.constant 0 : index
    %c0_27 = arith.constant 0 : index
    %41 = vector.load %arg12[%c0_26, %c0_27] : memref<72x6656xf32, #tpu.memory_space<vmem>>, vector<8x6656xf32>
    tpu.vector_store %arg12[%c0_26, %c0_27], %40 {strides = array<i32>} : memref<72x6656xf32, #tpu.memory_space<vmem>>, vector<8x6656xf32>,
    %c0_28 = arith.constant 0 : index
    %c1 = arith.constant 1 : index
    %42 = vector.load %arg11[%c0_28, %c1] : memref<8x6912xf32, #tpu.memory_space<vmem>>, vector<8x6656xf32>
    %c8 = arith.constant 8 : index
    %c0_29 = arith.constant 0 : index
    %43 = vector.load %arg12[%c8, %c0_29] : memref<72x6656xf32, #tpu.memory_space<vmem>>, vector<8x6656xf32>
    tpu.vector_store %arg12[%c8, %c0_29], %42 {strides = array<i32>} : memref<72x6656xf32, #tpu.memory_space<vmem>>, vector<8x6656xf32>,
    %c0_30 = arith.constant 0 : index
    %c2 = arith.constant 2 : index
    %44 = vector.load %arg11[%c0_30, %c2] : memref<8x6912xf32, #tpu.memory_space<vmem>>, vector<8x6656xf32>
    %c16 = arith.constant 16 : index
    %c0_31 = arith.constant 0 : index
    %45 = vector.load %arg12[%c16, %c0_31] : memref<72x6656xf32, #tpu.memory_space<vmem>>, vector<8x6656xf32>
    tpu.vector_store %arg12[%c16, %c0_31], %44 {strides = array<i32>} : memref<72x6656xf32, #tpu.memory_space<vmem>>, vector<8x6656xf32>,
    %c0_32 = arith.constant 0 : index
    %c114 = arith.constant 114 : index
    %46 = vector.load %arg11[%c0_32, %c114] : memref<8x6912xf32, #tpu.memory_space<vmem>>, vector<8x6656xf32>
    %c24 = arith.constant 24 : index
    %c0_33 = arith.constant 0 : index
    %47 = vector.load %arg12[%c24, %c0_33] : memref<72x6656xf32, #tpu.memory_space<vmem>>, vector<8x6656xf32>
    tpu.vector_store %arg12[%c24, %c0_33], %46 {strides = array<i32>} : memref<72x6656xf32, #tpu.memory_space<vmem>>, vector<8x6656xf32>,
    %c0_34 = arith.constant 0 : index
    %c115 = arith.constant 115 : index
    %48 = vector.load %arg11[%c0_34, %c115] : memref<8x6912xf32, #tpu.memory_space<vmem>>, vector<8x6656xf32>
    %c32 = arith.constant 32 : index
    %c0_35 = arith.constant 0 : index
    %49 = vector.load %arg12[%c32, %c0_35] : memref<72x6656xf32, #tpu.memory_space<vmem>>, vector<8x6656xf32>
    tpu.vector_store %arg12[%c32, %c0_35], %48 {strides = array<i32>} : memref<72x6656xf32, #tpu.memory_space<vmem>>, vector<8x6656xf32>,
    %c0_36 = arith.constant 0 : index
    %c116 = arith.constant 116 : index
    %50 = vector.load %arg11[%c0_36, %c116] : memref<8x6912xf32, #tpu.memory_space<vmem>>, vector<8x6656xf32>
    %c40 = arith.constant 40 : index
    %c0_37 = arith.constant 0 : index
    %51 = vector.load %arg12[%c40, %c0_37] : memref<72x6656xf32, #tpu.memory_space<vmem>>, vector<8x6656xf32>
    tpu.vector_store %arg12[%c40, %c0_37], %50 {strides = array<i32>} : memref<72x6656xf32, #tpu.memory_space<vmem>>, vector<8x6656xf32>,
    %c0_38 = arith.constant 0 : index
    %c228 = arith.constant 228 : index
    %52 = vector.load %arg11[%c0_38, %c228] : memref<8x6912xf32, #tpu.memory_space<vmem>>, vector<8x6656xf32>
    %c48 = arith.constant 48 : index
    %c0_39 = arith.constant 0 : index
    %53 = vector.load %arg12[%c48, %c0_39] : memref<72x6656xf32, #tpu.memory_space<vmem>>, vector<8x6656xf32>
    tpu.vector_store %arg12[%c48, %c0_39], %52 {strides = array<i32>} : memref<72x6656xf32, #tpu.memory_space<vmem>>, vector<8x6656xf32>,
    %c0_40 = arith.constant 0 : index
    %c229 = arith.constant 229 : index
    %54 = vector.load %arg11[%c0_40, %c229] : memref<8x6912xf32, #tpu.memory_space<vmem>>, vector<8x6656xf32>
    %c56 = arith.constant 56 : index
    %c0_41 = arith.constant 0 : index
    %55 = vector.load %arg12[%c56, %c0_41] : memref<72x6656xf32, #tpu.memory_space<vmem>>, vector<8x6656xf32>
    tpu.vector_store %arg12[%c56, %c0_41], %54 {strides = array<i32>} : memref<72x6656xf32, #tpu.memory_space<vmem>>, vector<8x6656xf32>,
    %c0_42 = arith.constant 0 : index
    %c230 = arith.constant 230 : index
    %56 = vector.load %arg11[%c0_42, %c230] : memref<8x6912xf32, #tpu.memory_space<vmem>>, vector<8x6656xf32>
    %c64 = arith.constant 64 : index
    %c0_43 = arith.constant 0 : index
    %57 = vector.load %arg12[%c64, %c0_43] : memref<72x6656xf32, #tpu.memory_space<vmem>>, vector<8x6656xf32>
    tpu.vector_store %arg12[%c64, %c0_43], %56 {strides = array<i32>} : memref<72x6656xf32, #tpu.memory_space<vmem>>, vector<8x6656xf32>,
    %c0_44 = arith.constant 0 : index
    %c0_45 = arith.constant 0 : index
    %58 = vector.load %arg5[%c0_44, %c0_45] : memref<8x72xf32, #tpu.memory_space<vmem>>, vector<8x72xf32>
    %c0_46 = arith.constant 0 : index
    %c0_47 = arith.constant 0 : index
    %59 = vector.load %arg12[%c0_46, %c0_47] : memref<72x6656xf32, #tpu.memory_space<vmem>>, vector<72x6656xf32>
    %cst_48 = arith.constant dense<0.000000e+00> : vector<8x6656xf32>
    %60 = tpu.matmul %58, %59, %cst_48 {dimension_numbers = #tpu.dot_dimension_numbers<[1], [0], [0], [1], [0, 0, 1, 1], [], []>} : vector<8x72xf32>, vector<72x6656xf32>, vector<8x6656xf32> -> vector<8x6656xf32>
    %c0_49 = arith.constant 0 : index
    %c0_50 = arith.constant 0 : index
    %61 = vector.load %arg6[%c0_49, %c0_50] : memref<8x1xf32, #tpu.memory_space<vmem>>, vector<8x1xf32>
    %62 = vector.broadcast %61 : vector<8x1xf32> to vector<8x6656xf32>
    %63 = arith.addf %60, %62 : vector<8x6656xf32>
    %c0_51 = arith.constant 0 : index
    %c0_52 = arith.constant 0 : index
    %64 = vector.load %arg10[%c0_51, %c0_52] : memref<8x6656xf32, #tpu.memory_space<vmem>>, vector<8x6656xf32>
    %65 = math.erf %63 : vector<8x6656xf32>
    %cst_53 = arith.constant 1.000000e+00 : f32
    %66 = vector.broadcast %cst_53 : f32 to vector<8x6656xf32>
    %67 = arith.addf %65, %66 : vector<8x6656xf32>
    %68 = arith.mulf %64, %67 : vector<8x6656xf32>
    %c0_54 = arith.constant 0 : index
    %c0_55 = arith.constant 0 : index
    %69 = vector.load %arg7[%c0_54, %c0_55] : memref<3x8xf32, #tpu.memory_space<vmem>>, vector<3x8xf32>
    %cst_56 = arith.constant dense<0.000000e+00> : vector<3x6656xf32>
    %70 = tpu.matmul %69, %68, %cst_56 {dimension_numbers = #tpu.dot_dimension_numbers<[1], [0], [0], [1], [0, 0, 1, 1], [], []>} : vector<3x8xf32>, vector<8x6656xf32>, vector<3x6656xf32> -> vector<3x6656xf32>
    %c0_57 = arith.constant 0 : index
    %c0_58 = arith.constant 0 : index
    %71 = vector.load %arg8[%c0_57, %c0_58] : memref<3x1xf32, #tpu.memory_space<vmem>>, vector<3x1xf32>
    %72 = vector.broadcast %71 : vector<3x1xf32> to vector<3x6656xf32>
    %73 = arith.addf %70, %72 : vector<3x6656xf32>
    %c0_59 = arith.constant 0 : index
    %c0_60 = arith.constant 0 : index
    %74 = vector.load %arg9[%c0_59, %c0_60] : memref<3x6656xf32, #tpu.memory_space<vmem>>, vector<3x6656xf32>
    tpu.vector_store %arg9[%c0_59, %c0_60], %73 {strides = array<i32>} : memref<3x6656xf32, #tpu.memory_space<vmem>>, vector<3x6656xf32>,
    return
  }
  func.func @transform_0(%arg0: i32) -> (i32, i32) {
    %c0_i32 = arith.constant 0 : i32
    %c0_i32_0 = arith.constant 0 : i32
    return %c0_i32, %arg0 : i32, i32
  }
  func.func @transform_1(%arg0: i32) -> (i32, i32) {
    %c1_i32 = arith.constant 1 : i32
    %0 = arith.addi %arg0, %c1_i32 : i32
    %c26_i32 = arith.constant 26 : i32
    %1 = arith.muli %0, %c26_i32 : i32
    %c0_i32 = arith.constant 0 : i32
    %c0_i32_0 = arith.constant 0 : i32
    return %c0_i32, %1 : i32, i32
  }
  func.func @transform_2(%arg0: i32) -> (i32, i32) {
    %c0_i32 = arith.constant 0 : i32
    %c0_i32_0 = arith.constant 0 : i32
    %c0_i32_1 = arith.constant 0 : i32
    return %c0_i32, %c0_i32_0 : i32, i32
  }
  func.func @transform_3(%arg0: i32) -> (i32, i32) {
    %c0_i32 = arith.constant 0 : i32
    %c0_i32_0 = arith.constant 0 : i32
    %c0_i32_1 = arith.constant 0 : i32
    return %c0_i32, %c0_i32_0 : i32, i32
  }
  func.func @transform_4(%arg0: i32) -> (i32, i32) {
    %c0_i32 = arith.constant 0 : i32
    %c0_i32_0 = arith.constant 0 : i32
    %c0_i32_1 = arith.constant 0 : i32
    return %c0_i32, %c0_i32_0 : i32, i32
  }
  func.func @transform_5(%arg0: i32) -> (i32, i32) {
    %c0_i32 = arith.constant 0 : i32
    %c0_i32_0 = arith.constant 0 : i32
    %c0_i32_1 = arith.constant 0 : i32
    return %c0_i32, %c0_i32_0 : i32, i32
  }
  func.func @transform_6(%arg0: i32) -> (i32, i32) {
    %c0_i32 = arith.constant 0 : i32
    %c0_i32_0 = arith.constant 0 : i32
    %c0_i32_1 = arith.constant 0 : i32
    return %c0_i32, %c0_i32_0 : i32, i32
  }
  func.func @transform_7(%arg0: i32) -> (i32, i32) {
    %c0_i32 = arith.constant 0 : i32
    %c0_i32_0 = arith.constant 0 : i32
    %c0_i32_1 = arith.constant 0 : i32
    return %c0_i32, %c0_i32_0 : i32, i32
  }
  func.func @transform_8(%arg0: i32) -> (i32, i32) {
    %c0_i32 = arith.constant 0 : i32
    %c0_i32_0 = arith.constant 0 : i32
    return %c0_i32, %arg0 : i32, i32
  }
}

</mosaic_0001>

<bundles_post_ra>
// kernel: model_forward.1
= control target key start
LH: loop header
LB: loop body
LE: loop exit
PB: predicated region body
PF: predicated region fallthrough
CT: control target
= control target key end

     0   :  { %s13129_s27 = smov 0   ;;  %s16917_s0 = inlined_call_operand.vmem [shape: f32[4,13568], index: 0, kind: input, shape index: {}, may-alias: {0,1}]   ;;  %s16918_s1 = inlined_call_operand.vmem [shape: f32[4,13568], index: 1, kind: input, shape index: {}, may-alias: {0,1}]   ;;  %s16919_s2 = inlined_call_operand.vmem [shape: f32[8,4], index: 2, kind: input, shape index: {}]   ;;  %s16920_s3 = inlined_call_operand.vmem [shape: f32[8,1], index: 3, kind: input, shape index: {}]   ;;  %s16921_s4 = inlined_call_operand.vmem [shape: f32[8,72], index: 4, kind: input, shape index: {}]   ;;  %s16922_s5 = inlined_call_operand.vmem [shape: f32[8,1], index: 5, kind: input, shape index: {}]   ;;  %s16923_s6 = inlined_call_operand.vmem [shape: f32[3,8], index: 6, kind: input, shape index: {}]   ;;  %s16924_s7 = inlined_call_operand.vmem [shape: f32[3,1], index: 7, kind: input, shape index: {}]   ;;  %s16925_s8 = inlined_call_operand.vmem [shape: f32[3,13312], index: 8, kind: output, shape index: {}]  }
   0x1 LB: > { %s11318_s28 = sadd.s32 4294967295, %s13072_s27   ;;  %p11322_p0 = scmp.ge.s32.totalorder %s13072_s27, 1  ;;  %s13072_s27 = sphi %s13129_s27, %s18_s27  }
   0x2   : > { %p290_p1 = scmp.lt.s32.totalorder %s13072_s27, 3 }
   0x4   : > { %p291_p2 = pnand %p11322_p0, %p290_p1 }
   0x6   : > { %294 = sbr.rel (%p291_p2) target bundleno = 1430 (0x596), region = 52 }
   0xd   : > { %s13139_s29 = smul.u32 52, %s11318_s28  ;;  %v392_v0 = vld [vmem:[%s16920_s3] sm:$0xff]  ;;  %v16926_v1 = vmov 0.0   ;;  %v13075_v2 = vmov 0   ;;  %vm454_vm0 = vcmask 1043456   ;;  %vm450_vm1 = vcmask 31744  }
   0xe   : > { %623 = vmatprep.mubr.f32.mxu0 %v16926_v1  ;;  %694 = vmatprep.mubr.f32.mxu1 %v16926_v1  ;;  %v13172_v9 = vld [vmem:[%s16919_s2] sm:$0xff]  ;;  %s13300_s17 = sadd.s32 1, %s11318_s28  ;;  %v2665_v59 = vlaneseq  ;;  %s13076_s23 = smov 13   ;;  %vm3393_vm2 = vcmask 105472   ;;  %vm3991_vm3 = vcmask 1039360   ;;  %vm4729_vm4 = vcmask 113664  }
   0xf   : > { %p340_p3 = scmp.lt.s32.totalorder %s13139_s29, 105  ;;  %11896 = vset.pattern.permute.xlu0 %v13075_v2  ;;  %11897 = vset.pattern.permute.xlu1 %v13075_v2  ;;  %s11324_s18 = smul.u32 52, %s13300_s17  ;;  %vm4360_vm5 = vcmask 1031168   ;;  %vm5466_vm6 = vcmask 97280   ;;  %vm6204_vm7 = vcmask 220160   ;;  %vm5835_vm8 = vcmask 228352  }
  0x10   : > { %395 = vperm.xlu0 %11896, %v392_v0   ;;  %3554 = vperm.xlu1 %11897, %v392_v0   ;;  %s13077_s24 = smov 26   ;;  %s13078_s25 = smov 127   ;;  %vm6573_vm9 = vcmask 211968   ;;  %vm7205_vm10 = vcmask 588800   ;;  %vm3673_vm11 = vcmask 1047656   ;;  %vm9270_vm12 = vcmask 64512  }
  0x11   : > { %s341_s10 = scalar_select %p340_p3, %s13139_s29, 105 }
  0x12   : > { %p352_p4 = scmp.lt.s32.totalorder %s11324_s18, 105  ;;  %s13079_s26 = smov 126  }
  0x13   : > { %s11323_s11 = sshll.u32 %s341_s10, 2  ;;  %s13080_s28 = smov 12  }
  0x14   : > { %s13151_s14 = scalar_lea.vmem %s16917_s0, %s11323_s11  ;;  %s17440_s18 = smov (!%p352_p4, %s11324_s18), 105 }
  0x15   : > { %v13154_v3 = vld [vmem:[%s13151_s14] sm:$0xff]  ;;  %v13157_v4 = vld [vmem:[%s13151_s14 + $0x8] sm:$0xff]  ;;  %v13160_v5 = vld [vmem:[%s13151_s14 + $0x10] sm:$0xff]  ;;  %s11325_s19 = sshll.u32 %s17440_s18, 2  ;;  %s13081_s30 = smov 14  }
  0x16   : > { %v424_v6 = vcombine.high %v13154_v3, %v13154_v3  ;;  %v425_v7 = vcombine.high %v13157_v4, %v13157_v4  ;;  %v13167_v8 = vld [vmem:[%s13151_s14 + $0x18] sm:$0xff]  ;;  %v426_v10 = vcombine.high %v13160_v5, %v13160_v5  ;;  %v13181_v12 = vld [vmem:[%s13151_s14 + $0x20] sm:$0xff]  ;;  %v13184_v13 = vld [vmem:[%s13151_s14 + $0x28] sm:$0xff]  ;;  %s13381_s22 = scalar_lea.vmem %s16918_s1, %s11325_s19  ;;  %s13082_s9 = smov 28  }
  0x17   : > { %v427_v11 = vcombine.high %v13167_v8, %v13167_v8  ;;  %v428_v14 = vcombine.high %v13181_v12, %v13181_v12  ;;  %v429_v15 = vcombine.high %v13184_v13, %v13184_v13  ;;  %v13204_v16 = vld [vmem:[%s13151_s14 + $0x30] sm:$0xff]  ;;  %v13207_v17 = vld [vmem:[%s13151_s14 + $0x38] sm:$0xff]  ;;  %v13226_v20 = vld [vmem:[%s13151_s14 + $0x40] sm:$0xff]  ;;  %s13083_s10 = smov 27   ;;  %p360_p5 = scmp.lt.s32.totalorder %s13139_s29, 103 }
  0x18   : > { %11327 = vmatprep.subr.msk.mxu0 %vm454_vm0, %v424_v6  ;;  %11330 = vmatprep.subr.msk.mxu1 %vm454_vm0, %v425_v7  ;;  %v430_v18 = vcombine.high %v13204_v16, %v13204_v16  ;;  %v431_v19 = vcombine.high %v13207_v17, %v13207_v17  ;;  %v13229_v21 = vld [vmem:[%s13151_s14 + $0x48] sm:$0xff]  ;;  %v432_v22 = vcombine.high %v13226_v20, %v13226_v20  ;;  %v13248_v24 = vld [vmem:[%s13151_s14 + $0x50] sm:$0xff]  ;;  %v13251_v25 = vld [vmem:[%s13151_s14 + $0x58] sm:$0xff] }
  0x19   : > { %11328 = vmatpush1.msk.msra.mxu0 %vm454_vm0, %v13154_v3  ;;  %11331 = vmatpush1.msk.msra.mxu1 %vm454_vm0, %v13157_v4  ;;  %v433_v23 = vcombine.high %v13229_v21, %v13229_v21  ;;  %v434_v26 = vcombine.high %v13248_v24, %v13248_v24  ;;  %v435_v27 = vcombine.high %v13251_v25, %v13251_v25  ;;  %v377_v28 = vld [vmem:[%s13151_s14 + $0x60] sm:$0xff]  ;;  %v378_v29 = vld [vmem:[%s13151_s14 + $0x68] sm:$0xff]  ;;  %v13284_v32 = vld [vmem:[%s13151_s14 + $0x70] sm:$0xff]  ;;  %s17442_s29 = smov (!%p360_p5, %s13139_s29), 103 }
  0x1a   : > { %11329 = vmatmul.mubr.msk.f32.vlgmr.msra.gmra.mrb[0].mxu0 %vm450_vm1, %v13172_v9  ;;  %11332 = vmatmul.mubr.msk.f32.vlgmr.msra.gmra.mrb[0].mxu1 %vm450_vm1, %v13172_v9  ;;  %v436_v30 = vcombine.high %v377_v28, %v377_v28  ;;  %v437_v31 = vcombine.high %v378_v29, %v378_v29  ;;  %v380_v33 = vld [vmem:[%s13151_s14 + $0x78] sm:$0xff]  ;;  %v438_v34 = vcombine.high %v13284_v32, %v13284_v32  ;;  %v13305_v36 = vld [vmem:[%s13151_s14 + $0x80] sm:$0xff]  ;;  %v13308_v37 = vld [vmem:[%s13151_s14 + $0x88] sm:$0xff] }
  0x1b   : > { %11333 = vmatprep.subr.msk.mxu0 %vm454_vm0, %v426_v10  ;;  %11336 = vmatprep.subr.msk.mxu1 %vm454_vm0, %v427_v11  ;;  %v439_v35 = vcombine.high %v380_v33, %v380_v33  ;;  %v440_v38 = vcombine.high %v13305_v36, %v13305_v36  ;;  %v441_v39 = vcombine.high %v13308_v37, %v13308_v37  ;;  %v383_v40 = vld [vmem:[%s13151_s14 + $0x90] sm:$0xff]  ;;  %v384_v41 = vld [vmem:[%s13151_s14 + $0x98] sm:$0xff]  ;;  %v13340_v44 = vld [vmem:[%s13151_s14 + $0xa0] sm:$0xff] }
  0x1c   : > { %11334 = vmatpush1.msk.msra.mxu0 %vm454_vm0, %v13160_v5  ;;  %765 = vmatprep.mubr.f32.mxu0 %v16926_v1  ;;  %v442_v42 = vcombine.high %v383_v40, %v383_v40  ;;  %v443_v43 = vcombine.high %v384_v41, %v384_v41  ;;  %v13343_v45 = vld [vmem:[%s13151_s14 + $0xa8] sm:$0xff]  ;;  %v444_v46 = vcombine.high %v13340_v44, %v13340_v44  ;;  %v387_v48 = vld [vmem:[%s13151_s14 + $0xb0] sm:$0xff]  ;;  %v388_v49 = vld [vmem:[%s13151_s14 + $0xb8] sm:$0xff] }
  0x1d   : > { %11337 = vmatpush1.msk.msra.mxu1 %vm454_vm0, %v13167_v8  ;;  %836 = vmatprep.mubr.f32.mxu1 %v16926_v1  ;;  %v445_v47 = vcombine.high %v13343_v45, %v13343_v45  ;;  %v446_v50 = vcombine.high %v387_v48, %v387_v48  ;;  %v447_v51 = vcombine.high %v388_v49, %v388_v49  ;;  %v389_v52 = vld [vmem:[%s13151_s14 + $0xc0] sm:$0xff]  ;;  %v390_v53 = vld [vmem:[%s13151_s14 + $0xc8] sm:$0xff] }
  0x1e   : > { %11335 = vmatmul.mubr.msk.f32.vlgmr.msra.gmra.mrb[2].mxu0 %vm450_vm1, %v13172_v9  ;;  %11338 = vmatmul.mubr.msk.f32.vlgmr.msra.gmra.mrb[2].mxu1 %vm450_vm1, %v13172_v9  ;;  %v448_v54 = vcombine.high %v389_v52, %v389_v52  ;;  %v449_v55 = vcombine.high %v390_v53, %v390_v53  ;;  %v3549_v56 = vld [vmem:[%s13381_s22] sm:$0xff] }
  0x1f   : > { %11339 = vmatprep.subr.msk.mxu0 %vm454_vm0, %v428_v14  ;;  %11342 = vmatprep.subr.msk.mxu1 %vm454_vm0, %v429_v15  ;;  %v3558_v57 = vcombine.high %v3549_v56, %v3549_v56 }
  0x20   : > { %11340 = vmatpush1.msk.msra.mxu0 %vm454_vm0, %v13181_v12  ;;  %907 = vmatprep.mubr.f32.mxu0 %v16926_v1 }
  0x21   : > { %11343 = vmatpush1.msk.msra.mxu1 %vm454_vm0, %v13184_v13  ;;  %978 = vmatprep.mubr.f32.mxu1 %v16926_v1 }
  0x22   : > { %11341 = vmatmul.mubr.msk.f32.vlgmr.msra.gmra.mrb[4].mxu0 %vm450_vm1, %v13172_v9  ;;  %11344 = vmatmul.mubr.msk.f32.vlgmr.msra.gmra.mrb[4].mxu1 %vm450_vm1, %v13172_v9 }
  0x23   : > { %11345 = vmatprep.subr.msk.mxu0 %vm454_vm0, %v430_v18  ;;  %11348 = vmatprep.subr.msk.mxu1 %vm454_vm0, %v431_v19 }
  0x24   : > { %11346 = vmatpush1.msk.msra.mxu0 %vm454_vm0, %v13204_v16  ;;  %1049 = vmatprep.mubr.f32.mxu0 %v16926_v1 }
  0x25   : > { %11349 = vmatpush1.msk.msra.mxu1 %vm454_vm0, %v13207_v17  ;;  %1120 = vmatprep.mubr.f32.mxu1 %v16926_v1 }
  0x26   : > { %11347 = vmatmul.mubr.msk.f32.vlgmr.msra.gmra.mrb[6].mxu0 %vm450_vm1, %v13172_v9  ;;  %11350 = vmatmul.mubr.msk.f32.vlgmr.msra.gmra.mrb[6].mxu1 %vm450_vm1, %v13172_v9 }
  0x27   : > { %11351 = vmatprep.subr.msk.mxu0 %vm454_vm0, %v432_v22  ;;  %11354 = vmatprep.subr.msk.mxu1 %vm454_vm0, %v433_v23 }
  0x28   : > { %11352 = vmatpush1.msk.msra.mxu0 %vm454_vm0, %v13226_v20  ;;  %1191 = vmatprep.mubr.f32.mxu0 %v16926_v1 }
  0x29   : > { %11355 = vmatpush1.msk.msra.mxu1 %vm454_vm0, %v13229_v21  ;;  %1262 = vmatprep.mubr.f32.mxu1 %v16926_v1 }
  0x2a   : > { %11353 = vmatmul.mubr.msk.f32.vlgmr.msra.gmra.mrb[8].mxu0 %vm450_vm1, %v13172_v9  ;;  %11356 = vmatmul.mubr.msk.f32.vlgmr.msra.gmra.mrb[8].mxu1 %vm450_vm1, %v13172_v9 }
  0x2b   : > { %11357 = vmatprep.subr.msk.mxu0 %vm454_vm0, %v434_v26  ;;  %11360 = vmatprep.subr.msk.mxu1 %vm454_vm0, %v435_v27 }
  0x2c   : > { %11358 = vmatpush1.msk.msra.mxu0 %vm454_vm0, %v13248_v24  ;;  %1333 = vmatprep.mubr.f32.mxu0 %v16926_v1 }
  0x2d   : > { %11361 = vmatpush1.msk.msra.mxu1 %vm454_vm0, %v13251_v25  ;;  %1404 = vmatprep.mubr.f32.mxu1 %v16926_v1 }
  0x2e   : > { %11359 = vmatmul.mubr.msk.f32.vlgmr.msra.gmra.mrb[10].mxu0 %vm450_vm1, %v13172_v9  ;;  %11362 = vmatmul.mubr.msk.f32.vlgmr.msra.gmra.mrb[10].mxu1 %vm450_vm1, %v13172_v9 }
  0x2f   : > { %11363 = vmatprep.subr.msk.mxu0 %vm454_vm0, %v436_v30  ;;  %11366 = vmatprep.subr.msk.mxu1 %vm454_vm0, %v437_v31 }
  0x30   : > { %11364 = vmatpush1.msk.msra.mxu0 %vm454_vm0, %v377_v28  ;;  %1475 = vmatprep.mubr.f32.mxu0 %v16926_v1 }
  0x31   : > { %11367 = vmatpush1.msk.msra.mxu1 %vm454_vm0, %v378_v29  ;;  %1546 = vmatprep.mubr.f32.mxu1 %v16926_v1 }
  0x32   : > { %11365 = vmatmul.mubr.msk.f32.vlgmr.msra.gmra.mrb[12].mxu0 %vm450_vm1, %v13172_v9  ;;  %11368 = vmatmul.mubr.msk.f32.vlgmr.msra.gmra.mrb[12].mxu1 %vm450_vm1, %v13172_v9 }
  0x33   : > { %11369 = vmatprep.subr.msk.mxu0 %vm454_vm0, %v438_v34  ;;  %11372 = vmatprep.subr.msk.mxu1 %vm454_vm0, %v439_v35 }
  0x34   : > { %11370 = vmatpush1.msk.msra.mxu0 %vm454_vm0, %v13284_v32  ;;  %1617 = vmatprep.mubr.f32.mxu0 %v16926_v1 }
  0x35   : > { %11373 = vmatpush1.msk.msra.mxu1 %vm454_vm0, %v380_v33  ;;  %1688 = vmatprep.mubr.f32.mxu1 %v16926_v1 }
  0x36   : > { %11371 = vmatmul.mubr.msk.f32.vlgmr.msra.gmra.mrb[14].mxu0 %vm450_vm1, %v13172_v9  ;;  %11374 = vmatmul.mubr.msk.f32.vlgmr.msra.gmra.mrb[14].mxu1 %vm450_vm1, %v13172_v9 }
  0x37   : > { %11375 = vmatprep.subr.msk.mxu0 %vm454_vm0, %v440_v38  ;;  %11378 = vmatprep.subr.msk.mxu1 %vm454_vm0, %v441_v39 }
  0x38   : > { %11376 = vmatpush1.msk.msra.mxu0 %vm454_vm0, %v13305_v36  ;;  %1759 = vmatprep.mubr.f32.mxu0 %v16926_v1 }
  0x39   : > { %11379 = vmatpush1.msk.msra.mxu1 %vm454_vm0, %v13308_v37  ;;  %1830 = vmatprep.mubr.f32.mxu1 %v16926_v1 }
  0x3a   : > { %11377 = vmatmul.mubr.msk.f32.vlgmr.msra.gmra.mrb[16].mxu0 %vm450_vm1, %v13172_v9  ;;  %11380 = vmatmul.mubr.msk.f32.vlgmr.msra.gmra.mrb[16].mxu1 %vm450_vm1, %v13172_v9 }
  0x3b   : > { %11381 = vmatprep.subr.msk.mxu0 %vm454_vm0, %v442_v42  ;;  %11384 = vmatprep.subr.msk.mxu1 %vm454_vm0, %v443_v43 }
  0x3c   : > { %11382 = vmatpush1.msk.msra.mxu0 %vm454_vm0, %v383_v40  ;;  %1901 = vmatprep.mubr.f32.mxu0 %v16926_v1 }
  0x3d   : > { %11385 = vmatpush1.msk.msra.mxu1 %vm454_vm0, %v384_v41  ;;  %1972 = vmatprep.mubr.f32.mxu1 %v16926_v1 }
  0x3e   : > { %11383 = vmatmul.mubr.msk.f32.vlgmr.msra.gmra.mrb[18].mxu0 %vm450_vm1, %v13172_v9  ;;  %11386 = vmatmul.mubr.msk.f32.vlgmr.msra.gmra.mrb[18].mxu1 %vm450_vm1, %v13172_v9 }
  0x3f   : > { %11387 = vmatprep.subr.msk.mxu0 %vm454_vm0, %v444_v46  ;;  %11390 = vmatprep.subr.msk.mxu1 %vm454_vm0, %v445_v47 }
  0x40   : > { %11388 = vmatpush1.msk.msra.mxu0 %vm454_vm0, %v13340_v44  ;;  %2043 = vmatprep.mubr.f32.mxu0 %v16926_v1 }
  0x41   : > { %11391 = vmatpush1.msk.msra.mxu1 %vm454_vm0, %v13343_v45  ;;  %2114 = vmatprep.mubr.f32.mxu1 %v16926_v1 }
  0x42   : > { %11389 = vmatmul.mubr.msk.f32.vlgmr.msra.gmra.mrb[20].mxu0 %vm450_vm1, %v13172_v9  ;;  %11392 = vmatmul.mubr.msk.f32.vlgmr.msra.gmra.mrb[20].mxu1 %vm450_vm1, %v13172_v9 }
  0x43   : > { %11393 = vmatprep.subr.msk.mxu0 %vm454_vm0, %v446_v50  ;;  %11396 = vmatprep.subr.msk.mxu1 %vm454_vm0, %v447_v51 }
  0x44   : > { %11394 = vmatpush1.msk.msra.mxu0 %vm454_vm0, %v387_v48  ;;  %2185 = vmatprep.mubr.f32.mxu0 %v16926_v1 }
  0x45   : > { %11397 = vmatpush1.msk.msra.mxu1 %vm454_vm0, %v388_v49  ;;  %2256 = vmatprep.mubr.f32.mxu1 %v16926_v1 }
  0x46   : > { %11395 = vmatmul.mubr.msk.f32.vlgmr.msra.gmra.mrb[22].mxu0 %vm450_vm1, %v13172_v9  ;;  %11398 = vmatmul.mubr.msk.f32.vlgmr.msra.gmra.mrb[22].mxu1 %vm450_vm1, %v13172_v9 }
  0x47   : > { %11399 = vmatprep.subr.msk.mxu0 %vm454_vm0, %v448_v54  ;;  %11402 = vmatprep.subr.msk.mxu1 %vm454_vm0, %v449_v55 }
  0x48   : > { %11400 = vmatpush1.msk.msra.mxu0 %vm454_vm0, %v389_v52  ;;  %2327 = vmatprep.mubr.f32.mxu0 %v16926_v1 }
  0x49   : > { %11403 = vmatpush1.msk.msra.mxu1 %vm454_vm0, %v390_v53  ;;  %2398 = vmatprep.mubr.f32.mxu1 %v16926_v1 }
  0x4a   : > { %11401 = vmatmul.mubr.msk.f32.vlgmr.msra.gmra.mrb[24].mxu0 %vm450_vm1, %v13172_v9  ;;  %11404 = vmatmul.mubr.msk.f32.vlgmr.msra.gmra.mrb[24].mxu1 %vm450_vm1, %v13172_v9 }
  0x4b   : > { %11405 = vmatprep.subr.msk.mxu0 %vm454_vm0, %v3558_v57  ;;  %3630 = vmatprep.mubr.f32.mxu0 %v16926_v1 }
  0x4c   : > { %11406 = vmatpush1.msk.msra.mxu0 %vm454_vm0, %v3549_v56  ;;  %7273 = vmatprep.mubr.f32.mxu1 %v16926_v1 }
  0x4e   : > { %11407 = vmatmul.mubr.msk.f32.vlgmr.msra.gmra.mrb[26].mxu0 %vm450_vm1, %v13172_v9  ;;  %v2666_v9 = vshrl.u32 %v2665_v59, 7 }
  0x4f   : > { %7344 = vmatprep.mubr.f32.mxu0 %v16926_v1 }
  0x50   : > { %v13425_v26 = vsub.s32 3, %v2666_v9  ;;  %v13433_v31 = vsub.s32 7, %v2666_v9 }
  0x52   : > { %17090 = vst [vmem:[#allocation5_spill] sm:$0xff] %v13425_v26  ;;  %17091 = vst [vmem:[#allocation6_spill] sm:$0xff] %v13433_v31  ;;  %v2668_v35 = vrot.slane %v13154_v3, %v13425_v26  ;;  %v2676_v38 = vrot.slane %v13157_v4, %v13425_v26  ;;  %v2672_v46 = vrot.slane %v13154_v3, %v13433_v31 }
  0x53   : > { %v2680_v49 = vrot.slane %v13157_v4, %v13433_v31 }
  0x54   : > { %v2928_v53 = vrot.slane %v2668_v35, %v13425_v26  ;;  %v2936_v54 = vrot.slane %v2676_v38, %v13425_v26  ;;  %v2932_v9 = vrot.slane %v2672_v46, %v13425_v26 }
  0x8f   : > { %v13415_v58 = vpop.permute.xlu0 %395 }
  0xed   : > { %v625_v60 = vpop.f32.mrb[0].mxu0  ;;  %v696_v61 = vpop.f32.mrb[0].mxu1 }
  0xee   : > { %v626_v62 = vadd.f32 %v625_v60, %v13415_v58  ;;  %v697_v63 = vadd.f32 %v696_v61, %v13415_v58  ;;  %v627_v0 = vpop.f32.mrb[1].mxu0  ;;  %v698_v2 = vpop.f32.mrb[1].mxu1 }
  0xef   : > { %v628_v6 = vadd.f32 %v627_v0, %v13415_v58  ;;  %v699_v7 = vadd.f32 %v698_v2, %v13415_v58 }
  0xf0   : > { %v2457_v10 = vmul.f32 0.70710677, %v626_v62  ;;  %v2459_v11 = vmul.f32 0.70710677, %v697_v63  ;;  %3293 = vrot.lane.b32.xlu1 %v697_v63, %s13076_s23  ;;  %3289 = vrot.lane.b32.xlu0 %v626_v62, %s13076_s23  ;;  %v2405_v51 = vmul.f32 0.5, %v626_v62  ;;  %v2407_v57 = vmul.f32 0.5, %v697_v63 }
  0xf1   : > { %v2458_v14 = vmul.f32 0.70710677, %v628_v6  ;;  %v2460_v15 = vmul.f32 0.70710677, %v699_v7  ;;  %v767_v18 = vpop.f32.mrb[2].mxu0  ;;  %v838_v19 = vpop.f32.mrb[2].mxu1  ;;  %v2940_v63 = vrot.slane %v2680_v49, %v13425_v26 }
  0xf2   : > { %12835 = verf.f32 %v2457_v10  ;;  %v769_v22 = vpop.f32.mrb[3].mxu0  ;;  %v840_v23 = vpop.f32.mrb[3].mxu1  ;;  %v13428_v29 = vadd.f32 %v767_v18, %v13415_v58  ;;  %v13444_v41 = vadd.f32 %v838_v19, %v13415_v58  ;;  %v2406_v10 = vmul.f32 0.5, %v628_v6 }
  0xf3   : > { %12837 = verf.f32 %v2459_v11  ;;  %v13431_v30 = vadd.f32 %v769_v22, %v13415_v58  ;;  %v13447_v42 = vadd.f32 %v840_v23, %v13415_v58 }
  0xf4   : > { %12839 = verf.f32 %v2458_v14  ;;  %3291 = vrot.lane.b32.xlu1 %v628_v6, %s13076_s23  ;;  %3295 = vrot.lane.b32.xlu0 %v699_v7, %s13076_s23 }
  0xf5   : > { %12841 = verf.f32 %v2460_v15  ;;  %v909_v27 = vpop.f32.mrb[4].mxu0  ;;  %v980_v28 = vpop.f32.mrb[4].mxu1  ;;  %v2408_v15 = vmul.f32 0.5, %v699_v7 }
  0xf6   : > { %v911_v33 = vpop.f32.mrb[5].mxu0  ;;  %v982_v34 = vpop.f32.mrb[5].mxu1  ;;  %v13460_v4 = vadd.f32 %v909_v27, %v13415_v58  ;;  %v13476_v35 = vadd.f32 %v980_v28, %v13415_v58 }
  0xf7   : > { %v13463_v60 = vadd.f32 %v911_v33, %v13415_v58  ;;  %v13479_v7 = vadd.f32 %v982_v34, %v13415_v58 }
  0xf8   : > { %3297 = vrot.lane.b32.xlu1 %v13428_v29, %s13076_s23  ;;  %3299 = vrot.lane.b32.xlu0 %v13431_v30, %s13076_s23 }
  0xf9   : > { %v1051_v39 = vpop.f32.mrb[6].mxu0  ;;  %v1122_v40 = vpop.f32.mrb[6].mxu1 }
  0xfa   : > { %v1053_v43 = vpop.f32.mrb[7].mxu0  ;;  %v1124_v47 = vpop.f32.mrb[7].mxu1  ;;  %v13498_v34 = vadd.f32 %v1051_v39, %v13415_v58  ;;  %v13516_v39 = vadd.f32 %v1122_v40, %v13415_v58 }
  0xfc   : > { %v12836_v48 = vpop.eup %12835  ;;  %3301 = vrot.lane.b32.xlu1 %v13444_v41, %s13076_s23  ;;  %3303 = vrot.lane.b32.xlu0 %v13447_v42, %s13076_s23 }
  0xfd   : > { %v12838_v50 = vpop.eup %12837  ;;  %v2561_v52 = vadd.f32 1.0, %v12836_v48  ;;  %v1193_v55 = vpop.f32.mrb[8].mxu0 }
  0xfe   : > { %v1264_v3 = vpop.f32.mrb[8].mxu1  ;;  %v12840_v56 = vpop.eup %12839  ;;  %v2563_v59 = vadd.f32 1.0, %v12838_v50  ;;  %v13534_v40 = vadd.f32 %v1193_v55, %v13415_v58 }
  0xff   : > { %v1195_v61 = vpop.f32.mrb[9].mxu0  ;;  %v1266_v0 = vpop.f32.mrb[9].mxu1  ;;  %v2613_v62 = vmul.f32 %v2561_v52, %v2405_v51  ;;  %v2562_v11 = vadd.f32 1.0, %v12840_v56  ;;  %v13501_v51 = vadd.f32 %v1053_v43, %v13415_v58  ;;  %v13519_v43 = vadd.f32 %v1124_v47, %v13415_v58 }
 0x100   : > { %v12842_v2 = vpop.eup %12841  ;;  %v2615_v14 = vmul.f32 %v2563_v59, %v2407_v57  ;;  %3305 = vrot.lane.b32.xlu1 %v13460_v4, %s13076_s23  ;;  %3307 = vrot.lane.b32.xlu0 %v13463_v60, %s13076_s23  ;;  %v13537_v47 = vadd.f32 %v1195_v61, %v13415_v58  ;;  %v13552_v55 = vadd.f32 %v1264_v3, %v13415_v58 }
 0x101   : > { %v2564_v18 = vadd.f32 1.0, %v12842_v2  ;;  %v13471_v19 = vmul.f32 %v2928_v53, %v2613_v62  ;;  %v2614_v22 = vmul.f32 %v2562_v11, %v2406_v10  ;;  %v1335_v23 = vpop.f32.mrb[10].mxu0  ;;  %v1406_v27 = vpop.f32.mrb[10].mxu1  ;;  %v13555_v61 = vadd.f32 %v1266_v0, %v13415_v58 }
 0x102   : > { %v13473_v6 = vmul.f32 %v2936_v54, %v2615_v14  ;;  %v13481_v38 = vpop.f32.mrb[11].mxu0  ;;  %v13483_v46 = vpop.f32.mrb[11].mxu1  ;;  %v13570_v3 = vadd.f32 %v1335_v23, %v13415_v58 }
 0x103   : > { %v2616_v33 = vmul.f32 %v2564_v18, %v2408_v15  ;;  %v13485_v48 = vmul.f32 %v2932_v9, %v2614_v22 }
 0x104   : > { %17092 = vst [vmem:[#allocation7_spill] sm:$0xff] %v13473_v6  ;;  %3309 = vrot.lane.b32.xlu1 %v13476_v35, %s13076_s23  ;;  %3311 = vrot.lane.b32.xlu0 %v13479_v7, %s13076_s23 }
 0x105   : > { %v13487_v49 = vmul.f32 %v2940_v63, %v2616_v33  ;;  %v13493_v50 = vpop.f32.mrb[12].mxu0  ;;  %v13495_v28 = vpop.f32.mrb[12].mxu1 }
 0x106   : > { %v13503_v52 = vpop.f32.mrb[13].mxu0  ;;  %v13505_v53 = vpop.f32.mrb[13].mxu1 }
 0x107   : > { %17093 = vst [vmem:[#allocation8_spill] sm:$0xff] %v13487_v49 }
 0x108   : > { %3313 = vrot.lane.b32.xlu1 %v13498_v34, %s13076_s23  ;;  %3315 = vrot.lane.b32.xlu0 %v13501_v51, %s13076_s23 }
 0x109   : > { %v13511_v54 = vpop.f32.mrb[14].mxu0  ;;  %v13513_v56 = vpop.f32.mrb[14].mxu1 }
 0x10a   : > { %v13521_v57 = vpop.f32.mrb[15].mxu0  ;;  %v13523_v59 = vpop.f32.mrb[15].mxu1 }
 0x10c   : > { %3317 = vrot.lane.b32.xlu1 %v13516_v39, %s13076_s23  ;;  %3319 = vrot.lane.b32.xlu0 %v13519_v43, %s13076_s23 }
 0x10d   : > { %v13529_v2 = vpop.f32.mrb[16].mxu0  ;;  %v13531_v62 = vpop.f32.mrb[16].mxu1 }
 0x10e   : > { %17094 = vst [vmem:[#allocation9_spill] sm:$0xff] %v13529_v2  ;;  %17095 = vst [vmem:[#allocation10_spill] sm:$0xff] %v13531_v62  ;;  %v13539_v10 = vpop.f32.mrb[17].mxu0  ;;  %v13541_v11 = vpop.f32.mrb[17].mxu1 }
 0x10f   : > { %17096 = vst [vmem:[#allocation11_spill] sm:$0xff] %v13539_v10  ;;  %17097 = vst [vmem:[#allocation12_spill] sm:$0xff] %v13541_v11  ;;  %v2411_v11 = vmul.f32 0.5, %v13444_v41 }
 0x110   : > { %3321 = vrot.lane.b32.xlu1 %v13534_v40, %s13076_s23  ;;  %3323 = vrot.lane.b32.xlu0 %v13537_v47, %s13076_s23 }
 0x111   : > { %v13547_v9 = vpop.f32.mrb[18].mxu0  ;;  %v13549_v14 = vpop.f32.mrb[18].mxu1 }
 0x112   : > { %17098 = vst [vmem:[#allocation13_spill] sm:$0xff] %v13547_v9  ;;  %17099 = vst [vmem:[#allocation14_spill] sm:$0xff] %v13549_v14  ;;  %v13557_v15 = vpop.f32.mrb[19].mxu0  ;;  %v13559_v18 = vpop.f32.mrb[19].mxu1 }
 0x113   : > { %17100 = vst [vmem:[#allocation15_spill] sm:$0xff] %v13557_v15  ;;  %17101 = vst [vmem:[#allocation16_spill] sm:$0xff] %v13559_v18 }
 0x114   : > { %3325 = vrot.lane.b32.xlu1 %v13552_v55, %s13076_s23  ;;  %3327 = vrot.lane.b32.xlu0 %v13555_v61, %s13076_s23 }
 0x115   : > { %v13565_v63 = vpop.f32.mrb[20].mxu0  ;;  %v13567_v22 = vpop.f32.mrb[20].mxu1 }
 0x116   : > { %17102 = vst [vmem:[#allocation17_spill] sm:$0xff] %v13565_v63  ;;  %17103 = vst [vmem:[#allocation18_spill] sm:$0xff] %v13567_v22  ;;  %v13572_v33 = vpop.f32.mrb[21].mxu0  ;;  %v13574_v0 = vpop.f32.mrb[21].mxu1  ;;  %v13585_v22 = vadd.f32 %v1406_v27, %v13415_v58  ;;  %v2461_v27 = vmul.f32 0.70710677, %v13428_v29 }
 0x117   : > { %17104 = vst [vmem:[#allocation19_spill] sm:$0xff] %v13572_v33  ;;  %17105 = vst [vmem:[#allocation20_spill] sm:$0xff] %v13574_v0 }
 0x118   : > { %3329 = vrot.lane.b32.xlu1 %v13570_v3, %s13076_s23  ;;  %6469 = vrot.lane.b32.xlu0 %v13473_v6, %s13077_s24  ;;  %12843 = verf.f32 %v2461_v27  ;;  %v11923_v27 = vpack.i.bf16 %v13473_v6, %v13485_v48 }
 0x119   : > { %v13580_v1 = vpop.f32.mrb[22].mxu0  ;;  %v13582_v18 = vpop.f32.mrb[22].mxu1 }
 0x11a   : > { %17106 = vst [vmem:[#allocation21_spill] sm:$0xff] %v13580_v1  ;;  %17107 = vst [vmem:[#allocation22_spill] sm:$0xff] %v13582_v18  ;;  %v13587_v23 = vpop.f32.mrb[23].mxu0  ;;  %v13589_v63 = vpop.f32.mrb[23].mxu1 }
 0x11b   : > { %17108 = vst [vmem:[#allocation23_spill] sm:$0xff] %v13587_v23  ;;  %17109 = vst [vmem:[#allocation24_spill] sm:$0xff] %v13589_v63  ;;  %v11903_v63 = vpack.i.bf16 %v13487_v49, %v13473_v6 }
 0x11c   : > { %3333 = vrot.lane.b32.xlu1 %v13585_v22, %s13076_s23 }
 0x11d   : > { %v13593_v0 = vpop.f32.mrb[24].mxu0  ;;  %v13595_v33 = vpop.f32.mrb[24].mxu1  ;;  %11904 = vrot.lane.b32.xlu0 %v11903_v63, %s13078_s25 }
 0x11e   : > { %17110 = vst [vmem:[#allocation25_spill] sm:$0xff] %v13593_v0  ;;  %17111 = vst [vmem:[#allocation26_spill] sm:$0xff] %v13595_v33  ;;  %v13597_v15 = vpop.f32.mrb[25].mxu0  ;;  %v13599_v14 = vpop.f32.mrb[25].mxu1  ;;  %v2463_v0 = vmul.f32 0.70710677, %v13444_v41 }
 0x11f   : > { %17112 = vst [vmem:[#allocation27_spill] sm:$0xff] %v13597_v15  ;;  %17113 = vst [vmem:[#allocation28_spill] sm:$0xff] %v13599_v14  ;;  %v11908_v15 = vpack.i.bf16 %v13485_v48, %v13471_v19  ;;  %v2409_v33 = vmul.f32 0.5, %v13428_v29  ;;  %v2692_v29 = vrot.slane %v13167_v8, %v13425_v26 }
 0x120   : > { %12845 = verf.f32 %v2463_v0 }
 0x121   : > { %v13601_v1 = vpop.f32.mrb[26].mxu0  ;;  %11909 = vrot.lane.b32.xlu0 %v11908_v15, %s13079_s26  ;;  %11899 = vrot.lane.b32.xlu1 %v11908_v15, %s13078_s25 }
 0x122   : > { %17114 = vst [vmem:[#allocation29_spill] sm:$0xff] %v13601_v1  ;;  %v13603_v18 = vpop.f32.mrb[27].mxu0  ;;  %v12844_v14 = vpop.eup %12843  ;;  %v2684_v1 = vrot.slane %v13160_v5, %v13425_v26 }
 0x123   : > { %17115 = vst [vmem:[#allocation30_spill] sm:$0xff] %v13603_v18  ;;  %v2565_v18 = vadd.f32 1.0, %v12844_v14  ;;  %v2462_v14 = vmul.f32 0.70710677, %v13431_v30 }
 0x124   : > { %v2944_v23 = vrot.slane %v2684_v1, %v13425_v26  ;;  %v2464_v1 = vmul.f32 0.70710677, %v13447_v42 }
 0x125   : > { %11924 = vrot.lane.b32.xlu0 %v11923_v27, %s13076_s23  ;;  %11914 = vrot.lane.b32.xlu1 %v11903_v63, %s13079_s26  ;;  %v2617_v0 = vmul.f32 %v2565_v18, %v2409_v33  ;;  %12847 = verf.f32 %v2462_v14  ;;  %v2952_v33 = vrot.slane %v2692_v29, %v13425_v26  ;;  %v13659_v14 = vadd.f32 %v13483_v46, %v13415_v58 }
 0x126   : > { %12849 = verf.f32 %v2464_v1  ;;  %v2410_v29 = vmul.f32 0.5, %v13431_v30  ;;  %v13671_v46 = vadd.f32 %v13493_v50, %v13415_v58  ;;  %v2412_v30 = vmul.f32 0.5, %v13447_v42 }
 0x127   : > { %v13625_v15 = vmul.f32 %v2944_v23, %v2617_v0  ;;  %v13685_v42 = vadd.f32 %v13495_v28, %v13415_v58 }
 0x129   : > { %11929 = vrot.lane.b32.xlu0 %v11923_v27, %s13080_s28  ;;  %11919 = vrot.lane.b32.xlu1 %v11923_v27, %s13081_s30  ;;  %17116 = vst [vmem:[#allocation31_spill] sm:$0xff] %v13625_v15  ;;  %v2688_v27 = vrot.slane %v13160_v5, %v13433_v31  ;;  %v2696_v5 = vrot.slane %v13167_v8, %v13433_v31 }
 0x12a   : > { %v12846_v9 = vpop.eup %12845 }
 0x12b   : > { %v2567_v6 = vadd.f32 1.0, %v12846_v9  ;;  %v11948_v9 = vpack.i.bf16 %v13625_v15, %v13487_v49 }
 0x12d   : > { %11934 = vrot.lane.b32.xlu0 %v11903_v63, %s13082_s9  ;;  %6471 = vrot.lane.b32.xlu1 %v13487_v49, %s13077_s24  ;;  %v2619_v18 = vmul.f32 %v2567_v6, %v2411_v11  ;;  %v13646_v6 = vadd.f32 %v13481_v38, %v13415_v58 }
 0x12f   : > { %v13639_v41 = vmul.f32 %v2952_v33, %v2619_v18  ;;  %v12848_v23 = vpop.eup %12847  ;;  %v2948_v33 = vrot.slane %v2688_v27, %v13425_v26 }
 0x130   : > { %v2566_v0 = vadd.f32 1.0, %v12848_v23  ;;  %v12850_v38 = vpop.eup %12849 }
 0x131   : > { %11939 = vrot.lane.b32.xlu0 %v11903_v63, %s13083_s10  ;;  %11949 = vrot.lane.b32.xlu1 %v11948_v9, %s13076_s23  ;;  %17117 = vst [vmem:[#allocation32_spill] sm:$0xff] %v13639_v41  ;;  %v11963_v11 = vpack.i.bf16 %v13639_v41, %v13485_v48  ;;  %v13653_v63 = vpop.permute.xlu1 %3554 }
 0x132   : > { %17118 = vst [vmem:[#allocation33_spill] sm:$0xff] %v13653_v63  ;;  %v2618_v23 = vmul.f32 %v2566_v0, %v2410_v29  ;;  %v2568_v63 = vadd.f32 1.0, %v12850_v38  ;;  %v2956_v29 = vrot.slane %v2696_v5, %v13425_v26 }
 0x134   : > { %v13680_v38 = vmul.f32 %v2948_v33, %v2618_v23  ;;  %v2620_v50 = vmul.f32 %v2568_v63, %v2412_v30  ;;  %v2468_v63 = vmul.f32 0.70710677, %v13479_v7 }
 0x135   : > { %6467 = vrot.lane.b32.xlu0 %v13485_v48, %s13077_s24  ;;  %11954 = vrot.lane.b32.xlu1 %v11948_v9, %s13080_s28 }
 0x136   : > { %17119 = vst [vmem:[#allocation34_spill] sm:$0xff] %v13680_v38  ;;  %v13694_v28 = vmul.f32 %v2956_v29, %v2620_v50  ;;  %v11968_v5 = vpack.i.bf16 %v13680_v38, %v13625_v15  ;;  %v11983_v50 = vpack.i.bf16 %v13680_v38, %v13471_v19 }
 0x138   : > { %17120 = vst [vmem:[#allocation35_spill] sm:$0xff] %v13694_v28 }
 0x139   : > { %3331 = vrot.lane.b32.xlu0 %v13646_v6, %s13076_s23  ;;  %11964 = vrot.lane.b32.xlu1 %v11963_v11, %s13083_s10 }
 0x13d   : > { %3335 = vrot.lane.b32.xlu0 %v13659_v14, %s13076_s23  ;;  %6477 = vrot.lane.b32.xlu1 %v13639_v41, %s13077_s24 }
 0x141   : > { %11944 = vrot.lane.b32.xlu0 %v11948_v9, %s13081_s30  ;;  %3337 = vrot.lane.b32.xlu1 %v13671_v46, %s13076_s23  ;;  %v2467_v9 = vmul.f32 0.70710677, %v13476_v35 }
 0x143   : > { %12851 = verf.f32 %v2467_v9 }
 0x144   : > { %12853 = verf.f32 %v2468_v63 }
 0x145   : > { %11959 = vrot.lane.b32.xlu0 %v11963_v11, %s13082_s9  ;;  %3341 = vrot.lane.b32.xlu1 %v13685_v42, %s13076_s23  ;;  %v2465_v11 = vmul.f32 0.70710677, %v13460_v4 }
 0x147   : > { %12855 = verf.f32 %v2465_v11 }
 0x149   : > { %6473 = vrot.lane.b32.xlu0 %v13625_v15, %s13077_s24  ;;  %11969 = vrot.lane.b32.xlu1 %v11968_v5, %s13078_s25 }
 0x14d   : > { %11984 = vrot.lane.b32.xlu1 %v11983_v50, %s13081_s30 }
 0x151   : > { %11994 = vrot.lane.b32.xlu1 %v11983_v50, %s13080_s28 }
 0x155   : > { %11999 = vrot.lane.b32.xlu1 %v11968_v5, %s13082_s9 }
 0x159   : > { %12004 = vrot.lane.b32.xlu1 %v11968_v5, %s13083_s10 }
 0x15d   : > { %6475 = vrot.lane.b32.xlu1 %v13680_v38, %s13077_s24  ;;  %v2475_v38 = vmul.f32 0.70710677, %v13552_v55 }
 0x162   : > { %v3294_v1 = vpop.permute.xlu1 %3293  ;;  %v3290_v18 = vpop.permute.xlu0 %3289 }
 0x166   : > { %v3292_v49 = vpop.permute.xlu1 %3291  ;;  %v3296_v10 = vpop.permute.xlu0 %3295 }
 0x167   : > { %v3394_v27 = vsel %vm3393_vm2, %v3290_v18, %v3292_v49  ;;  %v3395_v8 = vsel %vm3393_vm2, %v3292_v49, %v3294_v1  ;;  %v3396_v0 = vsel %vm3393_vm2, %v3294_v1, %v3296_v10 }
 0x168   : > { %3497 = vst [vmem:[#allocation2] sm:$0xff] %v3394_v27  ;;  %3498 = vst [vmem:[#allocation2 + $0x8] sm:$0xff] %v3395_v8 }
 0x169   : > { %3499 = vst [vmem:[#allocation2 + $0x10] sm:$0xff] %v3396_v0  ;;  %v13707_v0 = vpack.i.bf16 %v13694_v28, %v13639_v41  ;;  %v2415_v41 = vmul.f32 0.5, %v13476_v35 }
 0x16a   : > { %v3298_v49 = vpop.permute.xlu1 %3297  ;;  %v3300_v1 = vpop.permute.xlu0 %3299 }
 0x16b   : > { %v3397_v18 = vsel %vm3393_vm2, %v3296_v10, %v3298_v49  ;;  %v3398_v33 = vsel %vm3393_vm2, %v3298_v49, %v3300_v1  ;;  %v2466_v10 = vmul.f32 0.70710677, %v13463_v60  ;;  %11974 = vrot.lane.b32.xlu0 %v13707_v0, %s13078_s25  ;;  %12009 = vrot.lane.b32.xlu1 %v13707_v0, %s13079_s26 }
 0x16c   : > { %3500 = vst [vmem:[#allocation2 + $0x18] sm:$0xff] %v3397_v18  ;;  %3501 = vst [vmem:[#allocation2 + $0x20] sm:$0xff] %v3398_v33 }
 0x16d   : > { %12857 = verf.f32 %v2466_v10 }
 0x16e   : > { %v3302_v23 = vpop.permute.xlu1 %3301  ;;  %v3304_v30 = vpop.permute.xlu0 %3303 }
 0x16f   : > { %v3399_v27 = vsel %vm3393_vm2, %v3300_v1, %v3302_v23  ;;  %v3400_v8 = vsel %vm3393_vm2, %v3302_v23, %v3304_v30  ;;  %11979 = vrot.lane.b32.xlu0 %v11968_v5, %s13079_s26  ;;  %v12852_v23 = vpop.eup %12851  ;;  %12014 = vrot.lane.b32.xlu1 %v13707_v0, %s13081_s30 }
 0x170   : > { %3502 = vst [vmem:[#allocation2 + $0x28] sm:$0xff] %v3399_v27  ;;  %3503 = vst [vmem:[#allocation2 + $0x30] sm:$0xff] %v3400_v8  ;;  %v12854_v10 = vpop.eup %12853 }
 0x172   : > { %v3306_v29 = vpop.permute.xlu1 %3305  ;;  %v3308_v9 = vpop.permute.xlu0 %3307 }
 0x173   : > { %v3401_v49 = vsel %vm3393_vm2, %v3304_v30, %v3306_v29  ;;  %v3402_v1 = vsel %vm3393_vm2, %v3306_v29, %v3308_v9  ;;  %v2708_v30 = vrot.slane %v13184_v13, %v13425_v26  ;;  %11989 = vrot.lane.b32.xlu0 %v11983_v50, %s13076_s23  ;;  %v2712_v29 = vrot.slane %v13184_v13, %v13433_v31 }
 0x174   : > { %3504 = vst [vmem:[#allocation2 + $0x38] sm:$0xff] %v3401_v49  ;;  %3505 = vst [vmem:[#allocation2 + $0x40] sm:$0xff] %v3402_v1  ;;  %v12856_v1 = vpop.eup %12855  ;;  %v2700_v50 = vrot.slane %v13181_v12, %v13425_v26  ;;  %v2704_v13 = vrot.slane %v13181_v12, %v13433_v31  ;;  %v13743_v12 = vadd.f32 %v13503_v52, %v13415_v58  ;;  %12019 = vrot.lane.b32.xlu1 %v13707_v0, %s13076_s23 }
 0x175   : > { %v2968_v15 = vrot.slane %v2708_v30, %v13425_v26 }
 0x176   : > { %v3310_v63 = vpop.permute.xlu1 %3309  ;;  %v3312_v18 = vpop.permute.xlu0 %3311  ;;  %v2960_v5 = vrot.slane %v2700_v50, %v13425_v26  ;;  %v2964_v52 = vrot.slane %v2704_v13, %v13425_v26 }
 0x177   : > { %v3403_v33 = vsel %vm3393_vm2, %v3308_v9, %v3310_v63  ;;  %v3404_v11 = vsel %vm3393_vm2, %v3310_v63, %v3312_v18  ;;  %v2571_v63 = vadd.f32 1.0, %v12852_v23  ;;  %6479 = vrot.lane.b32.xlu0 %v13694_v28, %s13077_s24 }
 0x178   : > { %3506 = vst [vmem:[#allocation2 + $0x48] sm:$0xff] %v3403_v33  ;;  %3507 = vst [vmem:[#allocation2 + $0x50] sm:$0xff] %v3404_v11  ;;  %v2572_v33 = vadd.f32 1.0, %v12854_v10  ;;  %v12858_v11 = vpop.eup %12857  ;;  %12024 = vrot.lane.b32.xlu1 %v13707_v0, %s13080_s28  ;;  %v2470_v0 = vmul.f32 0.70710677, %v13501_v51 }
 0x179   : > { %v2623_v30 = vmul.f32 %v2571_v63, %v2415_v41  ;;  %v2570_v62 = vadd.f32 1.0, %v12858_v11 }
 0x17a   : > { %v3314_v27 = vpop.permute.xlu1 %3313  ;;  %v3316_v8 = vpop.permute.xlu0 %3315 }
 0x17b   : > { %v3405_v9 = vsel %vm3393_vm2, %v3312_v18, %v3314_v27  ;;  %v3406_v49 = vsel %vm3393_vm2, %v3314_v27, %v3316_v8  ;;  %v2416_v18 = vmul.f32 0.5, %v13479_v7  ;;  %v2569_v27 = vadd.f32 1.0, %v12856_v1  ;;  %3339 = vrot.lane.b32.xlu0 %v13743_v12, %s13076_s23 }
 0x17c   : > { %3508 = vst [vmem:[#allocation2 + $0x58] sm:$0xff] %v3405_v9  ;;  %3509 = vst [vmem:[#allocation2 + $0x60] sm:$0xff] %v3406_v49  ;;  %v2972_v9 = vrot.slane %v2712_v29, %v13425_v26  ;;  %v2413_v7 = vmul.f32 0.5, %v13460_v4  ;;  %v2414_v1 = vmul.f32 0.5, %v13463_v60  ;;  %v13755_v4 = vmul.f32 %v2968_v15, %v2623_v30 }
 0x17d   : > { %v2624_v2 = vmul.f32 %v2572_v33, %v2416_v18  ;;  %v13761_v60 = vadd.f32 %v13505_v53, %v13415_v58  ;;  %v2472_v30 = vmul.f32 0.70710677, %v13519_v43 }
 0x17e   : > { %v3318_v23 = vpop.permute.xlu1 %3317  ;;  %v3320_v10 = vpop.permute.xlu0 %3319  ;;  %v2621_v29 = vmul.f32 %v2569_v27, %v2413_v7  ;;  %17121 = vst [vmem:[#allocation36_spill] sm:$0xff] %v13755_v4  ;;  %v2622_v11 = vmul.f32 %v2570_v62, %v2414_v1  ;;  %v2469_v7 = vmul.f32 0.70710677, %v13498_v34  ;;  %v2716_v1 = vrot.slane %v13204_v16, %v13425_v26 }
 0x17f   : > { %v3407_v49 = vsel %vm3393_vm2, %v3316_v8, %v3318_v23  ;;  %v3408_v35 = vsel %vm3393_vm2, %v3318_v23, %v3320_v10  ;;  %v13757_v50 = vmul.f32 %v2972_v9, %v2624_v2  ;;  %3343 = vrot.lane.b32.xlu0 %v13761_v60, %s13076_s23 }
 0x180   : > { %3510 = vst [vmem:[#allocation2 + $0x68] sm:$0xff] %v3407_v49  ;;  %3511 = vst [vmem:[#allocation2 + $0x70] sm:$0xff] %v3408_v35  ;;  %v13769_v2 = vmul.f32 %v2960_v5, %v2621_v29  ;;  %v13771_v23 = vmul.f32 %v2964_v52, %v2622_v11  ;;  %v2471_v35 = vmul.f32 0.70710677, %v13516_v39  ;;  %v13823_v29 = vadd.f32 %v13511_v54, %v13415_v58 }
 0x181   : > { %17122 = vst [vmem:[#allocation37_spill] sm:$0xff] %v13757_v50  ;;  %v13775_v53 = vpack.i.bf16 %v13757_v50, %v13755_v4  ;;  %v2732_v11 = vrot.slane %v13226_v20, %v13425_v26  ;;  %v2740_v54 = vrot.slane %v13229_v21, %v13425_v26 }
 0x182   : > { %v3322_v41 = vpop.permute.xlu1 %3321  ;;  %v3324_v8 = vpop.permute.xlu0 %3323  ;;  %17123 = vst [vmem:[#allocation38_spill] sm:$0xff] %v13769_v2  ;;  %17124 = vst [vmem:[#allocation39_spill] sm:$0xff] %v13771_v23  ;;  %v13787_v9 = vpack.i.bf16 %v13771_v23, %v13769_v2  ;;  %v12028_v49 = vpack.i.bf16 %v13769_v2, %v13694_v28  ;;  %12859 = verf.f32 %v2471_v35  ;;  %v12068_v5 = vpack.i.bf16 %v13755_v4, %v13771_v23 }
 0x183   : > { %v3409_v63 = vsel %vm3393_vm2, %v3320_v10, %v3322_v41  ;;  %v3410_v33 = vsel %vm3393_vm2, %v3322_v41, %v3324_v8  ;;  %12044 = vrot.lane.b32.xlu0 %v13775_v53, %s13078_s25  ;;  %12861 = verf.f32 %v2472_v30  ;;  %v2836_v28 = vrot.slane %v13343_v45, %v13425_v26 }
 0x184   : > { %3512 = vst [vmem:[#allocation2 + $0x78] sm:$0xff] %v3409_v63  ;;  %3513 = vst [vmem:[#allocation2 + $0x80] sm:$0xff] %v3410_v33  ;;  %12029 = vrot.lane.b32.xlu1 %v12028_v49, %s13082_s9  ;;  %12863 = verf.f32 %v2469_v7  ;;  %v2720_v63 = vrot.slane %v13204_v16, %v13433_v31  ;;  %v2728_v33 = vrot.slane %v13207_v17, %v13433_v31 }
 0x185   : > { %12865 = verf.f32 %v2470_v0  ;;  %v2736_v16 = vrot.slane %v13226_v20, %v13433_v31  ;;  %v2748_v20 = vrot.slane %v13248_v24, %v13425_v26  ;;  %v2419_v0 = vmul.f32 0.5, %v13516_v39 }
 0x186   : > { %v3326_v13 = vpop.permute.xlu1 %3325  ;;  %v3328_v18 = vpop.permute.xlu0 %3327  ;;  %v2980_v30 = vrot.slane %v2720_v63, %v13425_v26  ;;  %v2988_v7 = vrot.slane %v2728_v33, %v13425_v26  ;;  %v13877_v63 = vadd.f32 %v13521_v57, %v13415_v58  ;;  %v13048_v57 = vld [vmem:[%s13151_s14 + $0x60] sm:$0xff] }
 0x187   : > { %v3411_v15 = vsel %vm3393_vm2, %v3324_v8, %v3326_v13  ;;  %v3412_v62 = vsel %vm3393_vm2, %v3326_v13, %v3328_v18  ;;  %12049 = vrot.lane.b32.xlu0 %v13787_v9, %s13079_s26  ;;  %v2724_v8 = vrot.slane %v13207_v17, %v13425_v26  ;;  %v13836_v13 = vrot.slane %v2716_v1, %v13425_v26 }
 0x188   : > { %3514 = vst [vmem:[#allocation2 + $0x88] sm:$0xff] %v3411_v15  ;;  %3515 = vst [vmem:[#allocation2 + $0x90] sm:$0xff] %v3412_v62  ;;  %12034 = vrot.lane.b32.xlu1 %v12028_v49, %s13083_s10  ;;  %v2744_v17 = vrot.slane %v13229_v21, %v13433_v31  ;;  %v13847_v49 = vadd.f32 %v13513_v56, %v13415_v58  ;;  %v2756_v21 = vrot.slane %v13251_v25, %v13425_v26 }
 0x189   : > { %v2984_v62 = vrot.slane %v2724_v8, %v13425_v26  ;;  %v13858_v1 = vrot.slane %v2732_v11, %v13425_v26  ;;  %v2752_v56 = vrot.slane %v13248_v24, %v13433_v31  ;;  %v13867_v25 = vrot.slane %v2740_v54, %v13425_v26 }
 0x18a   : > { %v13781_v10 = vpop.permute.xlu1 %3329  ;;  %v13870_v39 = vrot.slane %v2736_v16, %v13425_v26  ;;  %v13879_v33 = vpop.permute.xlu0 %6469  ;;  %v2417_v11 = vmul.f32 0.5, %v13498_v34  ;;  %v13883_v54 = vrot.slane %v2748_v20, %v13425_v26  ;;  %v13886_v16 = vrot.slane %v2756_v21, %v13425_v26  ;;  %v13049_v34 = vld [vmem:[%s13151_s14 + $0x68] sm:$0xff] }
 0x18b   : > { %v3413_v27 = vsel %vm3393_vm2, %v3328_v18, %v13781_v10  ;;  %12054 = vrot.lane.b32.xlu0 %v13787_v9, %s13081_s30  ;;  %17125 = vst [vmem:[#allocation40_spill] sm:$0xff] %v13879_v33  ;;  %v2772_v20 = vrot.slane %v13049_v34, %v13425_v26  ;;  %v2476_v33 = vmul.f32 0.70710677, %v13555_v61 }
 0x18c   : > { %3516 = vst [vmem:[#allocation2 + $0x98] sm:$0xff] %v3413_v27  ;;  %6481 = vrot.lane.b32.xlu1 %v13769_v2, %s13077_s24  ;;  %v12860_v41 = vpop.eup %12859  ;;  %v13912_v2 = vadd.f32 %v13523_v59, %v13415_v58  ;;  %v2800_v59 = vrot.slane %v13305_v36, %v13433_v31 }
 0x18d   : > { %v12862_v52 = vpop.eup %12861  ;;  %v2575_v15 = vadd.f32 1.0, %v12860_v41 }
 0x18e   : > { %v12864_v18 = vpop.eup %12863  ;;  %v2576_v27 = vadd.f32 1.0, %v12862_v52 }
 0x18f   : > { %12059 = vrot.lane.b32.xlu0 %v13787_v9, %s13076_s23  ;;  %v12866_v35 = vpop.eup %12865  ;;  %v2573_v41 = vadd.f32 1.0, %v12864_v18  ;;  %v2627_v8 = vmul.f32 %v2575_v15, %v2419_v0  ;;  %v13047_v18 = vld [vmem:[%s13151_s14 + $0x58] sm:$0xff]  ;;  %v2418_v15 = vmul.f32 0.5, %v13501_v51  ;;  %v2768_v51 = vrot.slane %v13048_v57, %v13433_v31 }
 0x190   : > { %6485 = vrot.lane.b32.xlu1 %v13755_v4, %s13077_s24  ;;  %v2574_v24 = vadd.f32 1.0, %v12866_v35  ;;  %v2764_v35 = vrot.slane %v13048_v57, %v13425_v26  ;;  %v2776_v0 = vrot.slane %v13049_v34, %v13433_v31 }
 0x191   : > { %v2625_v21 = vmul.f32 %v2573_v41, %v2417_v11  ;;  %v13051_v41 = vld [vmem:[%s13151_s14 + $0x70] sm:$0xff] }
 0x192   : > { %v2784_v11 = vrot.slane %v13051_v41, %v13433_v31  ;;  %v13053_v41 = vld [vmem:[%s13151_s14 + $0x90] sm:$0xff] }
 0x193   : > { %12064 = vrot.lane.b32.xlu0 %v13787_v9, %s13080_s28 }
 0x194   : > { %3345 = vrot.lane.b32.xlu1 %v13823_v29, %s13076_s23 }
 0x197   : > { %12069 = vrot.lane.b32.xlu0 %v12068_v5, %s13082_s9 }
 0x198   : > { %3349 = vrot.lane.b32.xlu1 %v13847_v49, %s13076_s23 }
 0x19b   : > { %12074 = vrot.lane.b32.xlu0 %v12068_v5, %s13083_s10  ;;  %v2420_v5 = vmul.f32 0.5, %v13519_v43  ;;  %v13873_v43 = vrot.slane %v2744_v17, %v13425_v26  ;;  %v2760_v17 = vrot.slane %v13047_v18, %v13433_v31  ;;  %v2626_v18 = vmul.f32 %v2574_v24, %v2418_v15 }
 0x19c   : > { %12039 = vrot.lane.b32.xlu1 %v13787_v9, %s13078_s25  ;;  %v13937_v24 = vrot.slane %v2764_v35, %v13425_v26 }
 0x19d   : > { %v2628_v52 = vmul.f32 %v2576_v27, %v2420_v5  ;;  %v13892_v27 = vrot.slane %v2752_v56, %v13425_v26  ;;  %v2780_v5 = vrot.slane %v13284_v32, %v13425_v26  ;;  %v13906_v56 = vmul.f32 %v2984_v62, %v2627_v8  ;;  %v13932_v8 = vpop.permute.xlu1 %3333 }
 0x19e   : > { %v2796_v32 = vrot.slane %v13305_v36, %v13425_v26  ;;  %v13922_v62 = vrot.slane %v2760_v17, %v13425_v26  ;;  %v13946_v36 = vrot.slane %v2776_v0, %v13425_v26  ;;  %v13949_v17 = vmul.f32 %v13836_v13, %v2625_v21 }
 0x19f   : > { %6483 = vrot.lane.b32.xlu0 %v13771_v23, %s13077_s24  ;;  %17126 = vst [vmem:[#allocation41_spill] sm:$0xff] %v13906_v56  ;;  %v13908_v4 = vmul.f32 %v2988_v7, %v2628_v52  ;;  %v13050_v23 = vld [vmem:[%s13151_s14 + $0x78] sm:$0xff]  ;;  %v2804_v7 = vrot.slane %v13308_v37, %v13425_v26  ;;  %v13940_v52 = vrot.slane %v2772_v20, %v13425_v26 }
 0x1a0   : > { %v2788_v9 = vrot.slane %v13050_v23, %v13425_v26  ;;  %v2792_v57 = vrot.slane %v13050_v23, %v13433_v31  ;;  %12079 = vrot.lane.b32.xlu1 %v13775_v53, %s13079_s26  ;;  %v13934_v23 = vpop.permute.xlu0 %11904  ;;  %v13943_v37 = vrot.slane %v2768_v51, %v13425_v26  ;;  %17131 = vst [vmem:[#allocation46_spill] sm:$0xff] %v13946_v36  ;;  %17132 = vst [vmem:[#allocation47_spill] sm:$0xff] %v13949_v17 }
 0x1a1   : > { %17127 = vst [vmem:[#allocation42_spill] sm:$0xff] %v13908_v4  ;;  %17128 = vst [vmem:[#allocation43_spill] sm:$0xff] %v13934_v23  ;;  %v13951_v15 = vmul.f32 %v2980_v30, %v2626_v18  ;;  %v13954_v34 = vrot.slane %v2780_v5, %v13425_v26  ;;  %v13958_v35 = vpack.i.bf16 %v13908_v4, %v13906_v56  ;;  %v13052_v5 = vld [vmem:[%s13151_s14 + $0x88] sm:$0xff] }
 0x1a2   : > { %17129 = vst [vmem:[#allocation44_spill] sm:$0xff] %v13940_v52  ;;  %17130 = vst [vmem:[#allocation45_spill] sm:$0xff] %v13943_v37  ;;  %v13961_v20 = vrot.slane %v2788_v9, %v13425_v26  ;;  %v13964_v51 = vrot.slane %v2784_v11, %v13425_v26  ;;  %v13967_v0 = vrot.slane %v2792_v57, %v13425_v26  ;;  %v2473_v9 = vmul.f32 0.70710677, %v13534_v40  ;;  %v13054_v57 = vld [vmem:[%s13151_s14 + $0x98] sm:$0xff]  ;;  %v13056_v4 = vld [vmem:[%s13151_s14 + $0xa8] sm:$0xff] }
 0x1a3   : > { %6487 = vrot.lane.b32.xlu0 %v13757_v50, %s13077_s24  ;;  %17133 = vst [vmem:[#allocation48_spill] sm:$0xff] %v13951_v15  ;;  %17134 = vst [vmem:[#allocation49_spill] sm:$0xff] %v13954_v34  ;;  %v13970_v13 = vrot.slane %v2796_v32, %v13425_v26  ;;  %v13973_v30 = vrot.slane %v2804_v7, %v13425_v26  ;;  %v13976_v21 = vrot.slane %v2800_v59, %v13425_v26 }
 0x1a4   : > { %17135 = vst [vmem:[#allocation50_spill] sm:$0xff] %v13961_v20  ;;  %17136 = vst [vmem:[#allocation51_spill] sm:$0xff] %v13964_v51  ;;  %v2808_v18 = vrot.slane %v13052_v5, %v13433_v31  ;;  %12084 = vrot.lane.b32.xlu1 %v13775_v53, %s13081_s30  ;;  %v2812_v11 = vrot.slane %v13053_v41, %v13425_v26  ;;  %v2820_v32 = vrot.slane %v13054_v57, %v13425_v26  ;;  %v13055_v51 = vld [vmem:[%s13151_s14 + $0xa0] sm:$0xff] }
 0x1a5   : > { %17137 = vst [vmem:[#allocation52_spill] sm:$0xff] %v13967_v0  ;;  %17138 = vst [vmem:[#allocation53_spill] sm:$0xff] %v13970_v13  ;;  %v2816_v7 = vrot.slane %v13053_v41, %v13433_v31  ;;  %v2824_v59 = vrot.slane %v13054_v57, %v13433_v31  ;;  %v2828_v5 = vrot.slane %v13340_v44, %v13425_v26  ;;  %v2474_v57 = vmul.f32 0.70710677, %v13537_v47 }
 0x1a6   : > { %17139 = vst [vmem:[#allocation54_spill] sm:$0xff] %v13973_v30  ;;  %17140 = vst [vmem:[#allocation55_spill] sm:$0xff] %v13976_v21  ;;  %v13995_v21 = vpop.permute.xlu0 %11909  ;;  %v11900_v30 = vpop.permute.xlu1 %11899  ;;  %v13999_v13 = vpack.i.bf16 %v13951_v15, %v13949_v17  ;;  %v2832_v44 = vrot.slane %v13055_v51, %v13433_v31  ;;  %v2840_v45 = vrot.slane %v13056_v4, %v13433_v31  ;;  %12867 = verf.f32 %v2473_v9 }
 0x1a7   : > { %3347 = vrot.lane.b32.xlu0 %v13877_v63, %s13076_s23  ;;  %v11902_v41 = vunpack.i.h.bf16 %v11900_v30  ;;  %v11901_v0 = vunpack.i.l.bf16 %v11900_v30  ;;  %v17141_v20 = vunpack.i.l.bf16 %v13934_v23  ;;  %v2477_v51 = vmul.f32 0.70710677, %v13570_v3 }
 0x1a8   : > { %12089 = vrot.lane.b32.xlu1 %v13775_v53, %s13076_s23  ;;  %v14019_v4 = vrot.slane %v2808_v18, %v13425_v26  ;;  %12869 = verf.f32 %v2475_v38  ;;  %v14031_v23 = vrot.slane %v2820_v32, %v13425_v26  ;;  %v14037_v18 = vrot.slane %v2824_v59, %v13425_v26 }
 0x1a9   : > { %v3992_v30 = vsel %vm3991_vm3, %v11901_v0, %v11902_v41  ;;  %v3993_v34 = vsel %vm3991_vm3, %v11902_v41, %v17141_v20  ;;  %v14028_v0 = vrot.slane %v2812_v11, %v13425_v26  ;;  %v14034_v20 = vrot.slane %v2816_v7, %v13425_v26 }
 0x1aa   : > { %17142 = vst [vmem:[#allocation56_spill] sm:$0xff] %v14019_v4  ;;  %v14021_v36 = vpop.permute.xlu0 %11924  ;;  %v14023_v37 = vpop.permute.xlu1 %11914  ;;  %v11462_v52 = vpack.c.bf16 %v3993_v34, %v13485_v48  ;;  %v11464_v9 = vpack.c.bf16 %v3992_v30, %v13471_v19  ;;  %17144 = vst [vmem:[#allocation58_spill] sm:$0xff] %v14031_v23  ;;  %12871 = verf.f32 %v2474_v57  ;;  %v14040_v41 = vrot.slane %v2828_v5, %v13425_v26  ;;  %v13057_v57 = vld [vmem:[%s13151_s14 + $0xb0] sm:$0xff] }
 0x1ab   : > { %3351 = vrot.lane.b32.xlu0 %v13912_v2, %s13076_s23  ;;  %17143 = vst [vmem:[#allocation57_spill] sm:$0xff] %v14028_v0  ;;  %17145 = vst [vmem:[#allocation59_spill] sm:$0xff] %v14034_v20  ;;  %v14043_v48 = vrot.slane %v2836_v28, %v13425_v26  ;;  %12873 = verf.f32 %v2476_v33  ;;  %v14050_v19 = vrot.slane %v2832_v44, %v13425_v26  ;;  %v16944_v34 = vunpack.i.l.bf16 %v14023_v37  ;;  %v13060_v0 = vld [vmem:[%s13151_s14 + $0xc8] sm:$0xff] }
 0x1ac   : > { %17146 = vst [vmem:[#allocation60_spill] sm:$0xff] %v14037_v18  ;;  %17147 = vst [vmem:[#allocation61_spill] sm:$0xff] %v14040_v41  ;;  %12094 = vrot.lane.b32.xlu1 %v13775_v53, %s13080_s28  ;;  %v14053_v38 = vrot.slane %v2840_v45, %v13425_v26  ;;  %11463 = vmatprep.subr.bf16.mxu1 %v11462_v52  ;;  %12875 = verf.f32 %v2477_v51  ;;  %v2479_v28 = vmul.f32 0.70710677, %v13585_v22  ;;  %v2478_v33 = vmul.f32 0.70710677, %v13646_v6 }
 0x1ad   : > { %17148 = vst [vmem:[#allocation62_spill] sm:$0xff] %v14043_v48  ;;  %17149 = vst [vmem:[#allocation63_spill] sm:$0xff] %v14050_v19  ;;  %11465 = vmatpush1.bf16.msra.mxu1 %v11464_v9  ;;  %v12098_v53 = vpack.i.bf16 %v13949_v17, %v13757_v50  ;;  %v16945_v7 = vunpack.i.h.bf16 %v13995_v21  ;;  %v2480_v5 = vmul.f32 0.70710677, %v13659_v14  ;;  %v2844_v44 = vrot.slane %v13057_v57, %v13425_v26  ;;  %v13058_v45 = vld [vmem:[%s13151_s14 + $0xb8] sm:$0xff] }
 0x1ae   : > { %17150 = vst [vmem:[#allocation64_spill] sm:$0xff] %v14053_v38  ;;  %v14057_v11 = vpop.permute.xlu0 %11929  ;;  %v14059_v32 = vpop.permute.xlu1 %11919  ;;  %v2852_v30 = vrot.slane %v13058_v45, %v13425_v26  ;;  %v2481_v51 = vmul.f32 0.70710677, %v13671_v46  ;;  %v2848_v9 = vrot.slane %v13057_v57, %v13433_v31  ;;  %12877 = verf.f32 %v2479_v28 }
 0x1af   : > { %12114 = vrot.lane.b32.xlu0 %v13958_v35, %s13078_s25  ;;  %v16946_v59 = vunpack.i.h.bf16 %v14059_v32  ;;  %v4362_v52 = vsel %vm4360_vm5, %v16945_v7, %v16944_v34  ;;  %v17151_v50 = vunpack.i.l.bf16 %v14059_v32  ;;  %v2483_v19 = vmul.f32 0.70710677, %v13685_v42  ;;  %v13059_v7 = vld [vmem:[%s13151_s14 + $0xc0] sm:$0xff] }
 0x1b0   : > { %12099 = vrot.lane.b32.xlu1 %v12098_v53, %s13082_s9  ;;  %v2856_v48 = vrot.slane %v13058_v45, %v13433_v31  ;;  %v12868_v20 = vpop.eup %12867  ;;  %12879 = verf.f32 %v2478_v33  ;;  %v2482_v34 = vmul.f32 0.70710677, %v13743_v12  ;;  %v2860_v23 = vrot.slane %v13059_v7, %v13425_v26 }
 0x1b1   : > { %v4731_v38 = vsel %vm4729_vm4, %v17151_v50, %v16946_v59  ;;  %v2868_v50 = vrot.slane %v13060_v0, %v13425_v26  ;;  %12881 = verf.f32 %v2480_v5  ;;  %v2484_v28 = vmul.f32 0.70710677, %v13761_v60 }
 0x1b2   : > { %v14089_v41 = vpop.permute.xlu0 %11934  ;;  %v14091_v57 = vpop.permute.xlu1 %6471  ;;  %v11466_v18 = vpack.c.bf16 %v4731_v38, %v4362_v52  ;;  %v14100_v45 = vrot.slane %v2844_v44, %v13425_v26  ;;  %v2864_v59 = vrot.slane %v13059_v7, %v13433_v31  ;;  %12883 = verf.f32 %v2481_v51 }
 0x1b3   : > { %12119 = vrot.lane.b32.xlu0 %v13999_v13, %s13079_s26  ;;  %17152 = vst [vmem:[#allocation65_spill] sm:$0xff] %v14091_v57  ;;  %v12870_v38 = vpop.eup %12869  ;;  %v2485_v33 = vmul.f32 0.70710677, %v13823_v29  ;;  %v14108_v52 = vrot.slane %v2852_v30, %v13425_v26  ;;  %v2872_v5 = vrot.slane %v13060_v0, %v13433_v31  ;;  %v2577_v44 = vadd.f32 1.0, %v12868_v20 }
 0x1b4   : > { %17153 = vst [vmem:[#allocation66_spill] sm:$0xff] %v14100_v45  ;;  %12104 = vrot.lane.b32.xlu1 %v12098_v53, %s13083_s10  ;;  %11467 = vmatprep.subr.bf16.mxu1 %v11466_v18  ;;  %v12872_v4 = vpop.eup %12871  ;;  %12885 = verf.f32 %v2483_v19  ;;  %v14112_v7 = vrot.slane %v2848_v9, %v13425_v26  ;;  %v12138_v53 = vpack.i.bf16 %v13906_v56, %v13951_v15  ;;  %v2421_v19 = vmul.f32 0.5, %v13534_v40 }
 0x1b5   : > { %17154 = vst [vmem:[#allocation67_spill] sm:$0xff] %v14108_v52  ;;  %v12874_v51 = vpop.eup %12873  ;;  %12887 = verf.f32 %v2482_v34  ;;  %v14121_v30 = vrot.slane %v2856_v48, %v13425_v26  ;;  %v14124_v0 = vrot.slane %v2860_v23, %v13425_v26  ;;  %v14127_v20 = vrot.slane %v2868_v50, %v13425_v26 }
 0x1b6   : > { %17155 = vst [vmem:[#allocation68_spill] sm:$0xff] %v14112_v7  ;;  %v14114_v45 = vpop.permute.xlu0 %11939  ;;  %v14116_v57 = vpop.permute.xlu1 %11949  ;;  %v2579_v9 = vadd.f32 1.0, %v12870_v38  ;;  %12889 = verf.f32 %v2484_v28  ;;  %v14131_v31 = vrot.slane %v2864_v59, %v13425_v26  ;;  %v2578_v48 = vadd.f32 1.0, %v12872_v4  ;;  %v17161_v59 = vld [vmem:[#allocation9_spill] sm:$0xff]  ;;  %v17192_v7 = vld [vmem:[#allocation50_spill] sm:$0xff] }
 0x1b7   : > { %12124 = vrot.lane.b32.xlu0 %v13999_v13, %s13081_s30  ;;  %17156 = vst [vmem:[#allocation69_spill] sm:$0xff] %v14121_v30  ;;  %17157 = vst [vmem:[#allocation70_spill] sm:$0xff] %v14124_v0  ;;  %v12876_v18 = vpop.eup %12875  ;;  %12891 = verf.f32 %v2485_v33  ;;  %v2487_v23 = vmul.f32 0.70710677, %v13847_v49  ;;  %v14138_v34 = vrot.slane %v2872_v5, %v13425_v26  ;;  %v2629_v50 = vmul.f32 %v2577_v44, %v2421_v19 }
 0x1b8   : > { %17158 = vst [vmem:[#allocation71_spill] sm:$0xff] %v14127_v20  ;;  %17159 = vst [vmem:[#allocation72_spill] sm:$0xff] %v14131_v31  ;;  %6489 = vrot.lane.b32.xlu1 %v13949_v17, %s13077_s24  ;;  %v2423_v40 = vmul.f32 0.5, %v13552_v55  ;;  %v2486_v28 = vmul.f32 0.70710677, %v13877_v63  ;;  %v14144_v38 = vadd.f32 %v17161_v59, %v13415_v58  ;;  %v2422_v4 = vmul.f32 0.5, %v13537_v47  ;;  %v12878_v19 = vpop.eup %12877 }
 0x1b9   : > { %17160 = vst [vmem:[#allocation73_spill] sm:$0xff] %v14138_v34  ;;  %v2424_v33 = vmul.f32 0.5, %v13555_v61  ;;  %v2425_v5 = vmul.f32 0.5, %v13570_v3  ;;  %v2427_v44 = vmul.f32 0.5, %v13585_v22  ;;  %v2580_v17 = vadd.f32 1.0, %v12874_v51 }
 0x1ba   : > { %v14146_v56 = vpop.permute.xlu0 %6467  ;;  %v14148_v20 = vpop.permute.xlu1 %11954  ;;  %v2631_v55 = vmul.f32 %v2579_v9, %v2423_v40  ;;  %v2581_v34 = vadd.f32 1.0, %v12876_v18  ;;  %v14155_v26 = vmul.f32 0.5, %v13646_v6  ;;  %v2630_v47 = vmul.f32 %v2578_v48, %v2422_v4 }
 0x1bb   : > { %12129 = vrot.lane.b32.xlu0 %v13999_v13, %s13076_s23  ;;  %v12880_v59 = vpop.eup %12879  ;;  %v2428_v61 = vmul.f32 0.5, %v13659_v14  ;;  %v14162_v3 = vmul.f32 0.5, %v13671_v46  ;;  %12893 = verf.f32 %v2487_v23  ;;  %v14165_v51 = vmul.f32 %v13858_v1, %v2629_v50 }
 0x1bc   : > { %3353 = vrot.lane.b32.xlu1 %v14144_v38, %s13076_s23  ;;  %v12882_v22 = vpop.eup %12881  ;;  %12895 = verf.f32 %v2486_v28  ;;  %v2488_v6 = vmul.f32 0.70710677, %v13912_v2  ;;  %v2431_v14 = vmul.f32 0.5, %v13685_v42  ;;  %v2430_v46 = vmul.f32 0.5, %v13743_v12 }
 0x1bd   : > { %17162 = vst [vmem:[#allocation9_spill] sm:$0xff] %v14165_v51  ;;  %v12884_v48 = vpop.eup %12883  ;;  %v14179_v28 = vmul.f32 %v13867_v25, %v2631_v55  ;;  %v2632_v4 = vmul.f32 %v2580_v17, %v2424_v33  ;;  %v2432_v31 = vmul.f32 0.5, %v13761_v60  ;;  %v14186_v12 = vmul.f32 %v13870_v39, %v2630_v47  ;;  %v17166_v33 = vld [vmem:[#allocation11_spill] sm:$0xff] }
 0x1be   : > { %v3332_v9 = vpop.permute.xlu0 %3331  ;;  %v14170_v40 = vpop.permute.xlu1 %11964  ;;  %v14190_v25 = vmul.f32 0.5, %v13847_v49  ;;  %v14193_v60 = vmul.f32 0.5, %v13877_v63  ;;  %12897 = verf.f32 %v2488_v6  ;;  %v2582_v47 = vadd.f32 1.0, %v12880_v59 }
 0x1bf   : > { %12134 = vrot.lane.b32.xlu0 %v13999_v13, %s13080_s28  ;;  %v3414_v23 = vsel %vm3393_vm2, %v13781_v10, %v3332_v9  ;;  %v3415_v1 = vsel %vm3393_vm2, %v3332_v9, %v13932_v8  ;;  %v12886_v50 = vpop.eup %12885  ;;  %17165 = vst [vmem:[#allocation74_spill] sm:$0xff] %v14186_v12  ;;  %v2583_v10 = vadd.f32 1.0, %v12878_v19  ;;  %v2433_v9 = vmul.f32 0.5, %v13823_v29 }
 0x1c0   : > { %3517 = vst [vmem:[#allocation2 + $0xa0] sm:$0xff] %v3414_v23  ;;  %3518 = vst [vmem:[#allocation2 + $0xa8] sm:$0xff] %v3415_v1  ;;  %v12888_v42 = vpop.eup %12887  ;;  %v2584_v29 = vadd.f32 1.0, %v12882_v22  ;;  %v2489_v49 = vmul.f32 0.70710677, %v14144_v38  ;;  %v14206_v63 = vmul.f32 %v13873_v43, %v2632_v4  ;;  %v2585_v6 = vadd.f32 1.0, %v12884_v48 }
 0x1c1   : > { %v12890_v17 = vpop.eup %12889  ;;  %v2587_v1 = vadd.f32 1.0, %v12886_v50  ;;  %v2635_v59 = vmul.f32 %v2583_v10, %v2427_v44  ;;  %v2586_v22 = vadd.f32 1.0, %v12888_v42 }
 0x1c2   : > { %v3336_v55 = vpop.permute.xlu0 %3335  ;;  %v14200_v39 = vpop.permute.xlu1 %6477  ;;  %17168 = vst [vmem:[#allocation75_spill] sm:$0xff] %v14206_v63  ;;  %v2636_v44 = vmul.f32 %v2584_v29, %v2428_v61  ;;  %12899 = verf.f32 %v2489_v49 }
 0x1c3   : > { %12139 = vrot.lane.b32.xlu0 %v12138_v53, %s13082_s9  ;;  %17167 = vst [vmem:[#allocation11_spill] sm:$0xff] %v14200_v39  ;;  %v12892_v19 = vpop.eup %12891  ;;  %v3416_v23 = vsel %vm3393_vm2, %v13932_v8, %v3336_v55  ;;  %v14215_v8 = vmul.f32 0.5, %v14144_v38  ;;  %v2637_v38 = vmul.f32 %v2585_v6, %v14162_v3  ;;  %v2638_v61 = vmul.f32 %v2586_v22, %v2430_v46  ;;  %v17177_v6 = vld [vmem:[#allocation44_spill] sm:$0xff] }
 0x1c4   : > { %3519 = vst [vmem:[#allocation2 + $0xb0] sm:$0xff] %v3416_v23  ;;  %v2589_v0 = vadd.f32 1.0, %v12892_v19 }
 0x1c6   : > { %v14221_v50 = vpop.permute.xlu0 %11944  ;;  %v14223_v4 = vpop.permute.xlu1 %3337 }
 0x1c7   : > { %12144 = vrot.lane.b32.xlu0 %v12138_v53, %s13083_s10  ;;  %v17163_v53 = vld [vmem:[#allocation10_spill] sm:$0xff]  ;;  %v3417_v42 = vsel %vm3393_vm2, %v3336_v55, %v14223_v4  ;;  %v2641_v55 = vmul.f32 %v2589_v0, %v2433_v9  ;;  %v14256_v9 = vmul.f32 %v13937_v24, %v2637_v38 }
 0x1c8   : > { %v1833_v18 = vadd.f32 %v17163_v53, %v13415_v58  ;;  %17164 = vst [vmem:[#allocation10_spill] sm:$0xff] %v14179_v28  ;;  %v2633_v53 = vmul.f32 %v2581_v34, %v2425_v5  ;;  %v14196_v34 = vmul.f32 0.5, %v13912_v2  ;;  %v1764_v5 = vadd.f32 %v17166_v33, %v13415_v58  ;;  %3520 = vst [vmem:[#allocation2 + $0xb8] sm:$0xff] %v3417_v42 }
 0x1c9   : > { %v2588_v33 = vadd.f32 1.0, %v12890_v17 }
 0x1ca   : > { %3357 = vrot.lane.b32.xlu1 %v1833_v18, %s13076_s23  ;;  %v14209_v2 = vmul.f32 %v13883_v54, %v2633_v53  ;;  %v14217_v43 = vmul.f32 0.5, %v1833_v18  ;;  %v17170_v54 = vld [vmem:[#allocation12_spill] sm:$0xff]  ;;  %v12894_v53 = vpop.eup %12893  ;;  %v14229_v17 = vmul.f32 0.5, %v1764_v5  ;;  %v2490_v19 = vmul.f32 0.70710677, %v1764_v5  ;;  %v14237_v3 = vpop.permute.xlu0 %11959 }
 0x1cb   : > { %6491 = vrot.lane.b32.xlu0 %v13951_v15, %s13077_s24  ;;  %v2491_v15 = vmul.f32 0.70710677, %v1833_v18  ;;  %v1835_v48 = vadd.f32 %v17170_v54, %v13415_v58  ;;  %v12896_v10 = vpop.eup %12895  ;;  %v2639_v18 = vmul.f32 %v2587_v1, %v2431_v14  ;;  %v2591_v29 = vadd.f32 1.0, %v12894_v53  ;;  %v14239_v14 = vpop.permute.xlu1 %3341  ;;  %v17185_v53 = vld [vmem:[#allocation43_spill] sm:$0xff] }
 0x1cc   : > { %17169 = vst [vmem:[#allocation76_spill] sm:$0xff] %v14209_v2  ;;  %v2590_v46 = vadd.f32 1.0, %v12896_v10  ;;  %v12898_v0 = vpop.eup %12897 }
 0x1cd   : > { %12901 = verf.f32 %v2491_v15  ;;  %v2492_v49 = vmul.f32 0.70710677, %v1835_v48  ;;  %v14259_v1 = vmul.f32 %v17177_v6, %v2639_v18  ;;  %v14275_v54 = vmul.f32 0.5, %v1835_v48 }
 0x1ce   : > { %12109 = vrot.lane.b32.xlu1 %v13999_v13, %s13078_s25  ;;  %v2634_v13 = vmul.f32 %v2582_v47, %v14155_v26  ;;  %v14235_v26 = vmul.f32 %v13886_v16, %v2635_v59  ;;  %v2640_v47 = vmul.f32 %v2588_v33, %v2432_v31  ;;  %v14249_v16 = vmul.f32 %v13922_v62, %v2636_v44  ;;  %v17175_v31 = vld [vmem:[#allocation13_spill] sm:$0xff]  ;;  %v17179_v59 = vld [vmem:[#allocation14_spill] sm:$0xff]  ;;  %v14282_v38 = vpop.permute.xlu0 %6473 }
 0x1cf   : > { %3355 = vrot.lane.b32.xlu0 %v1764_v5, %s13076_s23  ;;  %v14243_v5 = vpack.i.bf16 %v14206_v63, %v14179_v28  ;;  %v14253_v15 = vadd.f32 %v17175_v31, %v13415_v58  ;;  %17176 = vst [vmem:[#allocation13_spill] sm:$0xff] %v14256_v9  ;;  %17178 = vst [vmem:[#allocation44_spill] sm:$0xff] %v14259_v1  ;;  %12903 = verf.f32 %v2490_v19  ;;  %v17180_v62 = vld [vmem:[#allocation45_spill] sm:$0xff]  ;;  %v17182_v33 = vld [vmem:[#allocation46_spill] sm:$0xff]  ;;  %v14284_v18 = vpop.permute.xlu1 %11969  ;;  %v11911_v31 = vunpack.i.l.bf16 %v13995_v21 }
 0x1d0   : > { %17171 = vst [vmem:[#allocation12_spill] sm:$0xff] %v14235_v26  ;;  %v14246_v23 = vmul.f32 %v13892_v27, %v2634_v13  ;;  %17174 = vst [vmem:[#allocation79_spill] sm:$0xff] %v14249_v16  ;;  %v14263_v27 = vadd.f32 %v17179_v59, %v13415_v58  ;;  %v14270_v22 = vmul.f32 %v17180_v62, %v2638_v61  ;;  %v11907_v13 = vunpack.i.h.bf16 %v17185_v53  ;;  %v17186_v44 = vld [vmem:[#allocation49_spill] sm:$0xff] }
 0x1d1   : > { %17172 = vst [vmem:[#allocation77_spill] sm:$0xff] %v14243_v5  ;;  %v14273_v24 = vmul.f32 %v17182_v33, %v2640_v47  ;;  %17184 = vst [vmem:[#allocation46_spill] sm:$0xff] %v14275_v54  ;;  %v14279_v42 = vmul.f32 %v17186_v44, %v2641_v55  ;;  %v2643_v10 = vmul.f32 %v2591_v29, %v14190_v25  ;;  %12905 = verf.f32 %v2492_v49 }
 0x1d2   : > { %12149 = vrot.lane.b32.xlu1 %v13958_v35, %s13079_s26  ;;  %17173 = vst [vmem:[#allocation78_spill] sm:$0xff] %v14246_v23  ;;  %17181 = vst [vmem:[#allocation14_spill] sm:$0xff] %v14270_v22  ;;  %v14288_v19 = vpack.i.bf16 %v14186_v12, %v14165_v51  ;;  %v14291_v61 = vmul.f32 %v2590_v46, %v14193_v60  ;;  %v14294_v47 = vmul.f32 0.5, %v14253_v15  ;;  %v16960_v55 = vunpack.i.l.bf16 %v14284_v18  ;;  %v14311_v60 = vpop.eup %12899 }
 0x1d3   : > { %3359 = vrot.lane.b32.xlu0 %v1835_v48, %s13076_s23  ;;  %17183 = vst [vmem:[#allocation45_spill] sm:$0xff] %v14273_v24  ;;  %17187 = vst [vmem:[#allocation43_spill] sm:$0xff] %v14279_v42  ;;  %v2592_v48 = vadd.f32 1.0, %v12898_v0  ;;  %v14298_v25 = vmul.f32 0.70710677, %v14253_v15  ;;  %v14301_v29 = vmul.f32 0.5, %v14263_v27  ;;  %v17190_v46 = vunpack.i.l.bf16 %v17185_v53 }
 0x1d4   : > { %17188 = vst [vmem:[#allocation49_spill] sm:$0xff] %v14294_v47  ;;  %v14304_v49 = vmul.f32 0.70710677, %v14263_v27  ;;  %v11932_v6 = vunpack.i.h.bf16 %v14057_v11  ;;  %v3995_v62 = vsel %vm3991_vm3, %v11907_v13, %v16960_v55  ;;  %v17191_v53 = vld [vmem:[#allocation8_spill] sm:$0xff]  ;;  %v14331_v42 = vmul.f32 %v17192_v7, %v2643_v10  ;;  %v17194_v55 = vld [vmem:[#allocation42_spill] sm:$0xff]  ;;  %v17196_v7 = vld [vmem:[#allocation7_spill] sm:$0xff] }
 0x1d5   : > { %17189 = vst [vmem:[#allocation80_spill] sm:$0xff] %v14301_v29  ;;  %v3994_v0 = vsel %vm3991_vm3, %v17190_v46, %v11907_v13  ;;  %v11478_v30 = vpack.c.bf16 %v3995_v62, %v17191_v53  ;;  %v14334_v59 = vmul.f32 %v2592_v48, %v14196_v34  ;;  %v12168_v44 = vpack.i.bf16 %v14165_v51, %v17194_v55  ;;  %v17202_v29 = vld [vmem:[#allocation15_spill] sm:$0xff] }
 0x1d6   : > { %12154 = vrot.lane.b32.xlu1 %v13958_v35, %s13081_s30  ;;  %17193 = vst [vmem:[#allocation8_spill] sm:$0xff] %v14331_v42  ;;  %v17195_v33 = vunpack.i.h.bf16 %v13995_v21  ;;  %v11956_v62 = vunpack.i.l.bf16 %v14148_v20  ;;  %v11480_v34 = vpack.c.bf16 %v3994_v0, %v17196_v7  ;;  %v11946_v48 = vunpack.i.l.bf16 %v14221_v50 }
 0x1d7   : > { %12184 = vrot.lane.b32.xlu0 %v14243_v5, %s13078_s25  ;;  %v14325_v5 = vpop.permute.xlu1 %11984  ;;  %v14328_v46 = vpop.eup %12901  ;;  %v17197_v21 = vunpack.i.l.bf16 %v14059_v32  ;;  %11479 = vmatprep.subr.bf16.mxu0 %v11478_v30  ;;  %v11917_v51 = vunpack.i.h.bf16 %v14023_v37  ;;  %v17199_v55 = vunpack.i.h.bf16 %v14021_v36  ;;  %v17200_v30 = vunpack.i.l.bf16 %v14021_v36 }
 0x1d8   : > { %v11986_v13 = vunpack.i.l.bf16 %v14325_v5  ;;  %v4361_v52 = vsel %vm4360_vm5, %v11911_v31, %v17195_v33  ;;  %v17198_v33 = vunpack.i.l.bf16 %v14057_v11  ;;  %11481 = vmatpush1.bf16.msra.mxu0 %v11480_v34  ;;  %v11951_v42 = vunpack.i.l.bf16 %v14116_v57 }
 0x1d9   : > { %v14357_v39 = vpop.eup %12903  ;;  %v14378_v22 = vadd.f32 %v17202_v29, %v13415_v58  ;;  %v17205_v9 = vunpack.i.h.bf16 %v14221_v50  ;;  %v11936_v54 = vunpack.i.l.bf16 %v14089_v41  ;;  %v17211_v24 = vunpack.i.l.bf16 %v14021_v36 }
 0x1da   : > { %12159 = vrot.lane.b32.xlu1 %v13958_v35, %s13076_s23  ;;  %v4730_v31 = vsel %vm4729_vm4, %v11986_v13, %v17197_v21  ;;  %v5468_v53 = vsel %vm5466_vm6, %v17198_v33, %v11932_v6  ;;  %v5099_v13 = vsel %vm3393_vm2, %v17200_v30, %v17199_v55  ;;  %v17203_v55 = vunpack.i.h.bf16 %v14148_v20 }
 0x1db   : > { %12189 = vrot.lane.b32.xlu0 %v14288_v19, %s13079_s26  ;;  %v14363_v7 = vpop.permute.xlu1 %11994  ;;  %v11468_v10 = vpack.c.bf16 %v4730_v31, %v4361_v52  ;;  %v14374_v34 = vpop.eup %12905  ;;  %v11470_v52 = vpack.c.bf16 %v5468_v53, %v5099_v13  ;;  %v17204_v30 = vunpack.i.h.bf16 %v14059_v32  ;;  %v4733_v47 = vsel %vm4729_vm4, %v11946_v48, %v17205_v9 }
 0x1dc   : > { %17201 = vst [vmem:[#allocation50_spill] sm:$0xff] %v14374_v34  ;;  %v5470_v31 = vsel %vm5466_vm6, %v11956_v62, %v17203_v55  ;;  %v11996_v33 = vunpack.i.l.bf16 %v14363_v7  ;;  %v17206_v53 = vunpack.i.l.bf16 %v14023_v37  ;;  %v11937_v55 = vunpack.i.h.bf16 %v14089_v41 }
 0x1dd   : > { %v14323_v63 = vpop.permute.xlu0 %11974  ;;  %v4732_v21 = vsel %vm4729_vm4, %v17204_v30, %v11946_v48  ;;  %11469 = vmatpush1.bf16.msra.mxu1 %v11468_v10  ;;  %v17207_v34 = vunpack.i.h.bf16 %v14116_v57  ;;  %v17208_v37 = vunpack.i.h.bf16 %v14114_v45  ;;  %12907 = verf.f32 %v14298_v25  ;;  %v17223_v25 = vld [vmem:[#allocation65_spill] sm:$0xff] }
 0x1de   : > { %12164 = vrot.lane.b32.xlu1 %v13958_v35, %s13080_s28  ;;  %v4363_v13 = vsel %vm4360_vm5, %v17206_v53, %v11917_v51  ;;  %11471 = vmatprep.subr.bf16.mxu1 %v11470_v52  ;;  %v5469_v52 = vsel %vm5466_vm6, %v11932_v6, %v11956_v62  ;;  %v11961_v53 = vunpack.i.l.bf16 %v14237_v3  ;;  %v17212_v62 = vld [vmem:[#allocation16_spill] sm:$0xff]  ;;  %12909 = verf.f32 %v14304_v49 }
 0x1df   : > { %12194 = vrot.lane.b32.xlu0 %v14288_v19, %s13081_s30  ;;  %v14402_v30 = vpop.permute.xlu1 %11999  ;;  %v5101_v9 = vsel %vm3393_vm2, %v11951_v42, %v17207_v34  ;;  %v11484_v41 = vpack.c.bf16 %v4732_v21, %v4363_v13 }
 0x1e0   : > { %v12001_v6 = vunpack.i.l.bf16 %v14402_v30 }
 0x1e1   : > { %v14361_v0 = vpop.permute.xlu0 %11979 }
 0x1e2   : > { %v16967_v35 = vunpack.i.l.bf16 %v14361_v0  ;;  %12169 = vrot.lane.b32.xlu1 %v12168_v44, %s13082_s9 }
 0x1e3   : > { %12199 = vrot.lane.b32.xlu0 %v14288_v19, %s13076_s23 }
 0x1e4   : > { %v4364_v29 = vsel %vm4360_vm5, %v11917_v51, %v16967_v35  ;;  %v17209_v51 = vunpack.i.l.bf16 %v14114_v45 }
 0x1e5   : > { %v14400_v32 = vpop.permute.xlu0 %11989  ;;  %v11482_v10 = vpack.c.bf16 %v4733_v47, %v4364_v29  ;;  %v11486_v47 = vpack.c.bf16 %v5470_v31, %v5101_v9  ;;  %v17210_v29 = vunpack.i.l.bf16 %v14057_v11  ;;  %v14434_v11 = vpop.permute.xlu1 %12004  ;;  %v5837_v9 = vsel %vm5835_vm8, %v11936_v54, %v11937_v55 }
 0x1e6   : > { %v11991_v35 = vunpack.i.l.bf16 %v14400_v32  ;;  %v6206_v48 = vsel %vm6204_vm7, %v17209_v51, %v17208_v37  ;;  %12174 = vrot.lane.b32.xlu1 %v12168_v44, %s13083_s10  ;;  %v16973_v37 = vunpack.i.h.bf16 %v14402_v30  ;;  %v14429_v51 = vadd.f32 %v17212_v62, %v13415_v58 }
 0x1e7   : > { %12204 = vrot.lane.b32.xlu0 %v14288_v19, %s13080_s28  ;;  %v5467_v34 = vsel %vm5466_vm6, %v11996_v33, %v17210_v29  ;;  %11483 = vmatprep.subr.bf16.mxu0 %v11482_v10  ;;  %v11966_v44 = vunpack.i.l.bf16 %v14170_v40  ;;  %v14438_v33 = vpack.i.bf16 %v14179_v28, %v14186_v12  ;;  %v16974_v13 = vunpack.i.h.bf16 %v14434_v11 }
 0x1e8   : > { %v5098_v1 = vsel %vm3393_vm2, %v11991_v35, %v17211_v24  ;;  %11485 = vmatpush1.bf16.msra.mxu0 %v11484_v41  ;;  %v17215_v35 = vunpack.i.h.bf16 %v14021_v36  ;;  %v12006_v10 = vunpack.i.l.bf16 %v14434_v11  ;;  %v5836_v41 = vsel %vm5835_vm8, %v11961_v53, %v11936_v54 }
 0x1e9   : > { %v14432_v21 = vpop.permute.xlu0 %6479  ;;  %17214 = vst [vmem:[#allocation15_spill] sm:$0xff] %v14438_v33  ;;  %v11472_v24 = vpack.c.bf16 %v5467_v34, %v5098_v1  ;;  %11487 = vmatprep.subr.bf16.mxu0 %v11486_v47  ;;  %v16972_v29 = vunpack.i.l.bf16 %v14323_v63  ;;  %v11474_v36 = vpack.c.bf16 %v6206_v48, %v5837_v9  ;;  %v17216_v34 = vunpack.i.h.bf16 %v14114_v45 }
 0x1ea   : > { %17213 = vst [vmem:[#allocation7_spill] sm:$0xff] %v14432_v21  ;;  %v5100_v31 = vsel %vm3393_vm2, %v17215_v35, %v11951_v42  ;;  %3361 = vrot.lane.b32.xlu1 %v14253_v15, %s13076_s23  ;;  %v5838_v42 = vsel %vm5835_vm8, %v11937_v55, %v12001_v6  ;;  %v5839_v54 = vsel %vm5835_vm8, %v12001_v6, %v16973_v37  ;;  %v17217_v15 = vunpack.i.l.bf16 %v14114_v45  ;;  %v17218_v45 = vld [vmem:[#allocation51_spill] sm:$0xff]  ;;  %v17244_v37 = vld [vmem:[#allocation28_spill] sm:$0xff] }
 0x1eb   : > { %12209 = vrot.lane.b32.xlu0 %v14438_v33, %s13082_s9  ;;  %v11488_v1 = vpack.c.bf16 %v5469_v52, %v5100_v31  ;;  %v6207_v47 = vsel %vm6204_vm7, %v17216_v34, %v12006_v10  ;;  %11473 = vmatpush1.bf16.msra.mxu1 %v11472_v24  ;;  %v6208_v53 = vsel %vm6204_vm7, %v12006_v10, %v16974_v13  ;;  %v14465_v52 = vpop.permute.xlu1 %6475  ;;  %v11972_v35 = vunpack.i.h.bf16 %v14284_v18  ;;  %v17263_v33 = vld [vmem:[#allocation13_spill] sm:$0xff] }
 0x1ec   : > { %v6205_v48 = vsel %vm6204_vm7, %v11966_v44, %v17217_v15  ;;  %11475 = vmatprep.subr.bf16.mxu1 %v11474_v36  ;;  %v11490_v62 = vpack.c.bf16 %v6208_v53, %v5839_v54  ;;  %v11492_v24 = vpack.c.bf16 %v6207_v47, %v5838_v42  ;;  %v14474_v9 = vmul.f32 %v17218_v45, %v14291_v61  ;;  %v17220_v36 = vld [vmem:[#allocation17_spill] sm:$0xff]  ;;  %v17225_v15 = vld [vmem:[#allocation18_spill] sm:$0xff]  ;;  %v17229_v45 = vld [vmem:[#allocation20_spill] sm:$0xff] }
 0x1ed   : > { %11489 = vmatpush1.bf16.msra.mxu0 %v11488_v1  ;;  %v3340_v55 = vpop.permute.xlu0 %3339  ;;  %v11476_v10 = vpack.c.bf16 %v6205_v48, %v5836_v41  ;;  %v2593_v44 = vadd.f32 1.0, %v14311_v60  ;;  %v14480_v1 = vadd.f32 %v17220_v36, %v13415_v58  ;;  %v14491_v60 = vadd.f32 1.0, %v14328_v46  ;;  %v17224_v41 = vld [vmem:[#allocation40_spill] sm:$0xff] }
 0x1ee   : > { %v3418_v6 = vsel %vm3393_vm2, %v14223_v4, %v3340_v55  ;;  %v3419_v31 = vsel %vm3393_vm2, %v3340_v55, %v14239_v14  ;;  %17219 = vst [vmem:[#allocation16_spill] sm:$0xff] %v14474_v9  ;;  %3365 = vrot.lane.b32.xlu1 %v14263_v27, %s13076_s23  ;;  %v17221_v4 = vld [vmem:[#allocation52_spill] sm:$0xff]  ;;  %11491 = vmatprep.subr.bf16.mxu0 %v11490_v62  ;;  %v14501_v27 = vmul.f32 0.5, %v14378_v22  ;;  %v2496_v53 = vmul.f32 0.70710677, %v14429_v51 }
 0x1ef   : > { %3521 = vst [vmem:[#allocation2 + $0xc0] sm:$0xff] %v3418_v6  ;;  %3522 = vst [vmem:[#allocation2 + $0xc8] sm:$0xff] %v3419_v31  ;;  %3363 = vrot.lane.b32.xlu0 %v14378_v22, %s13076_s23  ;;  %v14488_v61 = vmul.f32 %v17221_v4, %v14334_v59  ;;  %11477 = vmatpush1.bf16.msra.mxu1 %v11476_v10  ;;  %v6575_v42 = vsel %vm6573_vm9, %v17224_v41, %v17223_v25  ;;  %v2494_v59 = vmul.f32 0.70710677, %v14378_v22  ;;  %v14506_v47 = vpop.permute.xlu1 %12009 }
 0x1f0   : > { %v3997_v34 = vsel %vm3991_vm3, %v11972_v35, %v16972_v29  ;;  %7225 = vmatprep.subr.mxu1 %v6575_v42  ;;  %v6577_v54 = vsel %vm6573_vm9, %v14282_v38, %v14465_v52  ;;  %v14514_v49 = vadd.f32 %v17225_v15, %v13415_v58  ;;  %v17226_v48 = vunpack.i.l.bf16 %v14284_v18  ;;  %v17227_v18 = vld [vmem:[#allocation34_spill] sm:$0xff]  ;;  %v17232_v15 = vld [vmem:[#allocation21_spill] sm:$0xff] }
 0x1f1   : > { %17222 = vst [vmem:[#allocation51_spill] sm:$0xff] %v14488_v61  ;;  %11493 = vmatpush1.bf16.msra.mxu0 %v11492_v24  ;;  %v14504_v46 = vpop.permute.xlu0 %3343  ;;  %v6574_v62 = vsel %vm6573_vm9, %v14146_v56, %v17224_v41  ;;  %v11982_v24 = vunpack.i.h.bf16 %v14361_v0  ;;  %v14537_v6 = vmul.f32 %v2593_v44, %v14215_v8  ;;  %v17228_v56 = vld [vmem:[#allocation19_spill] sm:$0xff]  ;;  %v16970_v10 = vunpack.i.l.bf16 %v14506_v47 }
 0x1f2   : > { %v3996_v22 = vsel %vm3991_vm3, %v17226_v48, %v11972_v35  ;;  %v3420_v55 = vsel %vm3393_vm2, %v14239_v14, %v14504_v46  ;;  %7296 = vmatprep.subr.mxu0 %v6577_v54  ;;  %12179 = vrot.lane.b32.xlu1 %v14288_v19, %s13078_s25  ;;  %v11494_v35 = vpack.c.bf16 %v3997_v34, %v17227_v18  ;;  %v14534_v14 = vld [vmem:[%s16921_s4] sm:$0xff]  ;;  %v11987_v4 = vunpack.i.h.bf16 %v14325_v5  ;;  %v17230_v41 = vld [vmem:[#allocation31_spill] sm:$0xff] }
 0x1f3   : > { %3523 = vst [vmem:[#allocation2 + $0xd0] sm:$0xff] %v3420_v55  ;;  %3367 = vrot.lane.b32.xlu0 %v14429_v51, %s13076_s23  ;;  %v14541_v31 = vadd.f32 %v17228_v56, %v13415_v58  ;;  %7226 = vmatpush1.msra.mxu1 %v6574_v62  ;;  %v6576_v19 = vsel %vm6573_vm9, %v17223_v25, %v14282_v38  ;;  %v14554_v44 = vpop.permute.xlu1 %12014  ;;  %v2594_v38 = vadd.f32 1.0, %v14357_v39  ;;  %12911 = verf.f32 %v2494_v59  ;;  %v17234_v55 = vld [vmem:[#allocation22_spill] sm:$0xff] }
 0x1f4   : > { %v14549_v36 = vadd.f32 %v17229_v45, %v13415_v58  ;;  %11495 = vmatprep.subr.bf16.mxu1 %v11494_v35  ;;  %v11496_v42 = vpack.c.bf16 %v3996_v22, %v17230_v41  ;;  %v14559_v34 = vpack.i.bf16 %v14249_v16, %v14235_v26  ;;  %v2497_v25 = vmul.f32 0.70710677, %v14480_v1  ;;  %11408 = vmatmul.mubr.msk.f32.vlgmr.msra.gmra.mrb[26].mxu1 %vm7205_vm10, %v14534_v14  ;;  %v12908_v35 = vpop.eup %12907 }
 0x1f5   : > { %7297 = vmatpush1.msra.mxu0 %v6576_v19  ;;  %v14552_v8 = vpop.permute.xlu0 %12044  ;;  %v16971_v54 = vunpack.i.l.bf16 %v14554_v44  ;;  %12913 = verf.f32 %v2496_v53  ;;  %v2499_v5 = vmul.f32 0.70710677, %v14514_v49  ;;  %v14571_v48 = vadd.f32 %v17232_v15, %v13415_v58  ;;  %v17236_v19 = vld [vmem:[#allocation23_spill] sm:$0xff]  ;;  %v14612_v29 = vpop.eup %12909 }
 0x1f6   : > { %17231 = vst [vmem:[#allocation17_spill] sm:$0xff] %v14559_v34  ;;  %11409 = vmatmul.mubr.msk.f32.vlgmr.msra.gmra.mrb[28].mxu0 %vm7205_vm10, %v14534_v14  ;;  %v17233_v39 = vunpack.i.l.bf16 %v14361_v0  ;;  %11497 = vmatpush1.bf16.msra.mxu1 %v11496_v42  ;;  %v2498_v22 = vmul.f32 0.70710677, %v14541_v31  ;;  %v14581_v62 = vadd.f32 %v17234_v55, %v13415_v58  ;;  %v4366_v53 = vsel %vm4360_vm5, %v11982_v24, %v16970_v10  ;;  %v17238_v10 = vld [vmem:[#allocation24_spill] sm:$0xff] }
 0x1f7   : > { %12219 = vrot.lane.b32.xlu0 %v14559_v34, %s13078_s25  ;;  %3369 = vrot.lane.b32.xlu1 %v14480_v1, %s13076_s23  ;;  %v4735_v0 = vsel %vm4729_vm4, %v11987_v4, %v16971_v54  ;;  %v17235_v18 = vmov 0.0   ;;  %v2500_v56 = vmul.f32 0.70710677, %v14549_v36  ;;  %v14595_v45 = vadd.f32 %v17236_v19, %v13415_v58  ;;  %v17248_v34 = vld [vmem:[#allocation45_spill] sm:$0xff] }
 0x1f8   : > { %v4365_v59 = vsel %vm4360_vm5, %v17233_v39, %v11982_v24  ;;  %7415 = vmatprep.mubr.f32.mxu1 %v17235_v18  ;;  %v17237_v41 = vunpack.i.h.bf16 %v14221_v50  ;;  %v14602_v24 = vpop.permute.xlu1 %12019  ;;  %v11498_v39 = vpack.c.bf16 %v4735_v0, %v4366_v53  ;;  %7486 = vmatprep.mubr.f32.mxu0 %v17235_v18  ;;  %v14606_v55 = vmul.f32 0.5, %v14429_v51 }
 0x1f9   : > { %v14600_v15 = vpop.permute.xlu0 %12049  ;;  %12915 = verf.f32 %v2497_v25  ;;  %v14610_v54 = vadd.f32 %v17238_v10, %v13415_v58  ;;  %v2501_v50 = vmul.f32 0.70710677, %v14571_v48  ;;  %v11992_v53 = vunpack.i.h.bf16 %v14400_v32 }
 0x1fa   : > { %v4734_v42 = vsel %vm4729_vm4, %v17237_v41, %v11987_v4  ;;  %12917 = verf.f32 %v2499_v5  ;;  %v17239_v4 = vld [vmem:[#allocation25_spill] sm:$0xff]  ;;  %11499 = vmatprep.subr.bf16.mxu1 %v11498_v39  ;;  %v2647_v51 = vmul.f32 %v14491_v60, %v14217_v43  ;;  %v2503_v10 = vmul.f32 0.70710677, %v14581_v62  ;;  %v17240_v60 = vld [vmem:[#allocation26_spill] sm:$0xff] }
 0x1fb   : > { %v11500_v19 = vpack.c.bf16 %v4734_v42, %v4365_v59  ;;  %v14617_v41 = vadd.f32 %v17239_v4, %v13415_v58  ;;  %3371 = vrot.lane.b32.xlu0 %v14541_v31, %s13076_s23  ;;  %12919 = verf.f32 %v2498_v22  ;;  %v16983_v25 = vunpack.i.l.bf16 %v14602_v24  ;;  %3373 = vrot.lane.b32.xlu1 %v14514_v49, %s13076_s23 }
 0x1fc   : > { %v2646_v5 = vmul.f32 %v2594_v38, %v14229_v17  ;;  %12921 = verf.f32 %v2500_v56  ;;  %v2502_v32 = vmul.f32 0.70710677, %v14595_v45  ;;  %v11997_v59 = vunpack.i.h.bf16 %v14363_v7  ;;  %v14633_v42 = vpop.permute.xlu1 %12024  ;;  %v17242_v7 = vld [vmem:[#allocation27_spill] sm:$0xff] }
 0x1fd   : > { %11501 = vmatpush1.bf16.msra.mxu1 %v11500_v19  ;;  %v14631_v0 = vpop.permute.xlu0 %12054  ;;  %v2504_v43 = vmul.f32 0.70710677, %v14610_v54  ;;  %v14638_v22 = vadd.f32 %v17240_v60, %v13415_v58  ;;  %v16984_v39 = vunpack.i.l.bf16 %v14633_v42  ;;  %v14643_v17 = vpack.i.bf16 %v14246_v23, %v14209_v2  ;;  %v12912_v60 = vpop.eup %12911 }
 0x1fe   : > { %12923 = verf.f32 %v2501_v50  ;;  %v2505_v38 = vmul.f32 0.70710677, %v14617_v41  ;;  %v14648_v56 = vadd.f32 %v17242_v7, %v13415_v58  ;;  %v17243_v19 = vunpack.i.h.bf16 %v14116_v57 }
 0x1ff   : > { %17241 = vst [vmem:[#allocation52_spill] sm:$0xff] %v14643_v17  ;;  %3375 = vrot.lane.b32.xlu0 %v14549_v36, %s13076_s23  ;;  %12925 = verf.f32 %v2503_v10  ;;  %v14657_v13 = vadd.f32 %v17244_v37, %v13415_v58  ;;  %12214 = vrot.lane.b32.xlu1 %v14643_v17, %s13078_s25  ;;  %v5103_v50 = vsel %vm3393_vm2, %v11992_v53, %v16983_v25  ;;  %v12914_v7 = vpop.eup %12913  ;;  %v17247_v37 = vld [vmem:[#allocation44_spill] sm:$0xff]  ;;  %v2598_v17 = vadd.f32 1.0, %v12912_v60 }
 0x200   : > { %v5102_v4 = vsel %vm3393_vm2, %v17243_v19, %v11992_v53  ;;  %v5472_v57 = vsel %vm5466_vm6, %v11997_v59, %v16984_v39  ;;  %12927 = verf.f32 %v2502_v32  ;;  %v17245_v19 = vunpack.i.h.bf16 %v14148_v20  ;;  %v14672_v58 = vpop.permute.xlu1 %12029  ;;  %v17250_v53 = vld [vmem:[#allocation50_spill] sm:$0xff] }
 0x201   : > { %v14670_v16 = vpop.permute.xlu0 %12059  ;;  %17246 = vst [vmem:[#allocation65_spill] sm:$0xff] %v14672_v58  ;;  %v14676_v28 = vpack.i.bf16 %v17248_v34, %v17247_v37  ;;  %v11502_v26 = vpack.c.bf16 %v5472_v57, %v5103_v50  ;;  %v2596_v25 = vadd.f32 1.0, %v17250_v53  ;;  %12929 = verf.f32 %v2504_v43  ;;  %v17251_v50 = vld [vmem:[#allocation53_spill] sm:$0xff]  ;;  %v17253_v43 = vld [vmem:[#allocation54_spill] sm:$0xff] }
 0x202   : > { %v5471_v10 = vsel %vm5466_vm6, %v17245_v19, %v11997_v59  ;;  %v2507_v39 = vmul.f32 0.70710677, %v14638_v22  ;;  %v2597_v32 = vadd.f32 1.0, %v12908_v35  ;;  %v14681_v20 = vmul.f32 0.5, %v14480_v1  ;;  %v17257_v34 = vld [vmem:[#allocation46_spill] sm:$0xff] }
 0x203   : > { %17249 = vst [vmem:[#allocation40_spill] sm:$0xff] %v14676_v28  ;;  %v11504_v23 = vpack.c.bf16 %v5471_v10, %v5102_v4  ;;  %12931 = verf.f32 %v2505_v38  ;;  %v2506_v59 = vmul.f32 0.70710677, %v14648_v56  ;;  %12229 = vrot.lane.b32.xlu0 %v14676_v28, %s13078_s25  ;;  %11503 = vmatprep.subr.bf16.mxu1 %v11502_v26  ;;  %v12916_v19 = vpop.eup %12915  ;;  %v14688_v57 = vmul.f32 %v17251_v50, %v14537_v6  ;;  %v17255_v4 = vld [vmem:[#allocation55_spill] sm:$0xff] }
 0x204   : > { %v14691_v53 = vmul.f32 %v17253_v43, %v2647_v51  ;;  %v2508_v35 = vmul.f32 0.70710677, %v14657_v13  ;;  %3377 = vrot.lane.b32.xlu1 %v14571_v48, %s13076_s23  ;;  %v12918_v38 = vpop.eup %12917  ;;  %v14698_v10 = vmul.f32 %v17255_v4, %v2646_v5  ;;  %v14701_v26 = vmul.f32 0.5, %v14514_v49  ;;  %v14709_v43 = vpop.permute.xlu1 %12034  ;;  %v17258_v49 = vld [vmem:[#allocation49_spill] sm:$0xff] }
 0x205   : > { %17252 = vst [vmem:[#allocation18_spill] sm:$0xff] %v14688_v57  ;;  %11505 = vmatpush1.bf16.msra.mxu1 %v11504_v23  ;;  %v14704_v6 = vmul.f32 0.5, %v14541_v31  ;;  %v11967_v51 = vunpack.i.h.bf16 %v14170_v40  ;;  %v14707_v50 = vpop.permute.xlu0 %12064  ;;  %v12920_v1 = vpop.eup %12919  ;;  %v2648_v28 = vmul.f32 %v2596_v25, %v17257_v34  ;;  %12933 = verf.f32 %v2507_v39 }
 0x206   : > { %17254 = vst [vmem:[#allocation34_spill] sm:$0xff] %v14691_v53  ;;  %17256 = vst [vmem:[#allocation19_spill] sm:$0xff] %v14698_v10  ;;  %v11962_v23 = vunpack.i.h.bf16 %v14237_v3  ;;  %v16996_v5 = vunpack.i.l.bf16 %v14709_v43  ;;  %v12922_v4 = vpop.eup %12921  ;;  %v2649_v37 = vmul.f32 %v2597_v32, %v17258_v49  ;;  %v2599_v31 = vadd.f32 1.0, %v14612_v29 }
 0x207   : > { %12935 = verf.f32 %v2506_v59  ;;  %v17259_v40 = vunpack.i.h.bf16 %v14434_v11  ;;  %3379 = vrot.lane.b32.xlu0 %v14595_v45, %s13076_s23  ;;  %v17260_v3 = vunpack.i.l.bf16 %v14672_v58  ;;  %v2600_v11 = vadd.f32 1.0, %v12914_v7  ;;  %v17266_v58 = vld [vmem:[#allocation56_spill] sm:$0xff] }
 0x208   : > { %12937 = verf.f32 %v2508_v35  ;;  %3381 = vrot.lane.b32.xlu1 %v14581_v62, %s13076_s23  ;;  %v6210_v29 = vsel %vm6204_vm7, %v11967_v51, %v16996_v5  ;;  %v12924_v25 = vpop.eup %12923  ;;  %v2448_v39 = vmul.f32 0.5, %v14549_v36  ;;  %v17261_v32 = vunpack.i.h.bf16 %v14402_v30  ;;  %v14735_v35 = vpop.permute.xlu1 %6481 }
 0x209   : > { %v6209_v2 = vsel %vm6204_vm7, %v17259_v40, %v11967_v51  ;;  %v5841_v34 = vsel %vm5835_vm8, %v11962_v23, %v17260_v3  ;;  %v14733_v59 = vpop.permute.xlu0 %12069  ;;  %v12926_v40 = vpop.eup %12925  ;;  %v2449_v3 = vmul.f32 0.5, %v14571_v48  ;;  %v2451_v12 = vmul.f32 0.5, %v14581_v62  ;;  %v17264_v51 = vld [vmem:[#allocation14_spill] sm:$0xff]  ;;  %v17269_v62 = vld [vmem:[#allocation57_spill] sm:$0xff] }
 0x20a   : > { %v5840_v60 = vsel %vm5835_vm8, %v17261_v32, %v11962_v23  ;;  %17262 = vst [vmem:[#allocation20_spill] sm:$0xff] %v14733_v59  ;;  %v11506_v49 = vpack.c.bf16 %v6210_v29, %v5841_v34  ;;  %v14741_v5 = vpack.i.bf16 %v17264_v51, %v17263_v33  ;;  %v12928_v36 = vpop.eup %12927  ;;  %v14744_v30 = vmul.f32 %v17266_v58, %v2648_v28  ;;  %v17268_v23 = vld [vmem:[#allocation80_spill] sm:$0xff]  ;;  %v17270_v28 = vld [vmem:[#allocation11_spill] sm:$0xff] }
 0x20b   : > { %v11508_v7 = vpack.c.bf16 %v6209_v2, %v5840_v60  ;;  %v2651_v32 = vmul.f32 %v2599_v31, %v17268_v23  ;;  %v2450_v59 = vmul.f32 0.5, %v14595_v45  ;;  %v2452_v34 = vmul.f32 0.5, %v14610_v54  ;;  %3383 = vrot.lane.b32.xlu0 %v14610_v54, %s13076_s23  ;;  %v12930_v48 = vpop.eup %12929 }
 0x20c   : > { %17265 = vst [vmem:[#allocation31_spill] sm:$0xff] %v14741_v5  ;;  %17267 = vst [vmem:[#allocation21_spill] sm:$0xff] %v14744_v30  ;;  %11507 = vmatprep.subr.bf16.mxu1 %v11506_v49  ;;  %v14752_v29 = vmul.f32 %v17269_v62, %v2649_v37  ;;  %v2650_v2 = vmul.f32 %v2598_v17, %v14501_v27  ;;  %v2601_v60 = vadd.f32 1.0, %v12916_v19  ;;  %12224 = vrot.lane.b32.xlu1 %v14741_v5, %s13078_s25  ;;  %v14763_v37 = vpop.permute.xlu1 %6485  ;;  %v17271_v27 = vld [vmem:[#allocation8_spill] sm:$0xff] }
 0x20d   : > { %11509 = vmatpush1.bf16.msra.mxu1 %v11508_v7  ;;  %v6579_v45 = vsel %vm6573_vm9, %v17270_v28, %v14432_v21  ;;  %v12932_v58 = vpop.eup %12931  ;;  %v2652_v31 = vmul.f32 %v2600_v11, %v14606_v55  ;;  %v2603_v54 = vadd.f32 1.0, %v12918_v38  ;;  %v2602_v49 = vadd.f32 1.0, %v12920_v1  ;;  %v14761_v23 = vpop.permute.xlu0 %12074  ;;  %v17273_v21 = vld [vmem:[#allocation33_spill] sm:$0xff] }
 0x20e   : > { %7367 = vmatprep.subr.mxu1 %v6579_v45  ;;  %v14767_v17 = vpack.i.bf16 %v14488_v61, %v17271_v27  ;;  %v2604_v19 = vadd.f32 1.0, %v12922_v4  ;;  %v2605_v7 = vadd.f32 1.0, %v12924_v25  ;;  %v2607_v62 = vadd.f32 1.0, %v12926_v40  ;;  %v17274_v55 = vld [vmem:[#allocation29_spill] sm:$0xff]  ;;  %v17275_v45 = vld [vmem:[#allocation58_spill] sm:$0xff]  ;;  %v17277_v61 = vld [vmem:[#allocation60_spill] sm:$0xff] }
 0x20f   : > { %v2453_v51 = vmul.f32 0.5, %v14617_v41  ;;  %v2606_v33 = vadd.f32 1.0, %v12928_v36  ;;  %v2608_v5 = vadd.f32 1.0, %v12930_v48  ;;  %v14772_v38 = vadd.f32 %v17274_v55, %v17273_v21  ;;  %v12934_v11 = vpop.eup %12933  ;;  %v17276_v55 = vld [vmem:[#allocation59_spill] sm:$0xff] }
 0x210   : > { %17272 = vst [vmem:[#allocation22_spill] sm:$0xff] %v14767_v17  ;;  %12239 = vrot.lane.b32.xlu0 %v14767_v17, %s13078_s25  ;;  %v6578_v1 = vsel %vm6573_vm9, %v14465_v52, %v17270_v28  ;;  %v14780_v4 = vmul.f32 %v17275_v45, %v2651_v32  ;;  %v2653_v25 = vmul.f32 %v2601_v60, %v14681_v20  ;;  %v2609_v40 = vadd.f32 1.0, %v12932_v58  ;;  %v3346_v20 = vpop.permute.xlu1 %3345 }
 0x211   : > { %v2455_v36 = vmul.f32 0.5, %v14638_v22  ;;  %3385 = vrot.lane.b32.xlu1 %v14617_v41, %s13076_s23  ;;  %7368 = vmatpush1.msra.mxu1 %v6578_v1  ;;  %v12936_v48 = vpop.eup %12935  ;;  %v14787_v21 = vmul.f32 %v17276_v55, %v2650_v2  ;;  %v14790_v17 = vmul.f32 %v17277_v61, %v2652_v31  ;;  %v2655_v52 = vmul.f32 %v2603_v54, %v14701_v26  ;;  %v14794_v28 = vpop.permute.xlu0 %6483  ;;  %v17278_v54 = vld [vmem:[#allocation61_spill] sm:$0xff]  ;;  %v17291_v55 = vld [vmem:[#allocation68_spill] sm:$0xff] }
 0x212   : > { %v2654_v32 = vmul.f32 %v2602_v49, %v14704_v6  ;;  %11410 = vmatmul.mubr.msk.f32.vlgmr.msra.gmra.mrb[28].mxu1 %vm7205_vm10, %v14534_v14  ;;  %v12938_v60 = vpop.eup %12937  ;;  %v2656_v41 = vmul.f32 %v2604_v19, %v2448_v39  ;;  %v2657_v58 = vmul.f32 %v2605_v7, %v2449_v3  ;;  %v2659_v1 = vmul.f32 %v2607_v62, %v2451_v12  ;;  %v17284_v62 = vld [vmem:[#allocation64_spill] sm:$0xff] }
 0x213   : > { %v3421_v2 = vsel %vm3393_vm2, %v14504_v46, %v3346_v20  ;;  %7557 = vmatprep.mubr.f32.mxu1 %v17235_v18  ;;  %v2658_v61 = vmul.f32 %v2606_v33, %v2450_v59  ;;  %v2660_v31 = vmul.f32 %v2608_v5, %v2452_v34  ;;  %v2454_v26 = vmul.f32 0.5, %v14648_v56  ;;  %v17280_v46 = vld [vmem:[#allocation62_spill] sm:$0xff]  ;;  %v17282_v5 = vld [vmem:[#allocation63_spill] sm:$0xff] }
 0x214   : > { %v3639_v6 = vmul.f32 0.70710677, %v14772_v38  ;;  %3524 = vst [vmem:[#allocation2 + $0xd8] sm:$0xff] %v3421_v2  ;;  %3387 = vrot.lane.b32.xlu0 %v14648_v56, %s13076_s23  ;;  %v14806_v49 = vmul.f32 %v17278_v54, %v2653_v25  ;;  %v2661_v39 = vmul.f32 %v2609_v40, %v2453_v51  ;;  %v2611_v12 = vadd.f32 1.0, %v12934_v11  ;;  %v3350_v56 = vpop.permute.xlu1 %3349  ;;  %v17286_v51 = vld [vmem:[#allocation66_spill] sm:$0xff]  ;;  %v17288_v25 = vld [vmem:[#allocation67_spill] sm:$0xff] }
 0x215   : > { %v2610_v3 = vadd.f32 1.0, %v12936_v48  ;;  %3389 = vrot.lane.b32.xlu1 %v14638_v22, %s13076_s23  ;;  %v14811_v33 = vmul.f32 %v17280_v46, %v2655_v52  ;;  %v14814_v59 = vmul.f32 %v17282_v5, %v2654_v32  ;;  %v2456_v34 = vmul.f32 0.5, %v14657_v13  ;;  %v14817_v7 = vpop.permute.xlu0 %6487  ;;  %v17290_v40 = vld [vmem:[#allocation43_spill] sm:$0xff]  ;;  %v17293_v32 = vld [vmem:[#allocation69_spill] sm:$0xff] }
 0x216   : > { %17279 = vst [vmem:[#allocation23_spill] sm:$0xff] %v14806_v49  ;;  %v2612_v19 = vadd.f32 1.0, %v12938_v60  ;;  %v14820_v45 = vmul.f32 %v17284_v62, %v2656_v41  ;;  %v14823_v11 = vmul.f32 %v17286_v51, %v2657_v58  ;;  %v14826_v22 = vmul.f32 %v17288_v25, %v2659_v1  ;;  %v17295_v58 = vld [vmem:[#allocation70_spill] sm:$0xff] }
 0x217   : > { %17281 = vst [vmem:[#allocation24_spill] sm:$0xff] %v14811_v33  ;;  %17283 = vst [vmem:[#allocation25_spill] sm:$0xff] %v14814_v59  ;;  %v14830_v48 = vpack.i.bf16 %v14474_v9, %v17290_v40  ;;  %v14833_v52 = vmul.f32 %v17291_v55, %v2658_v61  ;;  %v14836_v60 = vmul.f32 %v17293_v32, %v2660_v31  ;;  %12939 = verf.f32 %v3639_v6 }
 0x218   : > { %17285 = vst [vmem:[#allocation26_spill] sm:$0xff] %v14820_v45  ;;  %17287 = vst [vmem:[#allocation27_spill] sm:$0xff] %v14823_v11  ;;  %v11977_v41 = vunpack.i.h.bf16 %v14323_v63  ;;  %3391 = vrot.lane.b32.xlu0 %v14657_v13, %s13076_s23  ;;  %v14842_v2 = vmul.f32 %v17295_v58, %v2661_v39  ;;  %v14844_v1 = vmul.f32 %v2611_v12, %v2455_v36  ;;  %v12056_v46 = vunpack.i.l.bf16 %v14631_v0  ;;  %v12040_v13 = vpop.permute.xlu1 %12039  ;;  %v17303_v58 = vld [vmem:[#allocation32_spill] sm:$0xff] }
 0x219   : > { %17289 = vst [vmem:[#allocation28_spill] sm:$0xff] %v14826_v22  ;;  %17292 = vst [vmem:[#allocation50_spill] sm:$0xff] %v14833_v52  ;;  %v14846_v54 = vmul.f32 %v2610_v3, %v2454_v26  ;;  %12234 = vrot.lane.b32.xlu1 %v14830_v48, %s13078_s25  ;;  %v14851_v61 = vmul.f32 %v2612_v19, %v2456_v34  ;;  %v17013_v31 = vunpack.i.l.bf16 %v14552_v8  ;;  %v12017_v6 = vunpack.i.h.bf16 %v14554_v44  ;;  %v3348_v5 = vpop.permute.xlu0 %3347 }
 0x21a   : > { %17294 = vst [vmem:[#allocation53_spill] sm:$0xff] %v14836_v60  ;;  %17296 = vst [vmem:[#allocation54_spill] sm:$0xff] %v14842_v2  ;;  %v14857_v39 = vpack.i.bf16 %v14698_v10, %v14688_v57  ;;  %v3422_v36 = vsel %vm3393_vm2, %v3346_v20, %v3348_v5  ;;  %v3423_v26 = vsel %vm3393_vm2, %v3348_v5, %v3350_v56  ;;  %v12042_v12 = vunpack.i.h.bf16 %v12040_v13 }
 0x21b   : > { %v12041_v3 = vunpack.i.l.bf16 %v12040_v13  ;;  %v17298_v62 = vunpack.i.l.bf16 %v14323_v63  ;;  %v12012_v19 = vunpack.i.h.bf16 %v14506_v47  ;;  %v12051_v51 = vunpack.i.l.bf16 %v14600_v15  ;;  %3525 = vst [vmem:[#allocation2 + $0xe0] sm:$0xff] %v3422_v36  ;;  %3526 = vst [vmem:[#allocation2 + $0xe8] sm:$0xff] %v3423_v26  ;;  %v17299_v36 = vld [vmem:[#allocation35_spill] sm:$0xff] }
 0x21c   : > { %17297 = vst [vmem:[#allocation55_spill] sm:$0xff] %v14857_v39  ;;  %3670 = vrot.lane.b32.xlu0 %v14772_v38, %s13076_s23  ;;  %v14870_v20 = vpack.i.bf16 %v14744_v30, %v14691_v53  ;;  %v4001_v55 = vsel %vm3991_vm3, %v12042_v12, %v17013_v31  ;;  %v4737_v32 = vsel %vm4729_vm4, %v12017_v6, %v12056_v46  ;;  %v14883_v13 = vpop.permute.xlu1 %12079  ;;  %v17301_v53 = vld [vmem:[#allocation38_spill] sm:$0xff] }
 0x21d   : > { %v3998_v34 = vsel %vm3991_vm3, %v17298_v62, %v11977_v41  ;;  %v4000_v25 = vsel %vm3991_vm3, %v12041_v3, %v12042_v12  ;;  %12244 = vrot.lane.b32.xlu1 %v14857_v39, %s13078_s25  ;;  %v3999_v63 = vsel %vm3991_vm3, %v11977_v41, %v12041_v3  ;;  %v14881_v5 = vpop.permute.xlu0 %3351  ;;  %v17300_v62 = vld [vmem:[#allocation39_spill] sm:$0xff]  ;;  %v17302_v41 = vunpack.i.l.bf16 %v14554_v44 }
 0x21e   : > { %v11510_v26 = vpack.c.bf16 %v3999_v63, %v17299_v36  ;;  %v11526_v30 = vpack.c.bf16 %v4001_v55, %v17300_v62  ;;  %v11528_v10 = vpack.c.bf16 %v4000_v25, %v17301_v53  ;;  %v3424_v12 = vsel %vm3393_vm2, %v3350_v56, %v14881_v5 }
 0x21f   : > { %v4736_v3 = vsel %vm4729_vm4, %v17302_v41, %v12017_v6  ;;  %v14895_v31 = vpack.i.bf16 %v14787_v21, %v14752_v29  ;;  %v11512_v57 = vpack.c.bf16 %v3998_v34, %v17303_v58  ;;  %v12057_v39 = vunpack.i.h.bf16 %v14631_v0  ;;  %3527 = vst [vmem:[#allocation2 + $0xf0] sm:$0xff] %v3424_v12 }
 0x220   : > { %v12027_v63 = vunpack.i.h.bf16 %v14633_v42  ;;  %v17018_v55 = vunpack.i.l.bf16 %v14670_v16  ;;  %12249 = vrot.lane.b32.xlu0 %v14870_v20, %s13078_s25  ;;  %11511 = vmatprep.subr.bf16.mxu0 %v11510_v26  ;;  %v4368_v44 = vsel %vm4360_vm5, %v12012_v19, %v12051_v51  ;;  %v17304_v53 = vunpack.i.l.bf16 %v14506_v47  ;;  %v14919_v26 = vpop.permute.xlu1 %12084 }
 0x221   : > { %v17021_v6 = vunpack.i.l.bf16 %v14883_v13  ;;  %12254 = vrot.lane.b32.xlu1 %v14895_v31, %s13078_s25  ;;  %11527 = vmatprep.subr.bf16.mxu1 %v11526_v30  ;;  %v11514_v0 = vpack.c.bf16 %v4737_v32, %v4368_v44  ;;  %v14912_v34 = vpack.i.bf16 %v14790_v17, %v14780_v4  ;;  %v12940_v25 = vpop.eup %12939  ;;  %v12052_v58 = vunpack.i.h.bf16 %v14600_v15  ;;  %v17307_v44 = vld [vmem:[#allocation20_spill] sm:$0xff] }
 0x222   : > { %v4367_v56 = vsel %vm4360_vm5, %v17304_v53, %v12012_v19  ;;  %v12022_v36 = vunpack.i.h.bf16 %v14602_v24  ;;  %11513 = vmatpush1.bf16.msra.mxu0 %v11512_v57  ;;  %11529 = vmatpush1.bf16.msra.mxu1 %v11528_v10  ;;  %v14917_v19 = vpop.permute.xlu0 %12114  ;;  %v17305_v30 = vunpack.i.l.bf16 %v14707_v50  ;;  %v17024_v62 = vunpack.i.l.bf16 %v14919_v26 }
 0x223   : > { %11515 = vmatprep.subr.bf16.mxu0 %v11514_v0  ;;  %v14927_v15 = vpack.i.bf16 %v14814_v59, %v14806_v49  ;;  %v11516_v41 = vpack.c.bf16 %v4736_v3, %v4367_v56  ;;  %v14931_v57 = vpack.i.bf16 %v14820_v45, %v14811_v33  ;;  %v4738_v10 = vsel %vm4729_vm4, %v12056_v46, %v12057_v39 }
 0x224   : > { %v5474_v32 = vsel %vm5466_vm6, %v12027_v63, %v17305_v30  ;;  %v12037_v12 = vunpack.i.h.bf16 %v14709_v43  ;;  %12259 = vrot.lane.b32.xlu0 %v14912_v34, %s13078_s25  ;;  %v5105_v0 = vsel %vm3393_vm2, %v12022_v36, %v17018_v55  ;;  %v17308_v30 = vunpack.i.l.bf16 %v14633_v42  ;;  %v17309_v55 = vld [vmem:[#allocation65_spill] sm:$0xff] }
 0x225   : > { %17306 = vst [vmem:[#allocation46_spill] sm:$0xff] %v14931_v57  ;;  %12264 = vrot.lane.b32.xlu1 %v14927_v15, %s13078_s25  ;;  %v11518_v46 = vpack.c.bf16 %v5474_v32, %v5105_v0  ;;  %v4370_v56 = vsel %vm4360_vm5, %v12052_v58, %v17021_v6  ;;  %v4739_v53 = vsel %vm4729_vm4, %v12057_v39, %v17024_v62  ;;  %v12032_v45 = vunpack.i.h.bf16 %v17309_v55  ;;  %v17311_v6 = vld [vmem:[#allocation72_spill] sm:$0xff]  ;;  %v13061_v62 = vld [vmem:[%s13381_s22] sm:$0xff] }
 0x226   : > { %v5473_v3 = vsel %vm5466_vm6, %v17308_v30, %v12027_v63  ;;  %v4369_v47 = vsel %vm4360_vm5, %v12051_v51, %v12052_v58  ;;  %11517 = vmatpush1.bf16.msra.mxu0 %v11516_v41  ;;  %v14954_v42 = vpop.permute.xlu0 %12119  ;;  %v14956_v63 = vpop.permute.xlu1 %12089  ;;  %v11530_v30 = vpack.c.bf16 %v4739_v53, %v4370_v56  ;;  %v17310_v32 = vunpack.i.l.bf16 %v14761_v23  ;;  %v17315_v53 = vld [vmem:[#allocation5_spill] sm:$0xff] }
 0x227   : > { %v14963_v33 = vmul.f32 %v17311_v6, %v14846_v54  ;;  %v17313_v39 = vunpack.i.l.bf16 %v14602_v24  ;;  %11519 = vmatprep.subr.bf16.mxu0 %v11518_v46  ;;  %v14970_v58 = vpack.i.bf16 %v14833_v52, %v14823_v11  ;;  %v11532_v41 = vpack.c.bf16 %v4738_v10, %v4369_v47 }
 0x228   : > { %v6212_v0 = vsel %vm6204_vm7, %v12037_v12, %v17310_v32  ;;  %v3650_v56 = vrot.slane %v13061_v62, %v17315_v53  ;;  %v12067_v59 = vunpack.i.h.bf16 %v14707_v50  ;;  %12269 = vrot.lane.b32.xlu0 %v14931_v57, %s13078_s25  ;;  %11531 = vmatprep.subr.bf16.mxu1 %v11530_v30  ;;  %v17316_v24 = vunpack.i.l.bf16 %v17307_v44  ;;  %v17318_v30 = vld [vmem:[#allocation71_spill] sm:$0xff]  ;;  %v17320_v32 = vld [vmem:[#allocation73_spill] sm:$0xff] }
 0x229   : > { %17312 = vst [vmem:[#allocation49_spill] sm:$0xff] %v14963_v33  ;;  %v5104_v51 = vsel %vm3393_vm2, %v17313_v39, %v12022_v36  ;;  %17314 = vst [vmem:[#allocation56_spill] sm:$0xff] %v14970_v58  ;;  %v3637_v36 = vmul.f32 0.5, %v14772_v38  ;;  %v17317_v46 = vunpack.i.l.bf16 %v14709_v43  ;;  %v17029_v10 = vunpack.i.l.bf16 %v14956_v63  ;;  %12274 = vrot.lane.b32.xlu1 %v14970_v58, %s13078_s25  ;;  %11533 = vmatpush1.bf16.msra.mxu1 %v11532_v41 }
 0x22a   : > { %v11520_v54 = vpack.c.bf16 %v5473_v3, %v5104_v51  ;;  %v5843_v6 = vsel %vm5835_vm8, %v12032_v45, %v17316_v24  ;;  %v14989_v3 = vmul.f32 %v17318_v30, %v14844_v1  ;;  %v14993_v39 = vmul.f32 %v17320_v32, %v14851_v61  ;;  %v14996_v43 = vpop.permute.xlu0 %12124 }
 0x22b   : > { %v6211_v47 = vsel %vm6204_vm7, %v17317_v46, %v12037_v12  ;;  %v11522_v62 = vpack.c.bf16 %v6212_v0, %v5843_v6  ;;  %v12062_v38 = vunpack.i.h.bf16 %v14670_v16  ;;  %v14998_v12 = vpop.permute.xlu1 %12094  ;;  %v15002_v51 = vpack.i.bf16 %v14836_v60, %v14826_v22 }
 0x22c   : > { %17319 = vst [vmem:[#allocation80_spill] sm:$0xff] %v14989_v3  ;;  %17321 = vst [vmem:[#allocation57_spill] sm:$0xff] %v14993_v39  ;;  %11521 = vmatpush1.bf16.msra.mxu0 %v11520_v54  ;;  %v3643_v0 = vadd.f32 1.0, %v12940_v25  ;;  %v17323_v41 = vunpack.i.l.bf16 %v17309_v55  ;;  %v17030_v24 = vunpack.i.l.bf16 %v14998_v12  ;;  %v15010_v61 = vpack.i.bf16 %v14963_v33, %v14842_v2  ;;  %v17342_v2 = vld [vmem:[#allocation48_spill] sm:$0xff] }
 0x22d   : > { %17322 = vst [vmem:[#allocation11_spill] sm:$0xff] %v15002_v51  ;;  %11523 = vmatprep.subr.bf16.mxu0 %v11522_v62  ;;  %v17325_v54 = vunpack.i.l.bf16 %v14707_v50  ;;  %12279 = vrot.lane.b32.xlu0 %v15002_v51, %s13078_s25  ;;  %v17326_v25 = vunpack.i.l.bf16 %v14670_v16  ;;  %v15037_v32 = vpack.i.bf16 %v14993_v39, %v14989_v3  ;;  %v17339_v39 = vunpack.i.l.bf16 %v14552_v8 }
 0x22e   : > { %v5842_v1 = vsel %vm5835_vm8, %v17323_v41, %v12032_v45  ;;  %17324 = vst [vmem:[#allocation8_spill] sm:$0xff] %v15010_v61  ;;  %12284 = vrot.lane.b32.xlu1 %v15010_v61, %s13078_s25  ;;  %v5107_v45 = vsel %vm3393_vm2, %v12062_v38, %v17029_v10  ;;  %v5476_v55 = vsel %vm5466_vm6, %v12067_v59, %v17030_v24  ;;  %v15028_v62 = vpop.permute.xlu0 %12129  ;;  %v17343_v61 = vld [vmem:[#allocation47_spill] sm:$0xff]  ;;  %v12097_v52 = vunpack.i.h.bf16 %v14998_v12 }
 0x22f   : > { %v5475_v6 = vsel %vm5466_vm6, %v17325_v54, %v12067_v59  ;;  %v11524_v46 = vpack.c.bf16 %v6211_v47, %v5842_v1  ;;  %v5106_v50 = vsel %vm3393_vm2, %v17326_v25, %v12062_v38  ;;  %v15030_v30 = vpop.permute.xlu1 %12099  ;;  %v6581_v47 = vsel %vm6573_vm9, %v14735_v35, %v14794_v28  ;;  %17327 = vst [vmem:[#allocation29_spill] sm:$0xff] %v15037_v32  ;;  %v17329_v25 = vld [vmem:[#allocation7_spill] sm:$0xff] }
 0x230   : > { %v11534_v41 = vpack.c.bf16 %v5476_v55, %v5107_v45  ;;  %v3645_v1 = vmul.f32 %v3643_v0, %v3637_v36  ;;  %v3660_v59 = vrot.slane %v3650_v56, %v17315_v53  ;;  %v11536_v16 = vpack.c.bf16 %v5475_v6, %v5106_v50 }
 0x231   : > { %11525 = vmatpush1.bf16.msra.mxu0 %v11524_v46  ;;  %v12077_v38 = vunpack.i.h.bf16 %v14761_v23  ;;  %12289 = vrot.lane.b32.xlu0 %v15037_v32, %s13078_s25  ;;  %v17027_v54 = vunpack.i.l.bf16 %v15030_v30  ;;  %v17328_v46 = vld [vmem:[#allocation41_spill] sm:$0xff]  ;;  %v6580_v45 = vsel %vm6573_vm9, %v17329_v25, %v14735_v35  ;;  %v12072_v56 = vunpack.i.h.bf16 %v17307_v44  ;;  %v17332_v35 = vld [vmem:[#allocation15_spill] sm:$0xff] }
 0x232   : > { %7438 = vmatprep.subr.mxu0 %v6581_v47  ;;  %11535 = vmatprep.subr.bf16.mxu1 %v11534_v41  ;;  %v15050_v36 = vpop.permute.xlu0 %12134  ;;  %v15054_v6 = vmul.f32 %v3660_v59, %v3645_v1  ;;  %v17331_v50 = vunpack.i.l.bf16 %v14761_v23  ;;  %v17333_v23 = vunpack.i.l.bf16 %v17307_v44  ;;  %v6583_v44 = vsel %vm6573_vm9, %v14763_v37, %v14817_v7  ;;  %v17341_v32 = vld [vmem:[#allocation37_spill] sm:$0xff] }
 0x233   : > { %6493 = vrot.lane.b32.xlu1 %v17328_v46, %s13077_s24  ;;  %11537 = vmatpush1.bf16.msra.mxu1 %v11536_v16  ;;  %v15052_v0 = vpop.permute.xlu1 %12104  ;;  %v5845_v41 = vsel %vm5835_vm8, %v12072_v56, %v17027_v54  ;;  %v17335_v54 = vld [vmem:[#allocation9_spill] sm:$0xff]  ;;  %v12082_v53 = vunpack.i.h.bf16 %v14883_v13  ;;  %v17056_v11 = vunpack.i.l.bf16 %v15028_v62 }
 0x234   : > { %17330 = vst [vmem:[#allocation58_spill] sm:$0xff] %v15054_v6  ;;  %v17028_v55 = vunpack.i.l.bf16 %v15052_v0  ;;  %v6213_v47 = vsel %vm6204_vm7, %v17331_v50, %v12077_v38  ;;  %v5844_v59 = vsel %vm5835_vm8, %v17333_v23, %v12072_v56  ;;  %v17337_v23 = vld [vmem:[#allocation77_spill] sm:$0xff] }
 0x235   : > { %7439 = vmatpush1.msra.mxu0 %v6580_v45  ;;  %12294 = vrot.lane.b32.xlu0 %v17332_v35, %s13083_s10  ;;  %v11540_v50 = vpack.c.bf16 %v6213_v47, %v5844_v59  ;;  %v17334_v35 = vld [vmem:[#allocation42_spill] sm:$0xff] }
 0x236   : > { %11411 = vmatmul.mubr.msk.f32.vlgmr.msra.gmra.mrb[30].mxu0 %vm7205_vm10, %v14534_v14  ;;  %v6214_v1 = vsel %vm6204_vm7, %v12077_v38, %v17028_v55  ;;  %v15076_v16 = vpop.permute.xlu0 %12139  ;;  %v17336_v47 = vld [vmem:[#allocation74_spill] sm:$0xff] }
 0x237   : > { %7628 = vmatprep.mubr.f32.mxu0 %v17235_v18  ;;  %3989 = vrot.lane.b32.xlu1 %v15054_v6, %s13078_s25  ;;  %v15078_v25 = vpop.permute.xlu1 %6489  ;;  %v11538_v45 = vpack.c.bf16 %v6214_v1, %v5845_v41  ;;  %v6582_v1 = vsel %vm6573_vm9, %v14794_v28, %v14763_v37  ;;  %v12087_v28 = vunpack.i.h.bf16 %v14919_v26  ;;  %v12121_v6 = vunpack.i.l.bf16 %v14954_v42  ;;  %s11326_s25 = sshll.u32 %s17442_s29, 2 }
 0x239   : > { %6495 = vrot.lane.b32.xlu0 %v17334_v35, %s13077_s24  ;;  %11539 = vmatprep.subr.bf16.mxu1 %v11538_v45 }
 0x23a   : > { %11541 = vmatpush1.bf16.msra.mxu1 %v11540_v50  ;;  %v15087_v38 = vpop.permute.xlu0 %12144  ;;  %v17338_v50 = vld [vmem:[#allocation52_spill] sm:$0xff] }
 0x23b   : > { %6497 = vrot.lane.b32.xlu1 %v17335_v54, %s13077_s24  ;;  %v3354_v56 = vpop.permute.xlu1 %3353  ;;  %7509 = vmatprep.subr.mxu1 %v6583_v44  ;;  %v12126_v44 = vunpack.i.l.bf16 %v14996_v43 }
 0x23c   : > { %v3425_v41 = vsel %vm3393_vm2, %v14881_v5, %v3354_v56  ;;  %v12047_v5 = vunpack.i.h.bf16 %v14552_v8  ;;  %v17340_v8 = vunpack.i.l.bf16 %v14917_v19 }
 0x23d   : > { %3528 = vst [vmem:[#allocation2 + $0xf8] sm:$0xff] %v3425_v41  ;;  %6499 = vrot.lane.b32.xlu0 %v17336_v47, %s13077_s24 }
 0x23e   : > { %7510 = vmatpush1.msra.mxu1 %v6582_v1  ;;  %v15098_v59 = vpop.permute.xlu0 %6491  ;;  %v4002_v3 = vsel %vm3991_vm3, %v17339_v39, %v12047_v5 }
 0x23f   : > { %12299 = vrot.lane.b32.xlu1 %v17337_v23, %s13079_s26  ;;  %v3358_v45 = vpop.permute.xlu1 %3357  ;;  %11412 = vmatmul.mubr.msk.f32.vlgmr.msra.gmra.mrb[30].mxu1 %vm7205_vm10, %v14534_v14 }
 0x240   : > { %7699 = vmatprep.mubr.f32.mxu1 %v17235_v18 }
 0x241   : > { %12304 = vrot.lane.b32.xlu0 %v17338_v50, %s13079_s26 }
 0x242   : > { %v3356_v41 = vpop.permute.xlu0 %3355 }
 0x243   : > { %12309 = vrot.lane.b32.xlu1 %v17337_v23, %s13081_s30  ;;  %v12110_v1 = vpop.permute.xlu1 %12109  ;;  %v3426_v14 = vsel %vm3393_vm2, %v3354_v56, %v3356_v41  ;;  %v3427_v55 = vsel %vm3393_vm2, %v3356_v41, %v3358_v45  ;;  %v4741_v41 = vsel %vm4729_vm4, %v12087_v28, %v12126_v44 }
 0x244   : > { %v12112_v10 = vunpack.i.h.bf16 %v12110_v1  ;;  %v12111_v24 = vunpack.i.l.bf16 %v12110_v1  ;;  %3529 = vst [vmem:[#allocation2 + $0x100] sm:$0xff] %v3426_v14  ;;  %3530 = vst [vmem:[#allocation2 + $0x108] sm:$0xff] %v3427_v55  ;;  %v12127_v1 = vunpack.i.h.bf16 %v14996_v43  ;;  %v12122_v43 = vunpack.i.h.bf16 %v14954_v42 }
 0x245   : > { %12314 = vrot.lane.b32.xlu0 %v17338_v50, %s13081_s30 }
 0x246   : > { %v4004_v37 = vsel %vm3991_vm3, %v12111_v24, %v12112_v10  ;;  %v4003_v56 = vsel %vm3991_vm3, %v12047_v5, %v12111_v24  ;;  %v4005_v39 = vsel %vm3991_vm3, %v12112_v10, %v17340_v8  ;;  %v15129_v14 = vpop.permute.xlu0 %3359  ;;  %v17344_v24 = vunpack.i.l.bf16 %v14919_v26  ;;  %v17345_v8 = vld [vmem:[#allocation36_spill] sm:$0xff] }
 0x247   : > { %12319 = vrot.lane.b32.xlu1 %v17337_v23, %s13076_s23  ;;  %v15131_v55 = vpop.permute.xlu1 %12149  ;;  %v11542_v33 = vpack.c.bf16 %v4003_v56, %v17341_v32  ;;  %v11558_v60 = vpack.c.bf16 %v4005_v39, %v17342_v2  ;;  %v11560_v51 = vpack.c.bf16 %v4004_v37, %v17343_v61  ;;  %v3428_v10 = vsel %vm3393_vm2, %v3358_v45, %v15129_v14  ;;  %v17349_v56 = vld [vmem:[#allocation76_spill] sm:$0xff] }
 0x248   : > { %v4740_v5 = vsel %vm4729_vm4, %v17344_v24, %v12087_v28  ;;  %v11544_v22 = vpack.c.bf16 %v4002_v3, %v17345_v8  ;;  %3531 = vst [vmem:[#allocation2 + $0x110] sm:$0xff] %v3428_v10  ;;  %v4372_v2 = vsel %vm4360_vm5, %v12082_v53, %v12121_v6  ;;  %v17346_v26 = vunpack.i.l.bf16 %v14883_v13  ;;  %v17351_v24 = vld [vmem:[#allocation12_spill] sm:$0xff] }
 0x249   : > { %12324 = vrot.lane.b32.xlu0 %v17338_v50, %s13076_s23  ;;  %11543 = vmatprep.subr.bf16.mxu0 %v11542_v33  ;;  %v17064_v32 = vunpack.i.l.bf16 %v15131_v55  ;;  %v11546_v3 = vpack.c.bf16 %v4741_v41, %v4372_v2  ;;  %v12092_v45 = vunpack.i.h.bf16 %v14956_v63  ;;  %v12146_v37 = vunpack.i.l.bf16 %v15087_v38  ;;  %v17350_v41 = vld [vmem:[#allocation78_spill] sm:$0xff] }
 0x24a   : > { %v4371_v61 = vsel %vm4360_vm5, %v17346_v26, %v12082_v53  ;;  %11559 = vmatprep.subr.bf16.mxu1 %v11558_v60  ;;  %11545 = vmatpush1.bf16.msra.mxu0 %v11544_v22  ;;  %v15157_v33 = vpop.permute.xlu0 %12184  ;;  %v17347_v53 = vunpack.i.l.bf16 %v15050_v36  ;;  %v17348_v60 = vld [vmem:[#allocation75_spill] sm:$0xff]  ;;  %v12343_v10 = vpack.i.bf16 %v17351_v24, %v17350_v41  ;;  %v4742_v22 = vsel %vm4729_vm4, %v12126_v44, %v12127_v1 }
 0x24b   : > { %12329 = vrot.lane.b32.xlu1 %v17337_v23, %s13080_s28  ;;  %11561 = vmatpush1.bf16.msra.mxu1 %v11560_v51  ;;  %v15159_v13 = vpop.permute.xlu1 %12154  ;;  %v12338_v42 = vpack.i.bf16 %v17349_v56, %v17348_v60  ;;  %v11548_v39 = vpack.c.bf16 %v4740_v5, %v4371_v61  ;;  %v12107_v51 = vunpack.i.h.bf16 %v15052_v0  ;;  %v12141_v8 = vunpack.i.l.bf16 %v15076_v16 }
 0x24c   : > { %v5478_v28 = vsel %vm5466_vm6, %v12097_v52, %v17347_v53  ;;  %v17067_v23 = vunpack.i.l.bf16 %v15159_v13  ;;  %11547 = vmatprep.subr.bf16.mxu0 %v11546_v3  ;;  %v5109_v2 = vsel %vm3393_vm2, %v12092_v45, %v17056_v11  ;;  %v17352_v26 = vunpack.i.l.bf16 %v14998_v12 }
 0x24d   : > { %12334 = vrot.lane.b32.xlu0 %v17338_v50, %s13080_s28  ;;  %v11550_v61 = vpack.c.bf16 %v5478_v28, %v5109_v2  ;;  %v4374_v44 = vsel %vm4360_vm5, %v12122_v43, %v17064_v32  ;;  %v4373_v50 = vsel %vm4360_vm5, %v12121_v6, %v12122_v43  ;;  %v12102_v53 = vunpack.i.h.bf16 %v15030_v30 }
 0x24e   : > { %v5477_v5 = vsel %vm5466_vm6, %v17352_v26, %v12097_v52  ;;  %v4743_v3 = vsel %vm4729_vm4, %v12127_v1, %v17067_v23  ;;  %11549 = vmatpush1.bf16.msra.mxu0 %v11548_v39  ;;  %v15189_v11 = vpop.permute.xlu0 %12189  ;;  %v6216_v28 = vsel %vm6204_vm7, %v12107_v51, %v12146_v37  ;;  %v17353_v2 = vunpack.i.l.bf16 %v14956_v63 }
 0x24f   : > { %12339 = vrot.lane.b32.xlu1 %v12338_v42, %s13082_s9  ;;  %v15191_v12 = vpop.permute.xlu1 %12159  ;;  %v11562_v52 = vpack.c.bf16 %v4743_v3, %v4374_v44  ;;  %11551 = vmatprep.subr.bf16.mxu0 %v11550_v61  ;;  %v11564_v1 = vpack.c.bf16 %v4742_v22, %v4373_v50  ;;  %v12137_v6 = vunpack.i.h.bf16 %v15050_v36  ;;  %v17354_v43 = vunpack.i.l.bf16 %v15052_v0 }
 0x250   : > { %v5108_v26 = vsel %vm3393_vm2, %v17353_v2, %v12092_v45  ;;  %v5847_v3 = vsel %vm5835_vm8, %v12102_v53, %v12141_v8  ;;  %v17058_v63 = vunpack.i.h.bf16 %v15189_v11  ;;  %v17069_v45 = vunpack.i.l.bf16 %v15189_v11 }
 0x251   : > { %v6215_v39 = vsel %vm6204_vm7, %v17354_v43, %v12107_v51  ;;  %12344 = vrot.lane.b32.xlu0 %v12343_v10, %s13082_s9  ;;  %11563 = vmatprep.subr.bf16.mxu1 %v11562_v52  ;;  %v11552_v44 = vpack.c.bf16 %v5477_v5, %v5108_v26  ;;  %v17059_v22 = vunpack.i.l.bf16 %v15191_v12  ;;  %v11554_v0 = vpack.c.bf16 %v6216_v28, %v5847_v3 }
 0x252   : > { %11565 = vmatpush1.bf16.msra.mxu1 %v11564_v1  ;;  %v12132_v51 = vunpack.i.h.bf16 %v15028_v62  ;;  %v15212_v61 = vpop.permute.xlu0 %12194  ;;  %v17355_v50 = vunpack.i.l.bf16 %v15030_v30  ;;  %v15231_v30 = vsel %vm4360_vm5, %v17069_v45, %v17058_v63  ;;  %v12147_v63 = vunpack.i.h.bf16 %v15087_v38 }
 0x253   : > { %12349 = vrot.lane.b32.xlu1 %v12338_v42, %s13083_s10  ;;  %11553 = vmatpush1.bf16.msra.mxu0 %v11552_v44  ;;  %v15214_v5 = vpop.permute.xlu1 %12164  ;;  %v17057_v2 = vunpack.i.h.bf16 %v15212_v61  ;;  %v12196_v26 = vunpack.i.l.bf16 %v15212_v61  ;;  %v17356_v42 = vunpack.i.l.bf16 %v15050_v36  ;;  %v17357_v36 = vld [vmem:[#allocation10_spill] sm:$0xff]  ;;  %v17358_v44 = vunpack.i.l.bf16 %v15028_v62 }
 0x254   : > { %v5846_v52 = vsel %vm5835_vm8, %v17355_v50, %v12102_v53  ;;  %v17062_v43 = vunpack.i.l.bf16 %v15214_v5  ;;  %11555 = vmatprep.subr.bf16.mxu0 %v11554_v0  ;;  %v17364_v58 = vunpack.i.l.bf16 %v15189_v11  ;;  %v17371_v49 = vunpack.i.l.bf16 %v15214_v5 }
 0x255   : > { %v5479_v28 = vsel %vm5466_vm6, %v17356_v42, %v12137_v6  ;;  %12354 = vrot.lane.b32.xlu0 %v12343_v10, %s13083_s10  ;;  %v11556_v1 = vpack.c.bf16 %v6215_v39, %v5846_v52  ;;  %v15238_v53 = vsel %vm4729_vm4, %v12196_v26, %v17057_v2  ;;  %v5111_v10 = vsel %vm3393_vm2, %v12132_v51, %v17059_v22 }
 0x256   : > { %v5480_v39 = vsel %vm5466_vm6, %v12137_v6, %v17062_v43  ;;  %v5110_v3 = vsel %vm3393_vm2, %v17358_v44, %v12132_v51  ;;  %v15251_v0 = vpop.permute.xlu0 %12199  ;;  %v6585_v52 = vsel %vm6573_vm9, %v15078_v25, %v15098_v59 }
 0x257   : > { %6501 = vrot.lane.b32.xlu1 %v17357_v36, %s13077_s24  ;;  %11557 = vmatpush1.bf16.msra.mxu0 %v11556_v1  ;;  %v15253_v50 = vpop.permute.xlu1 %12169  ;;  %v11566_v42 = vpack.c.bf16 %v5480_v39, %v5111_v10  ;;  %v11568_v6 = vpack.c.bf16 %v5479_v28, %v5110_v3  ;;  %v17060_v62 = vunpack.i.h.bf16 %v15251_v0  ;;  %v17063_v51 = vunpack.i.l.bf16 %v15251_v0 }
 0x258   : > { %7580 = vmatprep.subr.mxu0 %v6585_v52  ;;  %v17061_v1 = vunpack.i.h.bf16 %v15253_v50  ;;  %v12171_v44 = vunpack.i.l.bf16 %v15253_v50  ;;  %v6584_v10 = vsel %vm6573_vm9, %v14817_v7, %v15078_v25  ;;  %v12142_v28 = vunpack.i.h.bf16 %v15076_v16  ;;  %v15284_v7 = vld [vmem:[%s16921_s4] sm:$0xff] }
 0x259   : > { %6503 = vrot.lane.b32.xlu0 %v17348_v60, %s13077_s24  ;;  %11567 = vmatprep.subr.bf16.mxu1 %v11566_v42  ;;  %v6217_v25 = vsel %vm6204_vm7, %v12146_v37, %v12147_v63 }
 0x25a   : > { %11569 = vmatpush1.bf16.msra.mxu1 %v11568_v6  ;;  %v15273_v39 = vpop.permute.xlu0 %12204  ;;  %v15296_v6 = vsel %vm3393_vm2, %v17063_v51, %v17060_v62  ;;  %v17359_v62 = vld [vmem:[#allocation17_spill] sm:$0xff]  ;;  %v5848_v51 = vsel %vm5835_vm8, %v12141_v8, %v12142_v28 }
 0x25b   : > { %6505 = vrot.lane.b32.xlu1 %v17349_v56, %s13077_s24  ;;  %7581 = vmatpush1.msra.mxu0 %v6584_v10  ;;  %v15275_v3 = vpop.permute.xlu1 %12174  ;;  %v17065_v52 = vunpack.i.h.bf16 %v15273_v39  ;;  %v17066_v2 = vunpack.i.l.bf16 %v15273_v39  ;;  %v15301_v10 = vsel %vm5835_vm8, %v12171_v44, %v17061_v1  ;;  %v5849_v1 = vsel %vm5835_vm8, %v12142_v28, %v12171_v44 }
 0x25c   : > { %v17068_v42 = vunpack.i.h.bf16 %v15275_v3  ;;  %v12176_v22 = vunpack.i.l.bf16 %v15275_v3  ;;  %11413 = vmatmul.mubr.msk.f32.vlgmr.msra.gmra.mrb[32].mxu0 %vm7205_vm10, %v15284_v7  ;;  %v11572_v44 = vpack.c.bf16 %v6217_v25, %v5848_v51 }
 0x25d   : > { %6507 = vrot.lane.b32.xlu0 %v17350_v41, %s13077_s24  ;;  %7770 = vmatprep.mubr.f32.mxu0 %v17235_v18  ;;  %v15311_v38 = vsel %vm5466_vm6, %v17066_v2, %v17065_v52 }
 0x25e   : > { %v15316_v37 = vsel %vm6204_vm7, %v12176_v22, %v17068_v42  ;;  %v6218_v43 = vsel %vm6204_vm7, %v12147_v63, %v12176_v22  ;;  %v15325_v32 = vpop.permute.xlu0 %12209  ;;  %v17360_v63 = vld [vmem:[#allocation31_spill] sm:$0xff]  ;;  %v17363_v42 = vld [vmem:[#allocation13_spill] sm:$0xff] }
 0x25f   : > { %12359 = vrot.lane.b32.xlu1 %v17359_v62, %s13079_s26  ;;  %v3362_v52 = vpop.permute.xlu1 %3361  ;;  %v11570_v2 = vpack.c.bf16 %v6218_v43, %v5849_v1  ;;  %v12117_v1 = vunpack.i.h.bf16 %v14917_v19 }
 0x260   : > { %v3429_v45 = vsel %vm3393_vm2, %v15129_v14, %v3362_v52 }
 0x261   : > { %3532 = vst [vmem:[#allocation2 + $0x118] sm:$0xff] %v3429_v45  ;;  %12364 = vrot.lane.b32.xlu0 %v17360_v63, %s13079_s26  ;;  %11571 = vmatprep.subr.bf16.mxu1 %v11570_v2  ;;  %v12157_v2 = vunpack.i.h.bf16 %v15159_v13 }
 0x262   : > { %11573 = vmatpush1.bf16.msra.mxu1 %v11572_v44  ;;  %v3364_v16 = vpop.permute.xlu0 %3363  ;;  %v12152_v44 = vunpack.i.h.bf16 %v15131_v55 }
 0x263   : > { %12369 = vrot.lane.b32.xlu1 %v17359_v62, %s13081_s30  ;;  %v3366_v8 = vpop.permute.xlu1 %3365  ;;  %v3430_v22 = vsel %vm3393_vm2, %v3362_v52, %v3364_v16  ;;  %v17361_v52 = vunpack.i.l.bf16 %v14917_v19 }
 0x264   : > { %v3431_v43 = vsel %vm3393_vm2, %v3364_v16, %v3366_v8  ;;  %3533 = vst [vmem:[#allocation2 + $0x120] sm:$0xff] %v3430_v22 }
 0x265   : > { %3534 = vst [vmem:[#allocation2 + $0x128] sm:$0xff] %v3431_v43  ;;  %12374 = vrot.lane.b32.xlu0 %v17360_v63, %s13081_s30  ;;  %v4006_v25 = vsel %vm3991_vm3, %v17361_v52, %v12117_v1  ;;  %v12167_v43 = vunpack.i.h.bf16 %v15214_v5  ;;  %v17362_v52 = vld [vmem:[#allocation79_spill] sm:$0xff] }
 0x266   : > { %v3368_v14 = vpop.permute.xlu0 %3367  ;;  %v12398_v23 = vpack.i.bf16 %v17363_v42, %v17362_v52 }
 0x267   : > { %12379 = vrot.lane.b32.xlu1 %v17359_v62, %s13076_s23  ;;  %v15344_v45 = vpop.permute.xlu1 %12179  ;;  %v3432_v51 = vsel %vm3393_vm2, %v3366_v8, %v3368_v14  ;;  %v4745_v8 = vsel %vm4729_vm4, %v12157_v2, %v12196_v26 }
 0x268   : > { %v17072_v28 = vunpack.i.l.bf16 %v15344_v45  ;;  %3535 = vst [vmem:[#allocation2 + $0x130] sm:$0xff] %v3432_v51 }
 0x269   : > { %12384 = vrot.lane.b32.xlu0 %v17360_v63, %s13076_s23 }
 0x26a   : > { %v4007_v16 = vsel %vm3991_vm3, %v12117_v1, %v17072_v28  ;;  %v15363_v19 = vpop.permute.xlu0 %12219  ;;  %v4376_v1 = vsel %vm4360_vm5, %v12152_v44, %v17364_v58  ;;  %v17365_v28 = vunpack.i.l.bf16 %v15159_v13  ;;  %v17367_v13 = vunpack.i.l.bf16 %v15131_v55 }
 0x26b   : > { %12389 = vrot.lane.b32.xlu1 %v17359_v62, %s13080_s28  ;;  %v11574_v22 = vpack.c.bf16 %v4007_v16, %v17334_v35  ;;  %v3370_v51 = vpop.permute.xlu1 %3369  ;;  %v11576_v62 = vpack.c.bf16 %v4006_v25, %v17328_v46  ;;  %v11578_v35 = vpack.c.bf16 %v4745_v8, %v4376_v1  ;;  %v12162_v16 = vunpack.i.h.bf16 %v15191_v12 }
 0x26c   : > { %v4744_v26 = vsel %vm4729_vm4, %v17365_v28, %v12157_v2  ;;  %v3433_v57 = vsel %vm3393_vm2, %v3368_v14, %v3370_v51  ;;  %v17366_v46 = vunpack.i.l.bf16 %v15273_v39  ;;  %v4375_v2 = vsel %vm4360_vm5, %v17367_v13, %v12152_v44  ;;  %v17368_v28 = vld [vmem:[#allocation14_spill] sm:$0xff] }
 0x26d   : > { %12394 = vrot.lane.b32.xlu0 %v17360_v63, %s13080_s28  ;;  %11575 = vmatprep.subr.bf16.mxu0 %v11574_v22  ;;  %3536 = vst [vmem:[#allocation2 + $0x138] sm:$0xff] %v3433_v57  ;;  %v17369_v63 = vld [vmem:[#allocation44_spill] sm:$0xff]  ;;  %v11580_v57 = vpack.c.bf16 %v4744_v26, %v4375_v2  ;;  %v17370_v1 = vunpack.i.l.bf16 %v15251_v0 }
 0x26e   : > { %11577 = vmatpush1.bf16.msra.mxu0 %v11576_v62  ;;  %v5482_v58 = vsel %vm5466_vm6, %v12167_v43, %v17366_v46  ;;  %v3372_v14 = vpop.permute.xlu0 %3371  ;;  %v12403_v25 = vpack.i.bf16 %v17369_v63, %v17368_v28  ;;  %v5481_v46 = vsel %vm5466_vm6, %v17371_v49, %v12167_v43 }
 0x26f   : > { %12399 = vrot.lane.b32.xlu1 %v12398_v23, %s13082_s9  ;;  %11579 = vmatprep.subr.bf16.mxu0 %v11578_v35  ;;  %v3434_v8 = vsel %vm3393_vm2, %v3370_v51, %v3372_v14  ;;  %v3374_v22 = vpop.permute.xlu1 %3373  ;;  %v5113_v62 = vsel %vm3393_vm2, %v12162_v16, %v17370_v1  ;;  %v17372_v51 = vunpack.i.l.bf16 %v15191_v12 }
 0x270   : > { %3537 = vst [vmem:[#allocation2 + $0x140] sm:$0xff] %v3434_v8  ;;  %v3435_v55 = vsel %vm3393_vm2, %v3372_v14, %v3374_v22  ;;  %v11582_v44 = vpack.c.bf16 %v5482_v58, %v5113_v62 }
 0x271   : > { %12404 = vrot.lane.b32.xlu0 %v12403_v25, %s13082_s9  ;;  %3538 = vst [vmem:[#allocation2 + $0x148] sm:$0xff] %v3435_v55  ;;  %v5112_v26 = vsel %vm3393_vm2, %v17372_v51, %v12162_v16 }
 0x272   : > { %11581 = vmatpush1.bf16.msra.mxu0 %v11580_v57  ;;  %v3376_v35 = vpop.permute.xlu0 %3375  ;;  %v11584_v49 = vpack.c.bf16 %v5481_v46, %v5112_v26 }
 0x273   : > { %12409 = vrot.lane.b32.xlu1 %v12398_v23, %s13083_s10  ;;  %11583 = vmatprep.subr.bf16.mxu0 %v11582_v44  ;;  %v3436_v5 = vsel %vm3393_vm2, %v3374_v22, %v3376_v35  ;;  %v15403_v13 = vpop.permute.xlu1 %12214 }
 0x274   : > { %3539 = vst [vmem:[#allocation2 + $0x150] sm:$0xff] %v3436_v5 }
 0x275   : > { %12414 = vrot.lane.b32.xlu0 %v12403_v25, %s13083_s10  ;;  %v17373_v25 = vld [vmem:[#allocation40_spill] sm:$0xff] }
 0x276   : > { %11585 = vmatpush1.bf16.msra.mxu0 %v11584_v49  ;;  %v15408_v23 = vpop.permute.xlu0 %12229 }
 0x277   : > { %6509 = vrot.lane.b32.xlu1 %v17351_v24, %s13077_s24  ;;  %v3378_v43 = vpop.permute.xlu1 %3377 }
 0x278   : > { %v3437_v12 = vsel %vm3393_vm2, %v3376_v35, %v3378_v43 }
 0x279   : > { %6511 = vrot.lane.b32.xlu0 %v17362_v52, %s13077_s24  ;;  %3540 = vst [vmem:[#allocation2 + $0x158] sm:$0xff] %v3437_v12 }
 0x27a   : > { %v3380_v16 = vpop.permute.xlu0 %3379 }
 0x27b   : > { %6513 = vrot.lane.b32.xlu1 %v17363_v42, %s13077_s24  ;;  %v3438_v58 = vsel %vm3393_vm2, %v3378_v43, %v3380_v16  ;;  %v3382_v2 = vpop.permute.xlu1 %3381  ;;  %v17374_v43 = vld [vmem:[#allocation45_spill] sm:$0xff] }
 0x27c   : > { %3541 = vst [vmem:[#allocation2 + $0x160] sm:$0xff] %v3438_v58  ;;  %v3439_v14 = vsel %vm3393_vm2, %v3380_v16, %v3382_v2  ;;  %v12458_v12 = vpack.i.bf16 %v17290_v40, %v17374_v43  ;;  %v12463_v58 = vpack.i.bf16 %v17271_v27, %v14474_v9 }
 0x27d   : > { %6515 = vrot.lane.b32.xlu0 %v17368_v28, %s13077_s24  ;;  %3542 = vst [vmem:[#allocation2 + $0x168] sm:$0xff] %v3439_v14 }
 0x27e   : > { %v3384_v8 = vpop.permute.xlu0 %3383 }
 0x27f   : > { %12419 = vrot.lane.b32.xlu1 %v17373_v25, %s13079_s26  ;;  %v3440_v22 = vsel %vm3393_vm2, %v3382_v2, %v3384_v8  ;;  %v15422_v57 = vpop.permute.xlu1 %12224 }
 0x280   : > { %3543 = vst [vmem:[#allocation2 + $0x170] sm:$0xff] %v3440_v22 }
 0x281   : > { %12424 = vrot.lane.b32.xlu0 %v14830_v48, %s13079_s26 }
 0x282   : > { %v15428_v1 = vpop.permute.xlu0 %12239 }
 0x283   : > { %12429 = vrot.lane.b32.xlu1 %v17373_v25, %s13081_s30  ;;  %v3386_v62 = vpop.permute.xlu1 %3385 }
 0x284   : > { %v3441_v46 = vsel %vm3393_vm2, %v3384_v8, %v3386_v62 }
 0x285   : > { %12434 = vrot.lane.b32.xlu0 %v14830_v48, %s13081_s30  ;;  %3544 = vst [vmem:[#allocation2 + $0x178] sm:$0xff] %v3441_v46  ;;  %v17382_v46 = vld [vmem:[#allocation22_spill] sm:$0xff] }
 0x286   : > { %v3388_v55 = vpop.permute.xlu0 %3387 }
 0x287   : > { %12439 = vrot.lane.b32.xlu1 %v17373_v25, %s13076_s23  ;;  %v3442_v44 = vsel %vm3393_vm2, %v3386_v62, %v3388_v55  ;;  %v3390_v51 = vpop.permute.xlu1 %3389 }
 0x288   : > { %3545 = vst [vmem:[#allocation2 + $0x180] sm:$0xff] %v3442_v44  ;;  %v3443_v26 = vsel %vm3393_vm2, %v3388_v55, %v3390_v51 }
 0x289   : > { %12444 = vrot.lane.b32.xlu0 %v14830_v48, %s13076_s23  ;;  %3546 = vst [vmem:[#allocation2 + $0x188] sm:$0xff] %v3443_v26 }
 0x28a   : > { %v3392_v35 = vpop.permute.xlu0 %3391 }
 0x28b   : > { %12449 = vrot.lane.b32.xlu1 %v17373_v25, %s13080_s28  ;;  %v3444_v5 = vsel %vm3393_vm2, %v3390_v51, %v3392_v35  ;;  %3548 = vst.msk [vmem:[#allocation2 + $0x198] sm:$0xff] %vm3393_vm2, %v3392_v35  ;;  %v15443_v49 = vpop.permute.xlu1 %12234  ;;  %v17385_v51 = vld [vmem:[#allocation55_spill] sm:$0xff] }
 0x28c   : > { %3547 = vst [vmem:[#allocation2 + $0x190] sm:$0xff] %v3444_v5  ;;  %v17088_v5 = vunpack.i.l.bf16 %v15325_v32 }
 0x28d   : > { %12454 = vrot.lane.b32.xlu0 %v14830_v48, %s13080_s28 }
 0x28e   : > { %v3671_v16 = vpop.permute.xlu0 %3670 }
 0x28f   : > { %12459 = vrot.lane.b32.xlu1 %v12458_v12, %s13082_s9  ;;  %3674 = vst.msk [vmem:[#allocation2 + $0x198] sm:$0xff] %vm3673_vm11, %v3671_v16  ;;  %v15452_v2 = vpop.permute.xlu1 %12244 }
 0x290   : > { %17375 = vst [vmem:[#allocation59_spill] sm:$0xff] %v15452_v2 }
 0x291   : > { %12464 = vrot.lane.b32.xlu0 %v12463_v58, %s13082_s9 }
 0x292   : > { %v15456_v14 = vpop.permute.xlu0 %12249 }
 0x293   : > { %12469 = vrot.lane.b32.xlu1 %v12458_v12, %s13083_s10  ;;  %17376 = vst [vmem:[#allocation60_spill] sm:$0xff] %v15456_v14  ;;  %v15458_v25 = vpop.permute.xlu1 %12254  ;;  %v12182_v12 = vunpack.i.h.bf16 %v15344_v45 }
 0x294   : > { %17377 = vst [vmem:[#allocation61_spill] sm:$0xff] %v15458_v25 }
 0x295   : > { %12474 = vrot.lane.b32.xlu0 %v12463_v58, %s13083_s10 }
 0x296   : > { %v15463_v48 = vpop.permute.xlu0 %12259 }
 0x297   : > { %6517 = vrot.lane.b32.xlu1 %v17369_v63, %s13077_s24  ;;  %17378 = vst [vmem:[#allocation62_spill] sm:$0xff] %v15463_v48  ;;  %v15465_v8 = vpop.permute.xlu1 %12264 }
 0x298   : > { %17379 = vst [vmem:[#allocation63_spill] sm:$0xff] %v15465_v8  ;;  %v12216_v8 = vunpack.i.l.bf16 %v15403_v13 }
 0x299   : > { %6519 = vrot.lane.b32.xlu0 %v17374_v43, %s13077_s24 }
 0x29a   : > { %v15471_v22 = vpop.permute.xlu0 %12269 }
 0x29b   : > { %6521 = vrot.lane.b32.xlu1 %v17290_v40, %s13077_s24  ;;  %17380 = vst [vmem:[#allocation64_spill] sm:$0xff] %v15471_v22  ;;  %v15473_v62 = vpop.permute.xlu1 %12274  ;;  %v17389_v22 = vunpack.i.h.bf16 %v15275_v3  ;;  %v17390_v40 = vunpack.i.l.bf16 %v15344_v45 }
 0x29c   : > { %17381 = vst [vmem:[#allocation66_spill] sm:$0xff] %v15473_v62 }
 0x29d   : > { %6523 = vrot.lane.b32.xlu0 %v14474_v9, %s13077_s24 }
 0x29f   : > { %12479 = vrot.lane.b32.xlu1 %v17382_v46, %s13079_s26  ;;  %v15479_v55 = vpop.permute.xlu0 %12279 }
 0x2a0   : > { %17383 = vst [vmem:[#allocation67_spill] sm:$0xff] %v15479_v55  ;;  %v15481_v44 = vpop.permute.xlu1 %12284  ;;  %v12186_v55 = vunpack.i.l.bf16 %v15157_v33 }
 0x2a1   : > { %17384 = vst [vmem:[#allocation68_spill] sm:$0xff] %v15481_v44  ;;  %12484 = vrot.lane.b32.xlu0 %v17385_v51, %s13079_s26 }
 0x2a2   : > { %v4009_v14 = vsel %vm3991_vm3, %v12182_v12, %v12186_v55 }
 0x2a3   : > { %12489 = vrot.lane.b32.xlu1 %v17382_v46, %s13081_s30  ;;  %v15487_v26 = vpop.permute.xlu0 %12289  ;;  %v11590_v45 = vpack.c.bf16 %v4009_v14, %v17336_v47 }
 0x2a4   : > { %17386 = vst [vmem:[#allocation69_spill] sm:$0xff] %v15487_v26  ;;  %v17388_v26 = vunpack.i.h.bf16 %v15253_v50  ;;  %v4008_v50 = vsel %vm3991_vm3, %v17390_v40, %v12182_v12  ;;  %v17393_v40 = vpack.c.bf16 %v15316_v37, %v15301_v10 }
 0x2a5   : > { %v6494_v35 = vpop.permute.xlu1 %6493  ;;  %12494 = vrot.lane.b32.xlu0 %v17385_v51, %s13081_s30 }
 0x2a6   : > { %v5851_v62 = vsel %vm5835_vm8, %v17388_v26, %v17088_v5  ;;  %v17391_v26 = vld [vmem:[#allocation51_spill] sm:$0xff]  ;;  %v17392_v5 = vld [vmem:[#allocation18_spill] sm:$0xff] }
 0x2a7   : > { %12499 = vrot.lane.b32.xlu1 %v17382_v46, %s13076_s23  ;;  %v15495_v16 = vpop.permute.xlu0 %12294  ;;  %v12518_v2 = vpack.i.bf16 %v17392_v5, %v17391_v26 }
 0x2a8   : > { %v12296_v58 = vunpack.i.l.bf16 %v15495_v16 }
 0x2a9   : > { %v15498_v44 = vpop.permute.xlu1 %3989  ;;  %12504 = vrot.lane.b32.xlu0 %v17385_v51, %s13076_s23 }
 0x2aa   : > { %17387 = vst [vmem:[#allocation70_spill] sm:$0xff] %v15498_v44  ;;  %v6220_v44 = vsel %vm6204_vm7, %v17389_v22, %v12296_v58 }
 0x2ab   : > { %12509 = vrot.lane.b32.xlu1 %v17382_v46, %s13080_s28  ;;  %v6496_v48 = vpop.permute.xlu0 %6495  ;;  %v11586_v25 = vpack.c.bf16 %v6220_v44, %v5851_v62  ;;  %v12187_v46 = vunpack.i.h.bf16 %v15157_v33  ;;  %v6586_v33 = vsel %vm6573_vm9, %v15098_v59, %v6494_v35  ;;  %v11592_v62 = vpack.c.bf16 %v4008_v50, %v17335_v54  ;;  %v17394_v44 = vld [vmem:[#allocation19_spill] sm:$0xff] }
 0x2ac   : > { %v6587_v3 = vsel %vm6573_vm9, %v6494_v35, %v6496_v48 }
 0x2ad   : > { %v6498_v9 = vpop.permute.xlu1 %6497  ;;  %12514 = vrot.lane.b32.xlu0 %v17385_v51, %s13080_s28  ;;  %7651 = vmatprep.subr.mxu1 %v6587_v3  ;;  %v17395_v51 = vld [vmem:[#allocation34_spill] sm:$0xff]  ;;  %v4010_v59 = vsel %vm3991_vm3, %v12186_v55, %v12187_v46 }
 0x2ae   : > { %11587 = vmatprep.subr.bf16.mxu0 %v11586_v25  ;;  %7652 = vmatpush1.msra.mxu1 %v6586_v33  ;;  %v12523_v12 = vpack.i.bf16 %v17395_v51, %v17394_v44  ;;  %v4011_v25 = vsel %vm3991_vm3, %v12187_v46, %v12216_v8  ;;  %v6588_v54 = vsel %vm6573_vm9, %v6496_v48, %v6498_v9  ;;  %v17396_v48 = vunpack.i.h.bf16 %v15189_v11 }
 0x2af   : > { %12519 = vrot.lane.b32.xlu1 %v12518_v2, %s13082_s9  ;;  %11589 = vmatpush1.bf16.msra.mxu0 %v17393_v40  ;;  %v15533_v22 = vpop.permute.xlu0 %6499  ;;  %v11606_v10 = vpack.c.bf16 %v4011_v25, %v17348_v60  ;;  %v11608_v55 = vpack.c.bf16 %v4010_v59, %v17357_v36  ;;  %v17397_v33 = vunpack.i.h.bf16 %v15212_v61 }
 0x2b0   : > { %11591 = vmatprep.subr.bf16.mxu1 %v11590_v45  ;;  %11414 = vmatmul.mubr.msk.f32.vlgmr.msra.gmra.mrb[32].mxu1 %vm7205_vm10, %v15284_v7  ;;  %v6589_v47 = vsel %vm6573_vm9, %v6498_v9, %v15533_v22 }
 0x2b1   : > { %v12300_v35 = vpop.permute.xlu1 %12299  ;;  %11593 = vmatpush1.bf16.msra.mxu1 %v11592_v62  ;;  %12524 = vrot.lane.b32.xlu0 %v12523_v12, %s13082_s9 }
 0x2b2   : > { %7722 = vmatprep.subr.mxu0 %v6589_v47  ;;  %v12301_v37 = vunpack.i.l.bf16 %v12300_v35  ;;  %7841 = vmatprep.mubr.f32.mxu1 %v17235_v18  ;;  %v12302_v60 = vunpack.i.h.bf16 %v12300_v35  ;;  %v17398_v47 = vpack.c.bf16 %v15238_v53, %v15231_v30  ;;  %v17399_v53 = vunpack.i.h.bf16 %v15251_v0 }
 0x2b3   : > { %12529 = vrot.lane.b32.xlu1 %v12518_v2, %s13083_s10  ;;  %7723 = vmatpush1.msra.mxu0 %v6588_v54  ;;  %v15550_v14 = vpop.permute.xlu0 %12304 }
 0x2b4   : > { %11607 = vmatprep.subr.bf16.mxu0 %v11606_v10  ;;  %11415 = vmatmul.mubr.msk.f32.vlgmr.msra.gmra.mrb[34].mxu0 %vm7205_vm10, %v15284_v7  ;;  %v12306_v9 = vunpack.i.l.bf16 %v15550_v14  ;;  %v4378_v3 = vsel %vm4360_vm5, %v17396_v48, %v12301_v37  ;;  %v4379_v59 = vsel %vm4360_vm5, %v12301_v37, %v12302_v60 }
 0x2b5   : > { %v12310_v46 = vpop.permute.xlu1 %12309  ;;  %11609 = vmatpush1.bf16.msra.mxu0 %v11608_v55  ;;  %12534 = vrot.lane.b32.xlu0 %v12523_v12, %s13083_s10 }
 0x2b6   : > { %v12312_v50 = vunpack.i.h.bf16 %v12310_v46  ;;  %v12311_v2 = vunpack.i.l.bf16 %v12310_v46  ;;  %7912 = vmatprep.mubr.f32.mxu0 %v17235_v18  ;;  %v4380_v11 = vsel %vm4360_vm5, %v12302_v60, %v12306_v9 }
 0x2b7   : > { %6525 = vrot.lane.b32.xlu1 %v17271_v27, %s13077_s24  ;;  %v15561_v36 = vpop.permute.xlu0 %12314 }
 0x2b8   : > { %v4747_v45 = vsel %vm4729_vm4, %v17397_v33, %v12311_v2  ;;  %v12316_v40 = vunpack.i.l.bf16 %v15561_v36  ;;  %v4748_v25 = vsel %vm4729_vm4, %v12311_v2, %v12312_v50 }
 0x2b9   : > { %v12320_v62 = vpop.permute.xlu1 %12319  ;;  %v11594_v12 = vpack.c.bf16 %v4747_v45, %v4378_v3  ;;  %6527 = vrot.lane.b32.xlu0 %v17391_v26, %s13077_s24  ;;  %v11612_v46 = vpack.c.bf16 %v4748_v25, %v4379_v59  ;;  %v17400_v3 = vunpack.i.h.bf16 %v15273_v39 }
 0x2ba   : > { %v4749_v61 = vsel %vm4729_vm4, %v12312_v50, %v12316_v40  ;;  %v12321_v35 = vunpack.i.l.bf16 %v12320_v62  ;;  %v12322_v37 = vunpack.i.h.bf16 %v12320_v62  ;;  %v12297_v62 = vunpack.i.h.bf16 %v15495_v16 }
 0x2bb   : > { %6529 = vrot.lane.b32.xlu1 %v17392_v5, %s13077_s24  ;;  %11595 = vmatprep.subr.bf16.mxu1 %v11594_v12  ;;  %v15585_v54 = vpop.permute.xlu0 %12324  ;;  %v11610_v10 = vpack.c.bf16 %v4749_v61, %v4380_v11 }
 0x2bc   : > { %11597 = vmatpush1.bf16.msra.mxu1 %v17398_v47  ;;  %v12326_v50 = vunpack.i.l.bf16 %v15585_v54  ;;  %v5115_v60 = vsel %vm3393_vm2, %v17399_v53, %v12321_v35  ;;  %v5116_v61 = vsel %vm3393_vm2, %v12321_v35, %v12322_v37  ;;  %v17401_v47 = vpack.c.bf16 %v15311_v38, %v15296_v6 }
 0x2bd   : > { %v12330_v55 = vpop.permute.xlu1 %12329  ;;  %6531 = vrot.lane.b32.xlu0 %v17394_v44, %s13077_s24  ;;  %11611 = vmatprep.subr.bf16.mxu0 %v11610_v10  ;;  %v6221_v35 = vsel %vm6204_vm7, %v12296_v58, %v12297_v62  ;;  %v12217_v38 = vunpack.i.h.bf16 %v15403_v13 }
 0x2be   : > { %v12332_v2 = vunpack.i.h.bf16 %v12330_v55  ;;  %v12331_v48 = vunpack.i.l.bf16 %v12330_v55  ;;  %11613 = vmatpush1.bf16.msra.mxu0 %v11612_v46  ;;  %v5117_v0 = vsel %vm3393_vm2, %v12322_v37, %v12326_v50  ;;  %v12212_v46 = vunpack.i.h.bf16 %v15325_v32 }
 0x2bf   : > { %12539 = vrot.lane.b32.xlu1 %v14870_v20, %s13079_s26  ;;  %v15592_v30 = vpop.permute.xlu0 %12334 }
 0x2c0   : > { %v5484_v33 = vsel %vm5466_vm6, %v17400_v3, %v12331_v48  ;;  %v12336_v45 = vunpack.i.l.bf16 %v15592_v30  ;;  %v5485_v11 = vsel %vm5466_vm6, %v12331_v48, %v12332_v2 }
 0x2c1   : > { %v12340_v12 = vpop.permute.xlu1 %12339  ;;  %v11598_v25 = vpack.c.bf16 %v5484_v33, %v5115_v60  ;;  %12544 = vrot.lane.b32.xlu0 %v14895_v31, %s13079_s26  ;;  %v11616_v53 = vpack.c.bf16 %v5485_v11, %v5116_v61  ;;  %v12221_v61 = vunpack.i.l.bf16 %v15363_v19 }
 0x2c2   : > { %v5486_v39 = vsel %vm5466_vm6, %v12332_v2, %v12336_v45  ;;  %v12341_v59 = vunpack.i.l.bf16 %v12340_v12  ;;  %v12342_v58 = vunpack.i.h.bf16 %v12340_v12 }
 0x2c3   : > { %12549 = vrot.lane.b32.xlu1 %v14870_v20, %s13081_s30  ;;  %11599 = vmatprep.subr.bf16.mxu1 %v11598_v25  ;;  %v15617_v10 = vpop.permute.xlu0 %12344  ;;  %v11614_v55 = vpack.c.bf16 %v5486_v39, %v5117_v0  ;;  %v17402_v25 = vunpack.i.l.bf16 %v15325_v32 }
 0x2c4   : > { %11601 = vmatpush1.bf16.msra.mxu1 %v17401_v47  ;;  %v12346_v2 = vunpack.i.l.bf16 %v15617_v10  ;;  %v5853_v3 = vsel %vm5835_vm8, %v12212_v46, %v12341_v59 }
 0x2c5   : > { %v12350_v48 = vpop.permute.xlu1 %12349  ;;  %12554 = vrot.lane.b32.xlu0 %v14895_v31, %s13081_s30  ;;  %11615 = vmatprep.subr.bf16.mxu0 %v11614_v55  ;;  %v5852_v16 = vsel %vm5835_vm8, %v17402_v25, %v12212_v46 }
 0x2c6   : > { %v12351_v60 = vunpack.i.l.bf16 %v12350_v48  ;;  %v12352_v6 = vunpack.i.h.bf16 %v12350_v48  ;;  %11617 = vmatpush1.bf16.msra.mxu0 %v11616_v53  ;;  %v11604_v47 = vpack.c.bf16 %v6221_v35, %v5852_v16  ;;  %v5855_v32 = vsel %vm5835_vm8, %v12342_v58, %v12346_v2  ;;  %v17403_v48 = vld [vmem:[#allocation21_spill] sm:$0xff] }
 0x2c7   : > { %12559 = vrot.lane.b32.xlu1 %v14870_v20, %s13076_s23  ;;  %v15629_v37 = vpop.permute.xlu0 %12354  ;;  %v12578_v53 = vpack.i.bf16 %v14752_v29, %v17403_v48  ;;  %v4013_v35 = vsel %vm3991_vm3, %v12217_v38, %v12221_v61 }
 0x2c8   : > { %v6222_v33 = vsel %vm6204_vm7, %v12297_v62, %v12351_v60  ;;  %v12356_v11 = vunpack.i.l.bf16 %v15629_v37  ;;  %v6223_v55 = vsel %vm6204_vm7, %v12351_v60, %v12352_v6  ;;  %v12226_v62 = vunpack.i.l.bf16 %v15422_v57 }
 0x2c9   : > { %v6502_v0 = vpop.permute.xlu1 %6501  ;;  %v11602_v39 = vpack.c.bf16 %v6222_v33, %v5853_v3  ;;  %12564 = vrot.lane.b32.xlu0 %v14895_v31, %s13076_s23  ;;  %v4012_v3 = vsel %vm3991_vm3, %v12216_v8, %v12217_v38  ;;  %v5854_v33 = vsel %vm5835_vm8, %v12341_v59, %v12342_v58  ;;  %v11622_v13 = vpack.c.bf16 %v4013_v35, %v17350_v41 }
 0x2ca   : > { %v6224_v12 = vsel %vm6204_vm7, %v12352_v6, %v12356_v11  ;;  %v11620_v16 = vpack.c.bf16 %v6223_v55, %v5854_v33  ;;  %v11624_v59 = vpack.c.bf16 %v4012_v3, %v17349_v56  ;;  %v12583_v38 = vpack.i.bf16 %v14780_v4, %v14787_v21 }
 0x2cb   : > { %12569 = vrot.lane.b32.xlu1 %v14870_v20, %s13080_s28  ;;  %11603 = vmatprep.subr.bf16.mxu1 %v11602_v39  ;;  %v6504_v46 = vpop.permute.xlu0 %6503  ;;  %v11618_v60 = vpack.c.bf16 %v6224_v12, %v5855_v32  ;;  %v12222_v20 = vunpack.i.h.bf16 %v15363_v19  ;;  %v6590_v19 = vsel %vm6573_vm9, %v15533_v22, %v6502_v0  ;;  %v12317_v56 = vunpack.i.h.bf16 %v15561_v36 }
 0x2cc   : > { %11605 = vmatpush1.bf16.msra.mxu1 %v11604_v47  ;;  %v6591_v6 = vsel %vm6573_vm9, %v6502_v0, %v6504_v46  ;;  %v12307_v32 = vunpack.i.h.bf16 %v15550_v14 }
 0x2cd   : > { %v6506_v25 = vpop.permute.xlu1 %6505  ;;  %12574 = vrot.lane.b32.xlu0 %v14895_v31, %s13080_s28  ;;  %7793 = vmatprep.subr.mxu1 %v6591_v6  ;;  %v4015_v31 = vsel %vm3991_vm3, %v12222_v20, %v12226_v62  ;;  %v4014_v58 = vsel %vm3991_vm3, %v12221_v61, %v12222_v20 }
 0x2ce   : > { %11619 = vmatprep.subr.bf16.mxu0 %v11618_v60  ;;  %v6592_v22 = vsel %vm6573_vm9, %v6504_v46, %v6506_v25  ;;  %v11638_v0 = vpack.c.bf16 %v4015_v31, %v17362_v52  ;;  %v11640_v55 = vpack.c.bf16 %v4014_v58, %v17351_v24  ;;  %v4750_v52 = vsel %vm4729_vm4, %v12316_v40, %v12317_v56 }
 0x2cf   : > { %12579 = vrot.lane.b32.xlu1 %v12578_v53, %s13082_s9  ;;  %11621 = vmatpush1.bf16.msra.mxu0 %v11620_v16  ;;  %v15665_v8 = vpop.permute.xlu0 %6507  ;;  %v4381_v36 = vsel %vm4360_vm5, %v12306_v9, %v12307_v32  ;;  %v12327_v58 = vunpack.i.h.bf16 %v15585_v54 }
 0x2d0   : > { %7794 = vmatpush1.msra.mxu1 %v6590_v19  ;;  %v6593_v41 = vsel %vm6573_vm9, %v6506_v25, %v15665_v8  ;;  %v11628_v16 = vpack.c.bf16 %v4750_v52, %v4381_v36  ;;  %v12337_v19 = vunpack.i.h.bf16 %v15592_v30 }
 0x2d1   : > { %v12360_v39 = vpop.permute.xlu1 %12359  ;;  %11623 = vmatprep.subr.bf16.mxu1 %v11622_v13  ;;  %11416 = vmatmul.mubr.msk.f32.vlgmr.msra.gmra.mrb[34].mxu1 %vm7205_vm10, %v15284_v7 }
 0x2d2   : > { %11625 = vmatpush1.bf16.msra.mxu1 %v11624_v59  ;;  %12584 = vrot.lane.b32.xlu0 %v12583_v38, %s13082_s9  ;;  %v12361_v61 = vunpack.i.l.bf16 %v12360_v39  ;;  %v12362_v46 = vunpack.i.h.bf16 %v12360_v39 }
 0x2d3   : > { %12589 = vrot.lane.b32.xlu1 %v12578_v53, %s13083_s10  ;;  %7864 = vmatprep.subr.mxu0 %v6593_v41  ;;  %v15683_v47 = vpop.permute.xlu0 %12364 }
 0x2d4   : > { %7865 = vmatpush1.msra.mxu0 %v6592_v22  ;;  %7983 = vmatprep.mubr.f32.mxu1 %v17235_v18  ;;  %v12366_v24 = vunpack.i.l.bf16 %v15683_v47  ;;  %v4382_v20 = vsel %vm4360_vm5, %v12307_v32, %v12361_v61  ;;  %v4383_v13 = vsel %vm4360_vm5, %v12361_v61, %v12362_v46 }
 0x2d5   : > { %v12370_v12 = vpop.permute.xlu1 %12369  ;;  %11639 = vmatprep.subr.bf16.mxu0 %v11638_v0  ;;  %11417 = vmatmul.mubr.msk.f32.vlgmr.msra.gmra.mrb[36].mxu0 %vm7205_vm10, %v15284_v7  ;;  %v5487_v0 = vsel %vm5466_vm6, %v12336_v45, %v12337_v19 }
 0x2d6   : > { %v12372_v53 = vunpack.i.h.bf16 %v12370_v12  ;;  %v12371_v60 = vunpack.i.l.bf16 %v12370_v12  ;;  %11641 = vmatpush1.bf16.msra.mxu0 %v11640_v55  ;;  %12594 = vrot.lane.b32.xlu0 %v12583_v38, %s13083_s10  ;;  %v4384_v14 = vsel %vm4360_vm5, %v12362_v46, %v12366_v24 }
 0x2d7   : > { %6533 = vrot.lane.b32.xlu1 %v17395_v51, %s13077_s24  ;;  %8054 = vmatprep.mubr.f32.mxu0 %v17235_v18  ;;  %v15698_v35 = vpop.permute.xlu0 %12374 }
 0x2d8   : > { %v4751_v3 = vsel %vm4729_vm4, %v12317_v56, %v12371_v60  ;;  %v12376_v40 = vunpack.i.l.bf16 %v15698_v35  ;;  %v4752_v6 = vsel %vm4729_vm4, %v12371_v60, %v12372_v53  ;;  %v5118_v60 = vsel %vm3393_vm2, %v12326_v50, %v12327_v58 }
 0x2d9   : > { %v12380_v33 = vpop.permute.xlu1 %12379  ;;  %v11626_v25 = vpack.c.bf16 %v4751_v3, %v4382_v20  ;;  %v11644_v41 = vpack.c.bf16 %v4752_v6, %v4383_v13  ;;  %v11632_v20 = vpack.c.bf16 %v5487_v0, %v5118_v60  ;;  %v12357_v3 = vunpack.i.h.bf16 %v15629_v37 }
 0x2da   : > { %6535 = vrot.lane.b32.xlu0 %v17403_v48, %s13077_s24  ;;  %v4753_v9 = vsel %vm4729_vm4, %v12372_v53, %v12376_v40  ;;  %v12381_v59 = vunpack.i.l.bf16 %v12380_v33  ;;  %v12382_v55 = vunpack.i.h.bf16 %v12380_v33 }
 0x2db   : > { %6537 = vrot.lane.b32.xlu1 %v14752_v29, %s13077_s24  ;;  %11627 = vmatprep.subr.bf16.mxu1 %v11626_v25  ;;  %v15719_v38 = vpop.permute.xlu0 %12384  ;;  %v11642_v31 = vpack.c.bf16 %v4753_v9, %v4384_v14  ;;  %v6225_v13 = vsel %vm6204_vm7, %v12356_v11, %v12357_v3 }
 0x2dc   : > { %11629 = vmatpush1.bf16.msra.mxu1 %v11628_v16  ;;  %v12386_v61 = vunpack.i.l.bf16 %v15719_v38  ;;  %v5119_v12 = vsel %vm3393_vm2, %v12327_v58, %v12381_v59  ;;  %v5120_v36 = vsel %vm3393_vm2, %v12381_v59, %v12382_v55  ;;  %v12347_v16 = vunpack.i.h.bf16 %v15617_v10 }
 0x2dd   : > { %v12390_v39 = vpop.permute.xlu1 %12389  ;;  %11643 = vmatprep.subr.bf16.mxu0 %v11642_v31  ;;  %v12227_v58 = vunpack.i.h.bf16 %v15422_v57 }
 0x2de   : > { %v12392_v56 = vunpack.i.h.bf16 %v12390_v39  ;;  %v12391_v22 = vunpack.i.l.bf16 %v12390_v39  ;;  %6539 = vrot.lane.b32.xlu0 %v14787_v21, %s13077_s24  ;;  %11645 = vmatpush1.bf16.msra.mxu0 %v11644_v41  ;;  %v5121_v54 = vsel %vm3393_vm2, %v12382_v55, %v12386_v61  ;;  %v5856_v37 = vsel %vm5835_vm8, %v12346_v2, %v12347_v16 }
 0x2df   : > { %12599 = vrot.lane.b32.xlu1 %v14912_v34, %s13079_s26  ;;  %v15730_v32 = vpop.permute.xlu0 %12394 }
 0x2e0   : > { %v5488_v53 = vsel %vm5466_vm6, %v12337_v19, %v12391_v22  ;;  %v12396_v30 = vunpack.i.l.bf16 %v15730_v32  ;;  %v5489_v46 = vsel %vm5466_vm6, %v12391_v22, %v12392_v56 }
 0x2e1   : > { %v12400_v45 = vpop.permute.xlu1 %12399  ;;  %v11630_v52 = vpack.c.bf16 %v5488_v53, %v5119_v12  ;;  %v11648_v14 = vpack.c.bf16 %v5489_v46, %v5120_v36  ;;  %v12231_v12 = vunpack.i.l.bf16 %v15408_v23  ;;  %v11636_v53 = vpack.c.bf16 %v6225_v13, %v5856_v37  ;;  %v17404_v46 = vld [vmem:[#allocation23_spill] sm:$0xff] }
 0x2e2   : > { %12604 = vrot.lane.b32.xlu0 %v14927_v15, %s13079_s26  ;;  %v5490_v50 = vsel %vm5466_vm6, %v12392_v56, %v12396_v30  ;;  %v12401_v33 = vunpack.i.l.bf16 %v12400_v45  ;;  %v12402_v11 = vunpack.i.h.bf16 %v12400_v45  ;;  %v12236_v45 = vunpack.i.l.bf16 %v15443_v49 }
 0x2e3   : > { %12609 = vrot.lane.b32.xlu1 %v14912_v34, %s13081_s30  ;;  %11631 = vmatprep.subr.bf16.mxu1 %v11630_v52  ;;  %v15751_v25 = vpop.permute.xlu0 %12404  ;;  %v11646_v6 = vpack.c.bf16 %v5490_v50, %v5121_v54  ;;  %v4017_v54 = vsel %vm3991_vm3, %v12227_v58, %v12231_v12  ;;  %v4016_v50 = vsel %vm3991_vm3, %v12226_v62, %v12227_v58 }
 0x2e4   : > { %11633 = vmatpush1.bf16.msra.mxu1 %v11632_v20  ;;  %v12406_v59 = vunpack.i.l.bf16 %v15751_v25  ;;  %v5857_v41 = vsel %vm5835_vm8, %v12347_v16, %v12401_v33  ;;  %v12638_v20 = vpack.i.bf16 %v17404_v46, %v14790_v17  ;;  %v5858_v36 = vsel %vm5835_vm8, %v12401_v33, %v12402_v11 }
 0x2e5   : > { %v12410_v19 = vpop.permute.xlu1 %12409  ;;  %11647 = vmatprep.subr.bf16.mxu0 %v11646_v6  ;;  %v11654_v57 = vpack.c.bf16 %v4017_v54, %v17368_v28  ;;  %v11656_v33 = vpack.c.bf16 %v4016_v50, %v17363_v42  ;;  %v12377_v42 = vunpack.i.h.bf16 %v15698_v35 }
 0x2e6   : > { %v12411_v9 = vunpack.i.l.bf16 %v12410_v19  ;;  %12614 = vrot.lane.b32.xlu0 %v14927_v15, %s13081_s30  ;;  %v12412_v31 = vunpack.i.h.bf16 %v12410_v19  ;;  %11649 = vmatpush1.bf16.msra.mxu0 %v11648_v14  ;;  %v5859_v10 = vsel %vm5835_vm8, %v12402_v11, %v12406_v59  ;;  %v17405_v14 = vld [vmem:[#allocation25_spill] sm:$0xff] }
 0x2e7   : > { %12619 = vrot.lane.b32.xlu1 %v14912_v34, %s13076_s23  ;;  %v15763_v39 = vpop.permute.xlu0 %12414 }
 0x2e8   : > { %v6226_v56 = vsel %vm6204_vm7, %v12357_v3, %v12411_v9  ;;  %v12416_v22 = vunpack.i.l.bf16 %v15763_v39  ;;  %v6227_v60 = vsel %vm6204_vm7, %v12411_v9, %v12412_v31  ;;  %v17406_v9 = vld [vmem:[#allocation24_spill] sm:$0xff] }
 0x2e9   : > { %v6510_v0 = vpop.permute.xlu1 %6509  ;;  %v11634_v55 = vpack.c.bf16 %v6226_v56, %v5857_v41  ;;  %v11652_v19 = vpack.c.bf16 %v6227_v60, %v5858_v36  ;;  %v12643_v13 = vpack.i.bf16 %v17406_v9, %v17405_v14 }
 0x2ea   : > { %12624 = vrot.lane.b32.xlu0 %v14927_v15, %s13076_s23  ;;  %v6228_v2 = vsel %vm6204_vm7, %v12412_v31, %v12416_v22 }
 0x2eb   : > { %12629 = vrot.lane.b32.xlu1 %v14912_v34, %s13080_s28  ;;  %11635 = vmatprep.subr.bf16.mxu1 %v11634_v55  ;;  %v6512_v52 = vpop.permute.xlu0 %6511  ;;  %v11650_v3 = vpack.c.bf16 %v6228_v2, %v5859_v10  ;;  %v12232_v34 = vunpack.i.h.bf16 %v15408_v23  ;;  %v6594_v23 = vsel %vm6573_vm9, %v15665_v8, %v6510_v0 }
 0x2ec   : > { %11637 = vmatpush1.bf16.msra.mxu1 %v11636_v53  ;;  %v6595_v16 = vsel %vm6573_vm9, %v6510_v0, %v6512_v52  ;;  %v12367_v0 = vunpack.i.h.bf16 %v15683_v47 }
 0x2ed   : > { %v6514_v6 = vpop.permute.xlu1 %6513  ;;  %7935 = vmatprep.subr.mxu1 %v6595_v16  ;;  %11651 = vmatprep.subr.bf16.mxu0 %v11650_v3  ;;  %v4018_v31 = vsel %vm3991_vm3, %v12231_v12, %v12232_v34 }
 0x2ee   : > { %12634 = vrot.lane.b32.xlu0 %v14927_v15, %s13080_s28  ;;  %11653 = vmatpush1.bf16.msra.mxu0 %v11652_v19  ;;  %v4019_v15 = vsel %vm3991_vm3, %v12232_v34, %v12236_v45  ;;  %v6596_v8 = vsel %vm6573_vm9, %v6512_v52, %v6514_v6  ;;  %v11672_v11 = vpack.c.bf16 %v4018_v31, %v17369_v63  ;;  %v12397_v34 = vunpack.i.h.bf16 %v15730_v32 }
 0x2ef   : > { %12639 = vrot.lane.b32.xlu1 %v12638_v20, %s13082_s9  ;;  %v15799_v62 = vpop.permute.xlu0 %6515  ;;  %v11670_v41 = vpack.c.bf16 %v4019_v15, %v17374_v43  ;;  %v4754_v43 = vsel %vm4729_vm4, %v12376_v40, %v12377_v42  ;;  %v4385_v35 = vsel %vm4360_vm5, %v12366_v24, %v12367_v0  ;;  %v12387_v19 = vunpack.i.h.bf16 %v15719_v38 }
 0x2f0   : > { %7936 = vmatpush1.msra.mxu1 %v6594_v23  ;;  %v6597_v28 = vsel %vm6573_vm9, %v6514_v6, %v15799_v62  ;;  %v11660_v54 = vpack.c.bf16 %v4754_v43, %v4385_v35  ;;  %v5491_v15 = vsel %vm5466_vm6, %v12396_v30, %v12397_v34  ;;  %v12407_v35 = vunpack.i.h.bf16 %v15751_v25 }
 0x2f1   : > { %v12420_v58 = vpop.permute.xlu1 %12419  ;;  %11655 = vmatprep.subr.bf16.mxu1 %v11654_v57  ;;  %11418 = vmatmul.mubr.msk.f32.vlgmr.msra.gmra.mrb[36].mxu1 %vm7205_vm10, %v15284_v7 }
 0x2f2   : > { %11657 = vmatpush1.bf16.msra.mxu1 %v11656_v33  ;;  %12644 = vrot.lane.b32.xlu0 %v12643_v13, %s13082_s9  ;;  %v12421_v56 = vunpack.i.l.bf16 %v12420_v58  ;;  %v12422_v60 = vunpack.i.h.bf16 %v12420_v58  ;;  %v17407_v58 = vld [vmem:[#allocation46_spill] sm:$0xff] }
 0x2f3   : > { %12649 = vrot.lane.b32.xlu1 %v12638_v20, %s13083_s10  ;;  %8006 = vmatprep.subr.mxu0 %v6597_v28  ;;  %v15817_v37 = vpop.permute.xlu0 %12424 }
 0x2f4   : > { %8007 = vmatpush1.msra.mxu0 %v6596_v8  ;;  %8125 = vmatprep.mubr.f32.mxu1 %v17235_v18  ;;  %v12426_v63 = vunpack.i.l.bf16 %v15817_v37  ;;  %v4387_v50 = vsel %vm4360_vm5, %v12421_v56, %v12422_v60 }
 0x2f5   : > { %v12430_v55 = vpop.permute.xlu1 %12429  ;;  %11671 = vmatprep.subr.bf16.mxu0 %v11670_v41  ;;  %11419 = vmatmul.mubr.msk.f32.vlgmr.msra.gmra.mrb[38].mxu0 %vm7205_vm10, %v15284_v7  ;;  %v4386_v7 = vsel %vm4360_vm5, %v12367_v0, %v12421_v56  ;;  %v5122_v56 = vsel %vm3393_vm2, %v12386_v61, %v12387_v19 }
 0x2f6   : > { %v12432_v12 = vunpack.i.h.bf16 %v12430_v55  ;;  %v12431_v53 = vunpack.i.l.bf16 %v12430_v55  ;;  %11673 = vmatpush1.bf16.msra.mxu0 %v11672_v11  ;;  %12654 = vrot.lane.b32.xlu0 %v12643_v13, %s13083_s10  ;;  %v4388_v47 = vsel %vm4360_vm5, %v12422_v60, %v12426_v63  ;;  %v17408_v55 = vld [vmem:[#allocation56_spill] sm:$0xff] }
 0x2f7   : > { %6541 = vrot.lane.b32.xlu1 %v14780_v4, %s13077_s24  ;;  %8196 = vmatprep.mubr.f32.mxu0 %v17235_v18  ;;  %v15832_v10 = vpop.permute.xlu0 %12434 }
 0x2f8   : > { %v4755_v2 = vsel %vm4729_vm4, %v12377_v42, %v12431_v53  ;;  %v12436_v40 = vunpack.i.l.bf16 %v15832_v10  ;;  %v4756_v3 = vsel %vm4729_vm4, %v12431_v53, %v12432_v12  ;;  %v12417_v53 = vunpack.i.h.bf16 %v15763_v39 }
 0x2f9   : > { %v12440_v52 = vpop.permute.xlu1 %12439  ;;  %v11658_v20 = vpack.c.bf16 %v4755_v2, %v4386_v7  ;;  %v11676_v57 = vpack.c.bf16 %v4756_v3, %v4387_v50  ;;  %v5860_v39 = vsel %vm5835_vm8, %v12406_v59, %v12407_v35 }
 0x2fa   : > { %6543 = vrot.lane.b32.xlu0 %v14790_v17, %s13077_s24  ;;  %v4757_v24 = vsel %vm4729_vm4, %v12432_v12, %v12436_v40  ;;  %v12441_v36 = vunpack.i.l.bf16 %v12440_v52  ;;  %v12442_v28 = vunpack.i.h.bf16 %v12440_v52  ;;  %v11664_v12 = vpack.c.bf16 %v5491_v15, %v5122_v56  ;;  %v17410_v56 = vld [vmem:[#allocation26_spill] sm:$0xff] }
 0x2fb   : > { %6545 = vrot.lane.b32.xlu1 %v17404_v46, %s13077_s24  ;;  %11659 = vmatprep.subr.bf16.mxu1 %v11658_v20  ;;  %v15853_v6 = vpop.permute.xlu0 %12444  ;;  %v11674_v16 = vpack.c.bf16 %v4757_v24, %v4388_v47  ;;  %v12237_v24 = vunpack.i.h.bf16 %v15443_v49 }
 0x2fc   : > { %11661 = vmatpush1.bf16.msra.mxu1 %v11660_v54  ;;  %v12446_v31 = vunpack.i.l.bf16 %v15853_v6  ;;  %v5123_v8 = vsel %vm3393_vm2, %v12387_v19, %v12441_v36  ;;  %v5124_v43 = vsel %vm3393_vm2, %v12441_v36, %v12442_v28  ;;  %v6229_v54 = vsel %vm6204_vm7, %v12416_v22, %v12417_v53 }
 0x2fd   : > { %v12450_v23 = vpop.permute.xlu1 %12449  ;;  %11675 = vmatprep.subr.bf16.mxu0 %v11674_v16 }
 0x2fe   : > { %v12452_v33 = vunpack.i.h.bf16 %v12450_v23  ;;  %v12451_v13 = vunpack.i.l.bf16 %v12450_v23  ;;  %6547 = vrot.lane.b32.xlu0 %v17405_v14, %s13077_s24  ;;  %11677 = vmatpush1.bf16.msra.mxu0 %v11676_v57  ;;  %v5125_v38 = vsel %vm3393_vm2, %v12442_v28, %v12446_v31  ;;  %v17409_v28 = vld [vmem:[#allocation59_spill] sm:$0xff] }
 0x2ff   : > { %12659 = vrot.lane.b32.xlu1 %v17407_v58, %s13079_s26  ;;  %v15864_v42 = vpop.permute.xlu0 %12454 }
 0x300   : > { %v5492_v41 = vsel %vm5466_vm6, %v12397_v34, %v12451_v13  ;;  %v12456_v32 = vunpack.i.l.bf16 %v15864_v42  ;;  %v5493_v0 = vsel %vm5466_vm6, %v12451_v13, %v12452_v33  ;;  %v11668_v13 = vpack.c.bf16 %v6229_v54, %v5860_v39 }
 0x301   : > { %v12460_v30 = vpop.permute.xlu1 %12459  ;;  %v11662_v11 = vpack.c.bf16 %v5492_v41, %v5123_v8  ;;  %v11680_v20 = vpack.c.bf16 %v5493_v0, %v5124_v43  ;;  %v12246_v8 = vunpack.i.l.bf16 %v17409_v28 }
 0x302   : > { %12664 = vrot.lane.b32.xlu0 %v17408_v55, %s13079_s26  ;;  %v5494_v61 = vsel %vm5466_vm6, %v12452_v33, %v12456_v32  ;;  %v12461_v60 = vunpack.i.l.bf16 %v12460_v30  ;;  %v12462_v22 = vunpack.i.h.bf16 %v12460_v30  ;;  %v12241_v33 = vunpack.i.l.bf16 %v15428_v1  ;;  %v17411_v30 = vld [vmem:[#allocation27_spill] sm:$0xff] }
 0x303   : > { %12669 = vrot.lane.b32.xlu1 %v17407_v58, %s13081_s30  ;;  %11663 = vmatprep.subr.bf16.mxu1 %v11662_v11  ;;  %v15885_v7 = vpop.permute.xlu0 %12464  ;;  %v11678_v2 = vpack.c.bf16 %v5494_v61, %v5125_v38  ;;  %v12698_v11 = vpack.i.bf16 %v17411_v30, %v17410_v56 }
 0x304   : > { %11665 = vmatpush1.bf16.msra.mxu1 %v11664_v12  ;;  %v12466_v34 = vunpack.i.l.bf16 %v15885_v7  ;;  %v5861_v36 = vsel %vm5835_vm8, %v12407_v35, %v12461_v60  ;;  %v4021_v12 = vsel %vm3991_vm3, %v12237_v24, %v12241_v33  ;;  %v5862_v38 = vsel %vm5835_vm8, %v12461_v60, %v12462_v22  ;;  %v17412_v35 = vld [vmem:[#allocation16_spill] sm:$0xff]  ;;  %v17413_v60 = vld [vmem:[#allocation43_spill] sm:$0xff] }
 0x305   : > { %v12470_v52 = vpop.permute.xlu1 %12469  ;;  %11679 = vmatprep.subr.bf16.mxu0 %v11678_v2  ;;  %v11686_v49 = vpack.c.bf16 %v4021_v12, %v17412_v35 }
 0x306   : > { %v12471_v3 = vunpack.i.l.bf16 %v12470_v52  ;;  %12674 = vrot.lane.b32.xlu0 %v17408_v55, %s13081_s30  ;;  %v12472_v47 = vunpack.i.h.bf16 %v12470_v52  ;;  %11681 = vmatpush1.bf16.msra.mxu0 %v11680_v20  ;;  %v5863_v25 = vsel %vm5835_vm8, %v12462_v22, %v12466_v34  ;;  %v17414_v20 = vld [vmem:[#allocation50_spill] sm:$0xff] }
 0x307   : > { %12679 = vrot.lane.b32.xlu1 %v17407_v58, %s13076_s23  ;;  %v15897_v50 = vpop.permute.xlu0 %12474 }
 0x308   : > { %v6230_v16 = vsel %vm6204_vm7, %v12417_v53, %v12471_v3  ;;  %v12476_v19 = vunpack.i.l.bf16 %v15897_v50  ;;  %v6231_v15 = vsel %vm6204_vm7, %v12471_v3, %v12472_v47  ;;  %v4020_v53 = vsel %vm3991_vm3, %v12236_v45, %v12237_v24  ;;  %v17415_v3 = vld [vmem:[#allocation28_spill] sm:$0xff] }
 0x309   : > { %v6518_v23 = vpop.permute.xlu1 %6517  ;;  %v11666_v57 = vpack.c.bf16 %v6230_v16, %v5861_v36  ;;  %v11684_v2 = vpack.c.bf16 %v6231_v15, %v5862_v38  ;;  %v11688_v52 = vpack.c.bf16 %v4020_v53, %v17413_v60  ;;  %v12703_v54 = vpack.i.bf16 %v17415_v3, %v17414_v20 }
 0x30a   : > { %12684 = vrot.lane.b32.xlu0 %v17408_v55, %s13076_s23  ;;  %v6232_v59 = vsel %vm6204_vm7, %v12472_v47, %v12476_v19  ;;  %v12437_v16 = vunpack.i.h.bf16 %v15832_v10  ;;  %v12447_v60 = vunpack.i.h.bf16 %v15853_v6 }
 0x30b   : > { %12689 = vrot.lane.b32.xlu1 %v17407_v58, %s13080_s28  ;;  %11667 = vmatprep.subr.bf16.mxu1 %v11666_v57  ;;  %v6520_v41 = vpop.permute.xlu0 %6519  ;;  %v11682_v0 = vpack.c.bf16 %v6232_v59, %v5863_v25  ;;  %v12242_v58 = vunpack.i.h.bf16 %v15428_v1  ;;  %v6598_v1 = vsel %vm6573_vm9, %v15799_v62, %v6518_v23  ;;  %v15945_v62 = vld [vmem:[%s16921_s4] sm:$0xff] }
 0x30c   : > { %11669 = vmatpush1.bf16.msra.mxu1 %v11668_v13  ;;  %v6599_v43 = vsel %vm6573_vm9, %v6518_v23, %v6520_v41  ;;  %v12427_v13 = vunpack.i.h.bf16 %v15817_v37 }
 0x30d   : > { %v6522_v61 = vpop.permute.xlu1 %6521  ;;  %8077 = vmatprep.subr.mxu1 %v6599_v43  ;;  %11683 = vmatprep.subr.bf16.mxu0 %v11682_v0  ;;  %v4022_v47 = vsel %vm3991_vm3, %v12241_v33, %v12242_v58  ;;  %v12457_v43 = vunpack.i.h.bf16 %v15864_v42 }
 0x30e   : > { %12694 = vrot.lane.b32.xlu0 %v17408_v55, %s13080_s28  ;;  %11685 = vmatpush1.bf16.msra.mxu0 %v11684_v2  ;;  %v4023_v55 = vsel %vm3991_vm3, %v12242_v58, %v12246_v8  ;;  %v6600_v39 = vsel %vm6573_vm9, %v6520_v41, %v6522_v61  ;;  %v11704_v33 = vpack.c.bf16 %v4022_v47, %v17271_v27 }
 0x30f   : > { %12699 = vrot.lane.b32.xlu1 %v12698_v11, %s13082_s9  ;;  %v15933_v45 = vpop.permute.xlu0 %6523  ;;  %v11702_v22 = vpack.c.bf16 %v4023_v55, %v17391_v26  ;;  %v4758_v26 = vsel %vm4729_vm4, %v12436_v40, %v12437_v16  ;;  %v4389_v10 = vsel %vm4360_vm5, %v12426_v63, %v12427_v13 }
 0x310   : > { %8078 = vmatpush1.msra.mxu1 %v6598_v1  ;;  %v6601_v36 = vsel %vm6573_vm9, %v6522_v61, %v15933_v45  ;;  %v11692_v61 = vpack.c.bf16 %v4758_v26, %v4389_v10 }
 0x311   : > { %v12480_v24 = vpop.permute.xlu1 %12479  ;;  %11420 = vmatmul.mubr.msk.f32.vlgmr.msra.gmra.mrb[38].mxu1 %vm7205_vm10, %v15945_v62  ;;  %11687 = vmatprep.subr.bf16.mxu1 %v11686_v49 }
 0x312   : > { %11689 = vmatpush1.bf16.msra.mxu1 %v11688_v52  ;;  %12704 = vrot.lane.b32.xlu0 %v12703_v54, %s13082_s9  ;;  %v12481_v23 = vunpack.i.l.bf16 %v12480_v24  ;;  %v12482_v41 = vunpack.i.h.bf16 %v12480_v24  ;;  %v5495_v24 = vsel %vm5466_vm6, %v12456_v32, %v12457_v43 }
 0x313   : > { %12709 = vrot.lane.b32.xlu1 %v12698_v11, %s13083_s10  ;;  %8148 = vmatprep.subr.mxu0 %v6601_v36  ;;  %v15956_v57 = vpop.permute.xlu0 %12484 }
 0x314   : > { %8149 = vmatpush1.msra.mxu0 %v6600_v39  ;;  %8267 = vmatprep.mubr.f32.mxu1 %v17235_v18  ;;  %v12486_v27 = vunpack.i.l.bf16 %v15956_v57  ;;  %v4390_v0 = vsel %vm4360_vm5, %v12427_v13, %v12481_v23  ;;  %v4391_v2 = vsel %vm4360_vm5, %v12481_v23, %v12482_v41  ;;  %v5126_v13 = vsel %vm3393_vm2, %v12446_v31, %v12447_v60 }
 0x315   : > { %v12490_v15 = vpop.permute.xlu1 %12489  ;;  %11421 = vmatmul.mubr.msk.f32.vlgmr.msra.gmra.mrb[40].mxu0 %vm7205_vm10, %v15945_v62  ;;  %11703 = vmatprep.subr.bf16.mxu0 %v11702_v22  ;;  %v11696_v26 = vpack.c.bf16 %v5495_v24, %v5126_v13 }
 0x316   : > { %v12492_v25 = vunpack.i.h.bf16 %v12490_v15  ;;  %v12491_v59 = vunpack.i.l.bf16 %v12490_v15  ;;  %11705 = vmatpush1.bf16.msra.mxu0 %v11704_v33  ;;  %12714 = vrot.lane.b32.xlu0 %v12703_v54, %s13083_s10  ;;  %v4392_v37 = vsel %vm4360_vm5, %v12482_v41, %v12486_v27  ;;  %v12477_v41 = vunpack.i.h.bf16 %v15897_v50 }
 0x317   : > { %6549 = vrot.lane.b32.xlu1 %v17406_v9, %s13077_s24  ;;  %8338 = vmatprep.mubr.f32.mxu0 %v17235_v18  ;;  %v15971_v11 = vpop.permute.xlu0 %12494 }
 0x318   : > { %v4759_v12 = vsel %vm4729_vm4, %v12437_v16, %v12491_v59  ;;  %v12496_v40 = vunpack.i.l.bf16 %v15971_v11  ;;  %v4760_v38 = vsel %vm4729_vm4, %v12491_v59, %v12492_v25  ;;  %v17416_v16 = vld [vmem:[#allocation11_spill] sm:$0xff]  ;;  %v17417_v59 = vld [vmem:[#allocation8_spill] sm:$0xff] }
 0x319   : > { %v12500_v58 = vpop.permute.xlu1 %12499  ;;  %v11690_v53 = vpack.c.bf16 %v4759_v12, %v4390_v0  ;;  %v11708_v52 = vpack.c.bf16 %v4760_v38, %v4391_v2 }
 0x31a   : > { %6551 = vrot.lane.b32.xlu0 %v17410_v56, %s13077_s24  ;;  %v4761_v63 = vsel %vm4729_vm4, %v12492_v25, %v12496_v40  ;;  %v12501_v1 = vunpack.i.l.bf16 %v12500_v58  ;;  %v12502_v39 = vunpack.i.h.bf16 %v12500_v58 }
 0x31b   : > { %6553 = vrot.lane.b32.xlu1 %v17411_v30, %s13077_s24  ;;  %11691 = vmatprep.subr.bf16.mxu1 %v11690_v53  ;;  %v15992_v35 = vpop.permute.xlu0 %12504  ;;  %v11706_v49 = vpack.c.bf16 %v4761_v63, %v4392_v37  ;;  %v12467_v53 = vunpack.i.h.bf16 %v15885_v7  ;;  %v6233_v37 = vsel %vm6204_vm7, %v12476_v19, %v12477_v41 }
 0x31c   : > { %11693 = vmatpush1.bf16.msra.mxu1 %v11692_v61  ;;  %v12506_v36 = vunpack.i.l.bf16 %v15992_v35  ;;  %v5127_v23 = vsel %vm3393_vm2, %v12447_v60, %v12501_v1  ;;  %v5128_v0 = vsel %vm3393_vm2, %v12501_v1, %v12502_v39  ;;  %v12247_v1 = vunpack.i.h.bf16 %v17409_v28 }
 0x31d   : > { %v12510_v54 = vpop.permute.xlu1 %12509  ;;  %11707 = vmatprep.subr.bf16.mxu0 %v11706_v49  ;;  %v17418_v49 = vld [vmem:[#allocation60_spill] sm:$0xff]  ;;  %v5864_v50 = vsel %vm5835_vm8, %v12466_v34, %v12467_v53 }
 0x31e   : > { %v12512_v55 = vunpack.i.h.bf16 %v12510_v54  ;;  %v12511_v47 = vunpack.i.l.bf16 %v12510_v54  ;;  %6555 = vrot.lane.b32.xlu0 %v17414_v20, %s13077_s24  ;;  %11709 = vmatpush1.bf16.msra.mxu0 %v11708_v52  ;;  %v5129_v6 = vsel %vm3393_vm2, %v12502_v39, %v12506_v36  ;;  %v12251_v60 = vunpack.i.l.bf16 %v17418_v49 }
 0x31f   : > { %12719 = vrot.lane.b32.xlu1 %v17416_v16, %s13079_s26  ;;  %v16003_v22 = vpop.permute.xlu0 %12514 }
 0x320   : > { %v5496_v33 = vsel %vm5466_vm6, %v12457_v43, %v12511_v47  ;;  %v12516_v42 = vunpack.i.l.bf16 %v16003_v22  ;;  %v5497_v25 = vsel %vm5466_vm6, %v12511_v47, %v12512_v55 }
 0x321   : > { %v12520_v32 = vpop.permute.xlu1 %12519  ;;  %v11694_v15 = vpack.c.bf16 %v5496_v33, %v5127_v23  ;;  %v11712_v38 = vpack.c.bf16 %v5497_v25, %v5128_v0  ;;  %v17419_v23 = vld [vmem:[#allocation33_spill] sm:$0xff]  ;;  %v17420_v33 = vld [vmem:[#allocation30_spill] sm:$0xff]  ;;  %v4025_v0 = vsel %vm3991_vm3, %v12247_v1, %v12251_v60 }
 0x322   : > { %12724 = vrot.lane.b32.xlu0 %v17417_v59, %s13079_s26  ;;  %v5498_v31 = vsel %vm5466_vm6, %v12512_v55, %v12516_v42  ;;  %v12521_v12 = vunpack.i.l.bf16 %v12520_v32  ;;  %v12522_v19 = vunpack.i.h.bf16 %v12520_v32  ;;  %v16047_v13 = vadd.f32 %v17420_v33, %v17419_v23 }
 0x323   : > { %12729 = vrot.lane.b32.xlu1 %v17416_v16, %s13081_s30  ;;  %11695 = vmatprep.subr.bf16.mxu1 %v11694_v15  ;;  %v16024_v10 = vpop.permute.xlu0 %12524  ;;  %v11710_v58 = vpack.c.bf16 %v5498_v31, %v5129_v6  ;;  %v11700_v15 = vpack.c.bf16 %v6233_v37, %v5864_v50  ;;  %v12252_v32 = vunpack.i.h.bf16 %v17418_v49  ;;  %v11718_v28 = vpack.c.bf16 %v4025_v0, %v17394_v44 }
 0x324   : > { %11697 = vmatpush1.bf16.msra.mxu1 %v11696_v26  ;;  %v12526_v63 = vunpack.i.l.bf16 %v16024_v10  ;;  %v5865_v54 = vsel %vm5835_vm8, %v12467_v53, %v12521_v12  ;;  %v17421_v26 = vld [vmem:[#allocation61_spill] sm:$0xff]  ;;  %v12487_v23 = vunpack.i.h.bf16 %v15956_v57 }
 0x325   : > { %v12530_v61 = vpop.permute.xlu1 %12529  ;;  %11711 = vmatprep.subr.bf16.mxu0 %v11710_v58  ;;  %v5866_v58 = vsel %vm5835_vm8, %v12521_v12, %v12522_v19 }
 0x326   : > { %v12531_v43 = vunpack.i.l.bf16 %v12530_v61  ;;  %12734 = vrot.lane.b32.xlu0 %v17417_v59, %s13081_s30  ;;  %v12532_v2 = vunpack.i.h.bf16 %v12530_v61  ;;  %11713 = vmatpush1.bf16.msra.mxu0 %v11712_v38  ;;  %v5867_v7 = vsel %vm5835_vm8, %v12522_v19, %v12526_v63  ;;  %v17422_v38 = vld [vmem:[#allocation53_spill] sm:$0xff]  ;;  %v17423_v61 = vld [vmem:[#allocation54_spill] sm:$0xff] }
 0x327   : > { %12739 = vrot.lane.b32.xlu1 %v17416_v16, %s13076_s23  ;;  %v16037_v52 = vpop.permute.xlu0 %12534 }
 0x328   : > { %v6234_v55 = vsel %vm6204_vm7, %v12477_v41, %v12531_v43  ;;  %v12536_v47 = vunpack.i.l.bf16 %v16037_v52  ;;  %v6235_v25 = vsel %vm6204_vm7, %v12531_v43, %v12532_v2  ;;  %v12256_v41 = vunpack.i.l.bf16 %v17421_v26 }
 0x329   : > { %v6526_v24 = vpop.permute.xlu1 %6525  ;;  %v11698_v39 = vpack.c.bf16 %v6234_v55, %v5865_v54  ;;  %v12758_v43 = vpack.i.bf16 %v17423_v61, %v17422_v38  ;;  %v4026_v54 = vsel %vm3991_vm3, %v12251_v60, %v12252_v32  ;;  %v17424_v55 = vld [vmem:[#allocation49_spill] sm:$0xff] }
 0x32a   : > { %12744 = vrot.lane.b32.xlu0 %v17417_v59, %s13076_s23  ;;  %v6236_v34 = vsel %vm6204_vm7, %v12532_v2, %v12536_v47  ;;  %v11716_v2 = vpack.c.bf16 %v6235_v25, %v5866_v58  ;;  %v6602_v49 = vsel %vm6573_vm9, %v15933_v45, %v6526_v24 }
 0x32b   : > { %12749 = vrot.lane.b32.xlu1 %v17416_v16, %s13080_s28  ;;  %11699 = vmatprep.subr.bf16.mxu1 %v11698_v39  ;;  %v6528_v6 = vpop.permute.xlu0 %6527  ;;  %v11714_v31 = vpack.c.bf16 %v6236_v34, %v5867_v7  ;;  %v4024_v16 = vsel %vm3991_vm3, %v12246_v8, %v12247_v1  ;;  %v4027_v1 = vsel %vm3991_vm3, %v12252_v32, %v12256_v41 }
 0x32c   : > { %11701 = vmatpush1.bf16.msra.mxu1 %v11700_v15  ;;  %v6603_v37 = vsel %vm6573_vm9, %v6526_v24, %v6528_v6  ;;  %v11720_v12 = vpack.c.bf16 %v4024_v16, %v17392_v5  ;;  %v12497_v5 = vunpack.i.h.bf16 %v15971_v11  ;;  %v11734_v60 = vpack.c.bf16 %v4027_v1, %v17403_v48 }
 0x32d   : > { %v6530_v53 = vpop.permute.xlu1 %6529  ;;  %8219 = vmatprep.subr.mxu1 %v6603_v37  ;;  %11715 = vmatprep.subr.bf16.mxu0 %v11714_v31  ;;  %v11736_v39 = vpack.c.bf16 %v4026_v54, %v17395_v51  ;;  %v4393_v11 = vsel %vm4360_vm5, %v12486_v27, %v12487_v23 }
 0x32e   : > { %12754 = vrot.lane.b32.xlu0 %v17417_v59, %s13080_s28  ;;  %11717 = vmatpush1.bf16.msra.mxu0 %v11716_v2  ;;  %v3640_v59 = vmul.f32 0.70710677, %v16047_v13  ;;  %v6604_v50 = vsel %vm6573_vm9, %v6528_v6, %v6530_v53  ;;  %v4762_v51 = vsel %vm4729_vm4, %v12496_v40, %v12497_v5 }
 0x32f   : > { %12759 = vrot.lane.b32.xlu1 %v12758_v43, %s13082_s9  ;;  %v16076_v8 = vpop.permute.xlu0 %6531  ;;  %v11724_v16 = vpack.c.bf16 %v4762_v51, %v4393_v11 }
 0x330   : > { %8220 = vmatpush1.msra.mxu1 %v6602_v49  ;;  %v6605_v44 = vsel %vm6573_vm9, %v6530_v53, %v16076_v8  ;;  %12941 = verf.f32 %v3640_v59  ;;  %v12517_v53 = vunpack.i.h.bf16 %v16003_v22 }
 0x331   : > { %v12540_v45 = vpop.permute.xlu1 %12539  ;;  %11422 = vmatmul.mubr.msk.f32.vlgmr.msra.gmra.mrb[40].mxu1 %vm7205_vm10, %v15945_v62  ;;  %11719 = vmatprep.subr.bf16.mxu1 %v11718_v28  ;;  %v12507_v28 = vunpack.i.h.bf16 %v15992_v35 }
 0x332   : > { %11721 = vmatpush1.bf16.msra.mxu1 %v11720_v12  ;;  %5825 = vrot.lane.b32.xlu0 %v17424_v55, %s13082_s9  ;;  %v12541_v19 = vunpack.i.l.bf16 %v12540_v45  ;;  %v12542_v7 = vunpack.i.h.bf16 %v12540_v45 }
 0x333   : > { %12764 = vrot.lane.b32.xlu1 %v12758_v43, %s13083_s10  ;;  %8290 = vmatprep.subr.mxu0 %v6605_v44  ;;  %v16094_v24 = vpop.permute.xlu0 %12544  ;;  %v5499_v44 = vsel %vm5466_vm6, %v12516_v42, %v12517_v53  ;;  %v5130_v22 = vsel %vm3393_vm2, %v12506_v36, %v12507_v28 }
 0x334   : > { %8291 = vmatpush1.msra.mxu0 %v6604_v50  ;;  %8409 = vmatprep.mubr.f32.mxu1 %v17235_v18  ;;  %v12546_v48 = vunpack.i.l.bf16 %v16094_v24  ;;  %v4394_v32 = vsel %vm4360_vm5, %v12487_v23, %v12541_v19  ;;  %v4395_v43 = vsel %vm4360_vm5, %v12541_v19, %v12542_v7  ;;  %v17425_v50 = vld [vmem:[#allocation29_spill] sm:$0xff]  ;;  %v11728_v11 = vpack.c.bf16 %v5499_v44, %v5130_v22 }
 0x335   : > { %v12550_v33 = vpop.permute.xlu1 %12549  ;;  %11423 = vmatmul.mubr.msk.f32.vlgmr.msra.gmra.mrb[42].mxu0 %vm7205_vm10, %v15945_v62  ;;  %11735 = vmatprep.subr.bf16.mxu0 %v11734_v60  ;;  %v12257_v44 = vunpack.i.h.bf16 %v17421_v26 }
 0x336   : > { %v12552_v15 = vunpack.i.h.bf16 %v12550_v33  ;;  %v12551_v25 = vunpack.i.l.bf16 %v12550_v33  ;;  %11737 = vmatpush1.bf16.msra.mxu0 %v11736_v39  ;;  %6194 = vrot.lane.b32.xlu0 %v17424_v55, %s13083_s10  ;;  %v4396_v57 = vsel %vm4360_vm5, %v12542_v7, %v12546_v48  ;;  %v13064_v33 = vld [vmem:[%s13381_s22] sm:$0xff] }
 0x337   : > { %6557 = vrot.lane.b32.xlu1 %v17415_v3, %s13077_s24  ;;  %8480 = vmatprep.mubr.f32.mxu0 %v17235_v18  ;;  %v16110_v34 = vpop.permute.xlu0 %12554 }
 0x338   : > { %v4763_v6 = vsel %vm4729_vm4, %v12497_v5, %v12551_v25  ;;  %v12556_v40 = vunpack.i.l.bf16 %v16110_v34  ;;  %v4764_v58 = vsel %vm4729_vm4, %v12551_v25, %v12552_v15 }
 0x339   : > { %v12560_v31 = vpop.permute.xlu1 %12559  ;;  %v11722_v0 = vpack.c.bf16 %v4763_v6, %v4394_v32  ;;  %v11740_v12 = vpack.c.bf16 %v4764_v58, %v4395_v43  ;;  %v3638_v32 = vmul.f32 0.5, %v16047_v13 }
 0x33a   : > { %6559 = vrot.lane.b32.xlu0 %v17422_v38, %s13077_s24  ;;  %v4765_v27 = vsel %vm4729_vm4, %v12552_v15, %v12556_v40  ;;  %v12561_v37 = vunpack.i.l.bf16 %v12560_v31  ;;  %v12942_v45 = vpop.eup %12941  ;;  %v12562_v60 = vunpack.i.h.bf16 %v12560_v31  ;;  %v17426_v15 = vld [vmem:[#allocation6_spill] sm:$0xff] }
 0x33b   : > { %6561 = vrot.lane.b32.xlu1 %v17423_v61, %s13077_s24  ;;  %11723 = vmatprep.subr.bf16.mxu1 %v11722_v0  ;;  %v16131_v2 = vpop.permute.xlu0 %12564  ;;  %v11738_v49 = vpack.c.bf16 %v4765_v27, %v4396_v57  ;;  %v3654_v25 = vrot.slane %v13064_v33, %v17426_v15  ;;  %v3644_v6 = vadd.f32 1.0, %v12942_v45  ;;  %v17427_v0 = vld [vmem:[#allocation58_spill] sm:$0xff]  ;;  %v12527_v27 = vunpack.i.h.bf16 %v16024_v10 }
 0x33c   : > { %11725 = vmatpush1.bf16.msra.mxu1 %v11724_v16  ;;  %v12566_v5 = vunpack.i.l.bf16 %v16131_v2  ;;  %v5131_v39 = vsel %vm3393_vm2, %v12507_v28, %v12561_v37  ;;  %v12537_v16 = vunpack.i.h.bf16 %v16037_v52  ;;  %v5132_v13 = vsel %vm3393_vm2, %v12561_v37, %v12562_v60 }
 0x33d   : > { %v12570_v1 = vpop.permute.xlu1 %12569  ;;  %11739 = vmatprep.subr.bf16.mxu0 %v11738_v49  ;;  %v3646_v28 = vmul.f32 %v3644_v6, %v3638_v32  ;;  %v5868_v52 = vsel %vm5835_vm8, %v12526_v63, %v12527_v27 }
 0x33e   : > { %v12572_v59 = vunpack.i.h.bf16 %v12570_v1  ;;  %v12571_v54 = vunpack.i.l.bf16 %v12570_v1  ;;  %6563 = vrot.lane.b32.xlu0 %v17424_v55, %s13077_s24  ;;  %11741 = vmatpush1.bf16.msra.mxu0 %v11740_v12  ;;  %v5133_v35 = vsel %vm3393_vm2, %v12562_v60, %v12566_v5  ;;  %v17428_v12 = vld [vmem:[#allocation5_spill] sm:$0xff]  ;;  %v6237_v37 = vsel %vm6204_vm7, %v12536_v47, %v12537_v16  ;;  %v17429_v60 = vld [vmem:[#allocation62_spill] sm:$0xff] }
 0x33f   : > { %12769 = vrot.lane.b32.xlu1 %v17425_v50, %s13079_s26  ;;  %v16142_v19 = vpop.permute.xlu0 %12574  ;;  %v3664_v1 = vrot.slane %v3654_v25, %v17428_v12  ;;  %v11732_v6 = vpack.c.bf16 %v6237_v37, %v5868_v52  ;;  %v16211_v12 = vpop.f32.mrb[26].mxu1 }
 0x340   : > { %v5500_v23 = vsel %vm5466_vm6, %v12517_v53, %v12571_v54  ;;  %v12576_v42 = vunpack.i.l.bf16 %v16142_v19  ;;  %v5501_v31 = vsel %vm5466_vm6, %v12571_v54, %v12572_v59 }
 0x341   : > { %v12580_v51 = vpop.permute.xlu1 %12579  ;;  %v11726_v7 = vpack.c.bf16 %v5500_v23, %v5131_v39  ;;  %v11744_v43 = vpack.c.bf16 %v5501_v31, %v5132_v13  ;;  %v12261_v39 = vunpack.i.l.bf16 %v17429_v60  ;;  %v16188_v32 = vmul.f32 %v3664_v1, %v3646_v28  ;;  %v17430_v31 = vld [vmem:[#allocation63_spill] sm:$0xff]  ;;  %v16213_v1 = vpop.f32.mrb[28].mxu0 }
 0x342   : > { %4358 = vrot.lane.b32.xlu0 %v17427_v0, %s13079_s26  ;;  %v5502_v36 = vsel %vm5466_vm6, %v12572_v59, %v12576_v42  ;;  %v12581_v58 = vunpack.i.l.bf16 %v12580_v51  ;;  %v12582_v47 = vunpack.i.h.bf16 %v12580_v51  ;;  %v12262_v51 = vunpack.i.h.bf16 %v17429_v60 }
 0x343   : > { %12774 = vrot.lane.b32.xlu1 %v17425_v50, %s13081_s30  ;;  %11727 = vmatprep.subr.bf16.mxu1 %v11726_v7  ;;  %v11742_v57 = vpack.c.bf16 %v5502_v36, %v5133_v35  ;;  %v4029_v13 = vsel %vm3991_vm3, %v12257_v44, %v12261_v39  ;;  %v12793_v37 = vpack.i.bf16 %v16188_v32, %v17427_v0 }
 0x344   : > { %11729 = vmatpush1.bf16.msra.mxu1 %v11728_v11  ;;  %v16166_v53 = vpop.permute.xlu0 %12584  ;;  %v5869_v33 = vsel %vm5835_vm8, %v12527_v27, %v12581_v58  ;;  %v5870_v27 = vsel %vm5835_vm8, %v12581_v58, %v12582_v47  ;;  %v11750_v26 = vpack.c.bf16 %v4029_v13, %v14787_v21 }
 0x345   : > { %v12590_v49 = vpop.permute.xlu1 %12589  ;;  %11743 = vmatprep.subr.bf16.mxu0 %v11742_v57  ;;  %v12586_v59 = vunpack.i.l.bf16 %v16166_v53  ;;  %v4028_v57 = vsel %vm3991_vm3, %v12256_v41, %v12257_v44  ;;  %v4030_v44 = vsel %vm3991_vm3, %v12261_v39, %v12262_v51 }
 0x346   : > { %v12591_v54 = vunpack.i.l.bf16 %v12590_v49  ;;  %4727 = vrot.lane.b32.xlu0 %v17427_v0, %s13081_s30  ;;  %v12592_v45 = vunpack.i.h.bf16 %v12590_v49  ;;  %11745 = vmatpush1.bf16.msra.mxu0 %v11744_v43  ;;  %v11752_v58 = vpack.c.bf16 %v4028_v57, %v14752_v29  ;;  %v16235_v29 = vpop.f32.mrb[29].mxu0  ;;  %v17431_v57 = vld [vmem:[#allocation80_spill] sm:$0xff]  ;;  %s16837_s30 = scalar_lea.vmem %s16925_s8, %s11326_s25 }
 0x347   : > { %12779 = vrot.lane.b32.xlu1 %v17425_v50, %s13076_s23  ;;  %v5871_v10 = vsel %vm5835_vm8, %v12582_v47, %v12586_v59  ;;  %v16245_v47 = vpop.f32.mrb[30].mxu0 }
 0x348   : > { %v16180_v23 = vpop.permute.xlu0 %12594  ;;  %v6238_v15 = vsel %vm6204_vm7, %v12537_v16, %v12591_v54  ;;  %v6239_v11 = vsel %vm6204_vm7, %v12591_v54, %v12592_v45  ;;  %v12266_v16 = vunpack.i.l.bf16 %v17430_v31 }
 0x349   : > { %v12596_v25 = vunpack.i.l.bf16 %v16180_v23  ;;  %v6534_v22 = vpop.permute.xlu1 %6533  ;;  %v11730_v7 = vpack.c.bf16 %v6238_v15, %v5869_v33  ;;  %v11748_v28 = vpack.c.bf16 %v6239_v11, %v5870_v27  ;;  %v12557_v33 = vunpack.i.h.bf16 %v16110_v34 }
 0x34a   : > { %5096 = vrot.lane.b32.xlu0 %v17427_v0, %s13076_s23  ;;  %v6606_v54 = vsel %vm6573_vm9, %v16076_v8, %v6534_v22  ;;  %v16228_v8 = vpop.f32.mrb[27].mxu1 }
 0x34b   : > { %12784 = vrot.lane.b32.xlu1 %v17425_v50, %s13080_s28  ;;  %11731 = vmatprep.subr.bf16.mxu1 %v11730_v7  ;;  %v6240_v63 = vsel %vm6204_vm7, %v12592_v45, %v12596_v25  ;;  %v4031_v45 = vsel %vm3991_vm3, %v12262_v51, %v12266_v16  ;;  %v16243_v52 = vpop.f32.mrb[28].mxu1 }
 0x34c   : > { %11733 = vmatpush1.bf16.msra.mxu1 %v11732_v6  ;;  %v6536_v35 = vpop.permute.xlu0 %6535  ;;  %v11746_v36 = vpack.c.bf16 %v6240_v63, %v5871_v10  ;;  %v11766_v39 = vpack.c.bf16 %v4031_v45, %v14790_v17  ;;  %v11768_v6 = vpack.c.bf16 %v4030_v44, %v14780_v4  ;;  %v16251_v11 = vpop.f32.mrb[29].mxu1  ;;  %v12547_v10 = vunpack.i.h.bf16 %v16094_v24 }
 0x34d   : > { %v6538_v43 = vpop.permute.xlu1 %6537  ;;  %v6607_v49 = vsel %vm6573_vm9, %v6534_v22, %v6536_v35  ;;  %v16256_v17 = vpop.f32.mrb[31].mxu0 }
 0x34e   : > { %5464 = vrot.lane.b32.xlu0 %v17427_v0, %s13080_s28  ;;  %8361 = vmatprep.subr.mxu1 %v6607_v49  ;;  %v6608_v15 = vsel %vm6573_vm9, %v6536_v35, %v6538_v43  ;;  %v16259_v35 = vpop.f32.mrb[30].mxu1  ;;  %v16261_v4 = vpop.f32.mrb[32].mxu0 }
 0x34f   : > { %12789 = vrot.lane.b32.xlu1 %v17425_v50, %s13082_s9  ;;  %11747 = vmatprep.subr.bf16.mxu0 %v11746_v36  ;;  %v4766_v36 = vsel %vm4729_vm4, %v12556_v40, %v12557_v33  ;;  %v16270_v27 = vpop.f32.mrb[31].mxu1  ;;  %v4397_v40 = vsel %vm4360_vm5, %v12546_v48, %v12547_v10 }
 0x350   : > { %8362 = vmatpush1.msra.mxu1 %v6606_v54  ;;  %11749 = vmatpush1.bf16.msra.mxu0 %v11748_v28  ;;  %v16220_v41 = vpop.permute.xlu0 %6539  ;;  %v11756_v45 = vpack.c.bf16 %v4766_v36, %v4397_v40 }
 0x351   : > { %v12600_v60 = vpop.permute.xlu1 %12599  ;;  %11424 = vmatmul.mubr.msk.f32.vlgmr.msra.gmra.mrb[42].mxu1 %vm7205_vm10, %v15945_v62  ;;  %11751 = vmatprep.subr.bf16.mxu1 %v11750_v26  ;;  %v6609_v21 = vsel %vm6573_vm9, %v6538_v43, %v16220_v41  ;;  %v16272_v43 = vpop.f32.mrb[33].mxu0 }
 0x352   : > { %11753 = vmatpush1.bf16.msra.mxu1 %v11752_v58  ;;  %12794 = vrot.lane.b32.xlu0 %v12793_v37, %s13082_s9  ;;  %v12601_v22 = vunpack.i.l.bf16 %v12600_v60  ;;  %v12602_v49 = vunpack.i.h.bf16 %v12600_v60  ;;  %v12577_v60 = vunpack.i.h.bf16 %v16142_v19 }
 0x353   : > { %12799 = vrot.lane.b32.xlu1 %v17425_v50, %s13083_s10  ;;  %8432 = vmatprep.subr.mxu0 %v6609_v21  ;;  %v17432_v21 = vld [vmem:[#allocation57_spill] sm:$0xff] }
 0x354   : > { %8433 = vmatpush1.msra.mxu0 %v6608_v15  ;;  %v16247_v7 = vpop.permute.xlu0 %12604  ;;  %8551 = vmatprep.mubr.f32.mxu1 %v17235_v18  ;;  %v4398_v54 = vsel %vm4360_vm5, %v12547_v10, %v12601_v22  ;;  %v12567_v10 = vunpack.i.h.bf16 %v16131_v2 }
 0x355   : > { %v12610_v50 = vpop.permute.xlu1 %12609  ;;  %11425 = vmatmul.mubr.msk.f32.vlgmr.msra.gmra.mrb[44].mxu0 %vm7205_vm10, %v15945_v62  ;;  %11767 = vmatprep.subr.bf16.mxu0 %v11766_v39  ;;  %v12606_v13 = vunpack.i.l.bf16 %v16247_v7 }
 0x356   : > { %v12612_v63 = vunpack.i.h.bf16 %v12610_v50  ;;  %v12611_v51 = vunpack.i.l.bf16 %v12610_v50  ;;  %11769 = vmatpush1.bf16.msra.mxu0 %v11768_v6  ;;  %12804 = vrot.lane.b32.xlu0 %v12793_v37, %s13083_s10  ;;  %v7199_v6 = vld [vmem:[%s16922_s5] sm:$0xff]  ;;  %v5134_v19 = vsel %vm3393_vm2, %v12566_v5, %v12567_v10 }
 0x357   : > { %6565 = vrot.lane.b32.xlu1 %v17431_v57, %s13077_s24  ;;  %8622 = vmatprep.mubr.f32.mxu0 %v17235_v18  ;;  %v4400_v24 = vsel %vm4360_vm5, %v12602_v49, %v12606_v13 }
 0x358   : > { %v16274_v28 = vpop.permute.xlu0 %12614  ;;  %v4767_v34 = vsel %vm4729_vm4, %v12557_v33, %v12611_v51  ;;  %v4768_v44 = vsel %vm4729_vm4, %v12611_v51, %v12612_v63  ;;  %v4399_v33 = vsel %vm4360_vm5, %v12601_v22, %v12602_v49  ;;  %v5503_v22 = vsel %vm5466_vm6, %v12576_v42, %v12577_v60  ;;  %v9264_v49 = vld [vmem:[%s16924_s7] sm:$0x7] }
 0x359   : > { %v12616_v26 = vunpack.i.l.bf16 %v16274_v28  ;;  %v12620_v58 = vpop.permute.xlu1 %12619  ;;  %v11754_v37 = vpack.c.bf16 %v4767_v34, %v4398_v54  ;;  %v11772_v50 = vpack.c.bf16 %v4768_v44, %v4399_v33 }
 0x35a   : > { %6567 = vrot.lane.b32.xlu0 %v17432_v21, %s13077_s24  ;;  %v12621_v15 = vunpack.i.l.bf16 %v12620_v58  ;;  %v12622_v34 = vunpack.i.h.bf16 %v12620_v58  ;;  %v12597_v58 = vunpack.i.h.bf16 %v16180_v23 }
 0x35b   : > { %6569 = vrot.lane.b32.xlu1 %v17427_v0, %s13077_s24  ;;  %11755 = vmatprep.subr.bf16.mxu1 %v11754_v37  ;;  %v4769_v48 = vsel %vm4729_vm4, %v12612_v63, %v12616_v26 }
 0x35c   : > { %11757 = vmatpush1.bf16.msra.mxu1 %v11756_v45  ;;  %v16295_v39 = vpop.permute.xlu0 %12624  ;;  %v11770_v0 = vpack.c.bf16 %v4769_v48, %v4400_v24  ;;  %v5135_v37 = vsel %vm3393_vm2, %v12567_v10, %v12621_v15  ;;  %v11760_v24 = vpack.c.bf16 %v5503_v22, %v5134_v19  ;;  %v5136_v5 = vsel %vm3393_vm2, %v12621_v15, %v12622_v34  ;;  %v17433_v15 = vld [vmem:[#allocation64_spill] sm:$0xff] }
 0x35d   : > { %v12630_v51 = vpop.permute.xlu1 %12629  ;;  %v12626_v63 = vunpack.i.l.bf16 %v16295_v39  ;;  %v12587_v10 = vunpack.i.h.bf16 %v16166_v53 }
 0x35e   : > { %v12632_v36 = vunpack.i.h.bf16 %v12630_v51  ;;  %v12631_v54 = vunpack.i.l.bf16 %v12630_v51  ;;  %6571 = vrot.lane.b32.xlu0 %v16188_v32, %s13077_s24  ;;  %11771 = vmatprep.subr.bf16.mxu0 %v11770_v0 }
 0x35f   : > { %7202 = vperm.xlu1 %11897, %v7199_v6   ;;  %11773 = vmatpush1.bf16.msra.mxu0 %v11772_v50  ;;  %v5137_v33 = vsel %vm3393_vm2, %v12622_v34, %v12626_v63  ;;  %v12271_v34 = vunpack.i.l.bf16 %v17433_v15  ;;  %v5872_v23 = vsel %vm5835_vm8, %v12586_v59, %v12587_v10 }
 0x360   : > { %v16310_v40 = vpop.permute.xlu0 %12634  ;;  %v5504_v32 = vsel %vm5466_vm6, %v12577_v60, %v12631_v54  ;;  %v5505_v48 = vsel %vm5466_vm6, %v12631_v54, %v12632_v36 }
 0x361   : > { %v12636_v42 = vunpack.i.l.bf16 %v16310_v40  ;;  %v12640_v45 = vpop.permute.xlu1 %12639  ;;  %v11758_v44 = vpack.c.bf16 %v5504_v32, %v5135_v37  ;;  %v11776_v50 = vpack.c.bf16 %v5505_v48, %v5136_v5 }
 0x362   : > { %9267 = vperm.xlu0 %11896, %v9264_v49   ;;  %v12641_v60 = vunpack.i.l.bf16 %v12640_v45  ;;  %v6241_v49 = vsel %vm6204_vm7, %v12596_v25, %v12597_v58  ;;  %v12642_v37 = vunpack.i.h.bf16 %v12640_v45  ;;  %v12272_v45 = vunpack.i.h.bf16 %v17433_v15 }
 0x363   : > { %11759 = vmatprep.subr.bf16.mxu1 %v11758_v44  ;;  %v5506_v2 = vsel %vm5466_vm6, %v12632_v36, %v12636_v42 }
 0x364   : > { %11761 = vmatpush1.bf16.msra.mxu1 %v11760_v24  ;;  %v16327_v6 = vpop.permute.xlu0 %12644  ;;  %v11774_v0 = vpack.c.bf16 %v5506_v2, %v5137_v33  ;;  %v5873_v19 = vsel %vm5835_vm8, %v12587_v10, %v12641_v60  ;;  %v12267_v24 = vunpack.i.h.bf16 %v17430_v31  ;;  %v11764_v2 = vpack.c.bf16 %v6241_v49, %v5872_v23 }
 0x365   : > { %v12650_v51 = vpop.permute.xlu1 %12649  ;;  %v12646_v36 = vunpack.i.l.bf16 %v16327_v6  ;;  %v5874_v59 = vsel %vm5835_vm8, %v12641_v60, %v12642_v37  ;;  %v4034_v31 = vsel %vm3991_vm3, %v12271_v34, %v12272_v45 }
 0x366   : > { %v12652_v54 = vunpack.i.h.bf16 %v12650_v51  ;;  %v12651_v22 = vunpack.i.l.bf16 %v12650_v51  ;;  %11775 = vmatprep.subr.bf16.mxu0 %v11774_v0  ;;  %v17434_v0 = vld [vmem:[#allocation66_spill] sm:$0xff]  ;;  %v4032_v49 = vsel %vm3991_vm3, %v12266_v16, %v12267_v24 }
 0x367   : > { %11777 = vmatpush1.bf16.msra.mxu0 %v11776_v50  ;;  %v12276_v50 = vunpack.i.l.bf16 %v17434_v0 }
 0x368   : > { %v16335_v32 = vpop.permute.xlu0 %12654  ;;  %v6242_v44 = vsel %vm6204_vm7, %v12597_v58, %v12651_v22  ;;  %v6243_v5 = vsel %vm6204_vm7, %v12651_v22, %v12652_v54  ;;  %v5875_v58 = vsel %vm5835_vm8, %v12642_v37, %v12646_v36  ;;  %v4033_v22 = vsel %vm3991_vm3, %v12267_v24, %v12271_v34 }
 0x369   : > { %v12656_v25 = vunpack.i.l.bf16 %v16335_v32  ;;  %v6542_v48 = vpop.permute.xlu1 %6541  ;;  %v11762_v33 = vpack.c.bf16 %v6242_v44, %v5873_v19  ;;  %v11780_v15 = vpack.c.bf16 %v6243_v5, %v5874_v59  ;;  %v11782_v60 = vpack.c.bf16 %v4033_v22, %v17405_v14 }
 0x36a   : > { %v4035_v37 = vsel %vm3991_vm3, %v12272_v45, %v12276_v50  ;;  %v11784_v24 = vpack.c.bf16 %v4032_v49, %v17404_v46  ;;  %v12617_v34 = vunpack.i.h.bf16 %v16274_v28  ;;  %v12607_v5 = vunpack.i.h.bf16 %v16247_v7 }
 0x36b   : > { %11763 = vmatprep.subr.bf16.mxu1 %v11762_v33  ;;  %v6244_v53 = vsel %vm6204_vm7, %v12652_v54, %v12656_v25  ;;  %v6610_v54 = vsel %vm6573_vm9, %v16220_v41, %v6542_v48  ;;  %v11800_v33 = vpack.c.bf16 %v4034_v31, %v17406_v9 }
 0x36c   : > { %11765 = vmatpush1.bf16.msra.mxu1 %v11764_v2  ;;  %v6544_v10 = vpop.permute.xlu0 %6543  ;;  %v11778_v51 = vpack.c.bf16 %v6244_v53, %v5875_v58  ;;  %v4770_v9 = vsel %vm4729_vm4, %v12616_v26, %v12617_v34  ;;  %v4401_v22 = vsel %vm4360_vm5, %v12606_v13, %v12607_v5 }
 0x36d   : > { %v6546_v19 = vpop.permute.xlu1 %6545  ;;  %v6611_v44 = vsel %vm6573_vm9, %v6542_v48, %v6544_v10  ;;  %v11798_v48 = vpack.c.bf16 %v4035_v37, %v17410_v56  ;;  %v11788_v28 = vpack.c.bf16 %v4770_v9, %v4401_v22 }
 0x36e   : > { %8503 = vmatprep.subr.mxu1 %v6611_v44  ;;  %11779 = vmatprep.subr.bf16.mxu0 %v11778_v51  ;;  %v6612_v14 = vsel %vm6573_vm9, %v6544_v10, %v6546_v19  ;;  %v12637_v44 = vunpack.i.h.bf16 %v16310_v40 }
 0x36f   : > { %11781 = vmatpush1.bf16.msra.mxu0 %v11780_v15 }
 0x370   : > { %8504 = vmatpush1.msra.mxu1 %v6610_v54  ;;  %v16366_v16 = vpop.permute.xlu0 %6547 }
 0x371   : > { %v12660_v23 = vpop.permute.xlu1 %12659  ;;  %11426 = vmatmul.mubr.msk.f32.vlgmr.msra.gmra.mrb[44].mxu1 %vm7205_vm10, %v15945_v62  ;;  %11783 = vmatprep.subr.bf16.mxu1 %v11782_v60  ;;  %v6613_v41 = vsel %vm6573_vm9, %v6546_v19, %v16366_v16 }
 0x372   : > { %11785 = vmatpush1.bf16.msra.mxu1 %v11784_v24  ;;  %8574 = vmatprep.subr.mxu0 %v6613_v41  ;;  %v12661_v46 = vunpack.i.l.bf16 %v12660_v23  ;;  %v12662_v59 = vunpack.i.h.bf16 %v12660_v23  ;;  %v12627_v24 = vunpack.i.h.bf16 %v16295_v39 }
 0x373   : > { %8575 = vmatpush1.msra.mxu0 %v6612_v14  ;;  %8693 = vmatprep.mubr.f32.mxu1 %v17235_v18 }
 0x374   : > { %v16378_v2 = vpop.permute.xlu0 %12664  ;;  %11427 = vmatmul.mubr.msk.f32.vlgmr.msra.gmra.mrb[46].mxu0 %vm7205_vm10, %v15945_v62  ;;  %11799 = vmatprep.subr.bf16.mxu0 %v11798_v48  ;;  %v4402_v62 = vsel %vm4360_vm5, %v12607_v5, %v12661_v46  ;;  %v4403_v13 = vsel %vm4360_vm5, %v12661_v46, %v12662_v59 }
 0x375   : > { %v12670_v45 = vpop.permute.xlu1 %12669  ;;  %11801 = vmatpush1.bf16.msra.mxu0 %v11800_v33  ;;  %8764 = vmatprep.mubr.f32.mxu0 %v17235_v18  ;;  %v12666_v53 = vunpack.i.l.bf16 %v16378_v2 }
 0x376   : > { %v12672_v56 = vunpack.i.h.bf16 %v12670_v45  ;;  %v12671_v58 = vunpack.i.l.bf16 %v12670_v45 }
 0x377   : > { %v4404_v54 = vsel %vm4360_vm5, %v12662_v59, %v12666_v53 }
 0x378   : > { %v16388_v10 = vpop.permute.xlu0 %12674  ;;  %v4771_v51 = vsel %vm4729_vm4, %v12617_v34, %v12671_v58  ;;  %v4772_v26 = vsel %vm4729_vm4, %v12671_v58, %v12672_v56  ;;  %v5507_v34 = vsel %vm5466_vm6, %v12636_v42, %v12637_v44  ;;  %v5138_v58 = vsel %vm3393_vm2, %v12626_v63, %v12627_v24 }
 0x379   : > { %v12676_v49 = vunpack.i.l.bf16 %v16388_v10  ;;  %v12680_v15 = vpop.permute.xlu1 %12679  ;;  %v11786_v19 = vpack.c.bf16 %v4771_v51, %v4402_v62  ;;  %v11804_v23 = vpack.c.bf16 %v4772_v26, %v4403_v13  ;;  %v11792_v62 = vpack.c.bf16 %v5507_v34, %v5138_v58 }
 0x37a   : > { %v12681_v60 = vunpack.i.l.bf16 %v12680_v15  ;;  %v12682_v46 = vunpack.i.h.bf16 %v12680_v15  ;;  %v12657_v51 = vunpack.i.h.bf16 %v16335_v32  ;;  %v12277_v58 = vunpack.i.h.bf16 %v17434_v0 }
 0x37b   : > { %11787 = vmatprep.subr.bf16.mxu1 %v11786_v19  ;;  %v4773_v7 = vsel %vm4729_vm4, %v12672_v56, %v12676_v49 }
 0x37c   : > { %11789 = vmatpush1.bf16.msra.mxu1 %v11788_v28  ;;  %v16405_v37 = vpop.permute.xlu0 %12684  ;;  %v11802_v31 = vpack.c.bf16 %v4773_v7, %v4404_v54  ;;  %v5139_v45 = vsel %vm3393_vm2, %v12627_v24, %v12681_v60  ;;  %v5140_v63 = vsel %vm3393_vm2, %v12681_v60, %v12682_v46  ;;  %v6245_v60 = vsel %vm6204_vm7, %v12656_v25, %v12657_v51 }
 0x37d   : > { %v12690_v41 = vpop.permute.xlu1 %12689  ;;  %v12686_v33 = vunpack.i.l.bf16 %v16405_v37 }
 0x37e   : > { %v12692_v14 = vunpack.i.h.bf16 %v12690_v41  ;;  %v12691_v48 = vunpack.i.l.bf16 %v12690_v41  ;;  %11803 = vmatprep.subr.bf16.mxu0 %v11802_v31  ;;  %v17435_v41 = vld [vmem:[#allocation67_spill] sm:$0xff] }
 0x37f   : > { %11805 = vmatpush1.bf16.msra.mxu0 %v11804_v23  ;;  %v5141_v22 = vsel %vm3393_vm2, %v12682_v46, %v12686_v33 }
 0x380   : > { %v16412_v5 = vpop.permute.xlu0 %12694  ;;  %v5508_v56 = vsel %vm5466_vm6, %v12637_v44, %v12691_v48  ;;  %v5509_v42 = vsel %vm5466_vm6, %v12691_v48, %v12692_v14  ;;  %v12647_v44 = vunpack.i.h.bf16 %v16327_v6 }
 0x381   : > { %v12696_v9 = vunpack.i.l.bf16 %v16412_v5  ;;  %v12700_v59 = vpop.permute.xlu1 %12699  ;;  %v11790_v40 = vpack.c.bf16 %v5508_v56, %v5139_v45  ;;  %v11808_v54 = vpack.c.bf16 %v5509_v42, %v5140_v63 }
 0x382   : > { %v12701_v15 = vunpack.i.l.bf16 %v12700_v59  ;;  %v12702_v48 = vunpack.i.h.bf16 %v12700_v59  ;;  %v5876_v32 = vsel %vm5835_vm8, %v12646_v36, %v12647_v44 }
 0x383   : > { %11791 = vmatprep.subr.bf16.mxu1 %v11790_v40  ;;  %v5510_v39 = vsel %vm5466_vm6, %v12692_v14, %v12696_v9  ;;  %v16431_v26 = vpop.f32.mrb[32].mxu1  ;;  %v12281_v14 = vunpack.i.l.bf16 %v17435_v41  ;;  %v11796_v59 = vpack.c.bf16 %v6245_v60, %v5876_v32  ;;  %v16482_v32 = vld [vmem:[%s16921_s4] sm:$0xff] }
 0x384   : > { %11793 = vmatpush1.bf16.msra.mxu1 %v11792_v62  ;;  %v16429_v19 = vpop.permute.xlu0 %12704  ;;  %v11806_v28 = vpack.c.bf16 %v5510_v39, %v5141_v22  ;;  %v16434_v13 = vpop.f32.mrb[33].mxu1  ;;  %v5877_v46 = vsel %vm5835_vm8, %v12647_v44, %v12701_v15  ;;  %v12282_v39 = vunpack.i.h.bf16 %v17435_v41 }
 0x385   : > { %v12710_v7 = vpop.permute.xlu1 %12709  ;;  %v12706_v23 = vunpack.i.l.bf16 %v16429_v19 }
 0x386   : > { %v12712_v31 = vunpack.i.h.bf16 %v12710_v7  ;;  %v12711_v24 = vunpack.i.l.bf16 %v12710_v7  ;;  %11807 = vmatprep.subr.bf16.mxu0 %v11806_v28  ;;  %v5878_v28 = vsel %vm5835_vm8, %v12701_v15, %v12702_v48  ;;  %v4037_v7 = vsel %vm3991_vm3, %v12277_v58, %v12281_v14 }
 0x387   : > { %11809 = vmatpush1.bf16.msra.mxu0 %v11808_v54  ;;  %v16445_v56 = vpop.f32.mrb[34].mxu0  ;;  %v5879_v6 = vsel %vm5835_vm8, %v12702_v48, %v12706_v23  ;;  %v11814_v15 = vpack.c.bf16 %v4037_v7, %v17414_v20  ;;  %v4038_v0 = vsel %vm3991_vm3, %v12281_v14, %v12282_v39 }
 0x388   : > { %v16441_v34 = vpop.permute.xlu0 %12714  ;;  %v6246_v45 = vsel %vm6204_vm7, %v12657_v51, %v12711_v24  ;;  %v16452_v42 = vpop.f32.mrb[35].mxu0  ;;  %v6247_v22 = vsel %vm6204_vm7, %v12711_v24, %v12712_v31  ;;  %v17436_v51 = vld [vmem:[#allocation68_spill] sm:$0xff]  ;;  %v4036_v24 = vsel %vm3991_vm3, %v12276_v50, %v12277_v58 }
 0x389   : > { %v12716_v25 = vunpack.i.l.bf16 %v16441_v34  ;;  %v6550_v40 = vpop.permute.xlu1 %6549  ;;  %v11794_v62 = vpack.c.bf16 %v6246_v45, %v5877_v46  ;;  %v12286_v63 = vunpack.i.l.bf16 %v17436_v51  ;;  %v11812_v60 = vpack.c.bf16 %v6247_v22, %v5878_v28 }
 0x38a   : > { %v11816_v45 = vpack.c.bf16 %v4036_v24, %v17411_v30  ;;  %v12677_v30 = vunpack.i.h.bf16 %v16388_v10  ;;  %v12667_v22 = vunpack.i.h.bf16 %v16378_v2 }
 0x38b   : > { %11795 = vmatprep.subr.bf16.mxu1 %v11794_v62  ;;  %v6248_v36 = vsel %vm6204_vm7, %v12712_v31, %v12716_v25  ;;  %v6614_v31 = vsel %vm6573_vm9, %v16366_v16, %v6550_v40  ;;  %v4039_v48 = vsel %vm3991_vm3, %v12282_v39, %v12286_v63 }
 0x38c   : > { %11797 = vmatpush1.bf16.msra.mxu1 %v11796_v59  ;;  %v6552_v44 = vpop.permute.xlu0 %6551  ;;  %v11810_v54 = vpack.c.bf16 %v6248_v36, %v5879_v6  ;;  %v11830_v14 = vpack.c.bf16 %v4039_v48, %v17422_v38  ;;  %v4405_v24 = vsel %vm4360_vm5, %v12666_v53, %v12667_v22 }
 0x38d   : > { %v6554_v41 = vpop.permute.xlu1 %6553  ;;  %v6615_v46 = vsel %vm6573_vm9, %v6550_v40, %v6552_v44  ;;  %v11832_v40 = vpack.c.bf16 %v4038_v0, %v17415_v3  ;;  %v4774_v3 = vsel %vm4729_vm4, %v12676_v49, %v12677_v30 }
 0x38e   : > { %8645 = vmatprep.subr.mxu1 %v6615_v46  ;;  %11811 = vmatprep.subr.bf16.mxu0 %v11810_v54  ;;  %v6616_v16 = vsel %vm6573_vm9, %v6552_v44, %v6554_v41  ;;  %v11820_v10 = vpack.c.bf16 %v4774_v3, %v4405_v24  ;;  %v12717_v24 = vunpack.i.h.bf16 %v16441_v34 }
 0x38f   : > { %11813 = vmatpush1.bf16.msra.mxu0 %v11812_v60 }
 0x390   : > { %8646 = vmatpush1.msra.mxu1 %v6614_v31  ;;  %v16476_v50 = vpop.permute.xlu0 %6555  ;;  %v12697_v31 = vunpack.i.h.bf16 %v16412_v5 }
 0x391   : > { %v12720_v58 = vpop.permute.xlu1 %12719  ;;  %11428 = vmatmul.mubr.msk.f32.vlgmr.msra.gmra.mrb[46].mxu1 %vm7205_vm10, %v16482_v32  ;;  %11815 = vmatprep.subr.bf16.mxu1 %v11814_v15  ;;  %v6617_v20 = vsel %vm6573_vm9, %v6554_v41, %v16476_v50 }
 0x392   : > { %11817 = vmatpush1.bf16.msra.mxu1 %v11816_v45  ;;  %8716 = vmatprep.subr.mxu0 %v6617_v20  ;;  %v12721_v62 = vunpack.i.l.bf16 %v12720_v58  ;;  %v12722_v28 = vunpack.i.h.bf16 %v12720_v58  ;;  %v12687_v58 = vunpack.i.h.bf16 %v16405_v37 }
 0x393   : > { %8717 = vmatpush1.msra.mxu0 %v6616_v16  ;;  %8835 = vmatprep.mubr.f32.mxu1 %v17235_v18 }
 0x394   : > { %v16493_v59 = vpop.permute.xlu0 %12724  ;;  %11429 = vmatmul.mubr.msk.f32.vlgmr.msra.gmra.mrb[48].mxu0 %vm7205_vm10, %v16482_v32  ;;  %11831 = vmatprep.subr.bf16.mxu0 %v11830_v14  ;;  %v4406_v54 = vsel %vm4360_vm5, %v12667_v22, %v12721_v62  ;;  %v4407_v53 = vsel %vm4360_vm5, %v12721_v62, %v12722_v28  ;;  %v5142_v3 = vsel %vm3393_vm2, %v12686_v33, %v12687_v58 }
 0x395   : > { %v12730_v39 = vpop.permute.xlu1 %12729  ;;  %11833 = vmatpush1.bf16.msra.mxu0 %v11832_v40  ;;  %8906 = vmatprep.mubr.f32.mxu0 %v17235_v18  ;;  %v12726_v36 = vunpack.i.l.bf16 %v16493_v59  ;;  %v5511_v40 = vsel %vm5466_vm6, %v12696_v9, %v12697_v31 }
 0x396   : > { %v12732_v38 = vunpack.i.h.bf16 %v12730_v39  ;;  %v12731_v6 = vunpack.i.l.bf16 %v12730_v39 }
 0x397   : > { %v4408_v15 = vsel %vm4360_vm5, %v12722_v28, %v12726_v36 }
 0x398   : > { %v16503_v44 = vpop.permute.xlu0 %12734  ;;  %v4775_v7 = vsel %vm4729_vm4, %v12677_v30, %v12731_v6  ;;  %v4776_v49 = vsel %vm4729_vm4, %v12731_v6, %v12732_v38 }
 0x399   : > { %v12736_v60 = vunpack.i.l.bf16 %v16503_v44  ;;  %v12740_v41 = vpop.permute.xlu1 %12739  ;;  %v11818_v46 = vpack.c.bf16 %v4775_v7, %v4406_v54  ;;  %v11836_v20 = vpack.c.bf16 %v4776_v49, %v4407_v53  ;;  %v11824_v7 = vpack.c.bf16 %v5511_v40, %v5142_v3 }
 0x39a   : > { %v12741_v48 = vunpack.i.l.bf16 %v12740_v41  ;;  %v12742_v62 = vunpack.i.h.bf16 %v12740_v41 }
 0x39b   : > { %11819 = vmatprep.subr.bf16.mxu1 %v11818_v46  ;;  %v4777_v2 = vsel %vm4729_vm4, %v12732_v38, %v12736_v60 }
 0x39c   : > { %11821 = vmatpush1.bf16.msra.mxu1 %v11820_v10  ;;  %v16520_v0 = vpop.permute.xlu0 %12744  ;;  %v11834_v45 = vpack.c.bf16 %v4777_v2, %v4408_v15  ;;  %v5143_v38 = vsel %vm3393_vm2, %v12687_v58, %v12741_v48  ;;  %v5144_v33 = vsel %vm3393_vm2, %v12741_v48, %v12742_v62  ;;  %v12707_v15 = vunpack.i.h.bf16 %v16429_v19 }
 0x39d   : > { %v12750_v16 = vpop.permute.xlu1 %12749  ;;  %v12746_v22 = vunpack.i.l.bf16 %v16520_v0  ;;  %v6249_v48 = vsel %vm6204_vm7, %v12716_v25, %v12717_v24 }
 0x39e   : > { %v12752_v14 = vunpack.i.h.bf16 %v12750_v16  ;;  %v12751_v30 = vunpack.i.l.bf16 %v12750_v16  ;;  %11835 = vmatprep.subr.bf16.mxu0 %v11834_v45 }
 0x39f   : > { %11837 = vmatpush1.bf16.msra.mxu0 %v11836_v20  ;;  %v5145_v41 = vsel %vm3393_vm2, %v12742_v62, %v12746_v22 }
 0x3a0   : > { %v16527_v39 = vpop.permute.xlu0 %12754  ;;  %v5512_v6 = vsel %vm5466_vm6, %v12697_v31, %v12751_v30  ;;  %v5513_v9 = vsel %vm5466_vm6, %v12751_v30, %v12752_v14  ;;  %v17437_v30 = vld [vmem:[#allocation69_spill] sm:$0xff] }
 0x3a1   : > { %v12756_v28 = vunpack.i.l.bf16 %v16527_v39  ;;  %v12760_v54 = vpop.permute.xlu1 %12759  ;;  %v11822_v5 = vpack.c.bf16 %v5512_v6, %v5143_v38  ;;  %v11840_v2 = vpack.c.bf16 %v5513_v9, %v5144_v33  ;;  %v12291_v40 = vunpack.i.l.bf16 %v17437_v30 }
 0x3a2   : > { %v12761_v46 = vunpack.i.l.bf16 %v12760_v54  ;;  %v12762_v58 = vunpack.i.h.bf16 %v12760_v54  ;;  %v12292_v19 = vunpack.i.h.bf16 %v17437_v30 }
 0x3a3   : > { %11823 = vmatprep.subr.bf16.mxu1 %v11822_v5  ;;  %v5514_v37 = vsel %vm5466_vm6, %v12752_v14, %v12756_v28  ;;  %v12287_v14 = vunpack.i.h.bf16 %v17436_v51  ;;  %v5880_v5 = vsel %vm5835_vm8, %v12706_v23, %v12707_v15 }
 0x3a4   : > { %11825 = vmatpush1.bf16.msra.mxu1 %v11824_v7  ;;  %v16544_v10 = vpop.permute.xlu0 %5825  ;;  %v11838_v49 = vpack.c.bf16 %v5514_v37, %v5145_v41  ;;  %v16546_v31 = vpop.f32.mrb[34].mxu1  ;;  %v5881_v6 = vsel %vm5835_vm8, %v12707_v15, %v12761_v46  ;;  %v11828_v37 = vpack.c.bf16 %v6249_v48, %v5880_v5  ;;  %v5882_v33 = vsel %vm5835_vm8, %v12761_v46, %v12762_v58  ;;  %v17438_v46 = vld [vmem:[#allocation70_spill] sm:$0xff] }
 0x3a5   : > { %v12765_v53 = vpop.permute.xlu1 %12764  ;;  %v16549_v45 = vpop.f32.mrb[35].mxu1  ;;  %v5883_v34 = vsel %vm5835_vm8, %v12762_v58, %v16544_v10  ;;  %v4041_v15 = vsel %vm3991_vm3, %v12287_v14, %v12291_v40  ;;  %v4043_v58 = vsel %vm3991_vm3, %v12292_v19, %v17438_v46  ;;  %v4042_v30 = vsel %vm3991_vm3, %v12291_v40, %v12292_v19 }
 0x3a6   : > { %v12767_v20 = vunpack.i.h.bf16 %v12765_v53  ;;  %v12766_v16 = vunpack.i.l.bf16 %v12765_v53  ;;  %11839 = vmatprep.subr.bf16.mxu0 %v11838_v49  ;;  %v11846_v48 = vpack.c.bf16 %v4041_v15, %v17424_v55  ;;  %v12737_v55 = vunpack.i.h.bf16 %v16503_v44 }
 0x3a7   : > { %11841 = vmatpush1.bf16.msra.mxu0 %v11840_v2  ;;  %v4040_v2 = vsel %vm3991_vm3, %v12286_v63, %v12287_v14  ;;  %v11864_v40 = vpack.c.bf16 %v4042_v30, %v17431_v57  ;;  %v12727_v5 = vunpack.i.h.bf16 %v16493_v59  ;;  %v12747_v59 = vunpack.i.h.bf16 %v16520_v0 }
 0x3a8   : > { %v6251_v62 = vsel %vm6204_vm7, %v12766_v16, %v12767_v20  ;;  %v16557_v38 = vpop.permute.xlu0 %6194  ;;  %v6250_v3 = vsel %vm6204_vm7, %v12717_v24, %v12766_v16  ;;  %v16561_v54 = vpop.f32.mrb[36].mxu0  ;;  %v11848_v51 = vpack.c.bf16 %v4040_v2, %v17423_v61  ;;  %v4778_v57 = vsel %vm4729_vm4, %v12736_v60, %v12737_v55 }
 0x3a9   : > { %v6252_v25 = vsel %vm6204_vm7, %v12767_v20, %v16557_v38  ;;  %v6558_v7 = vpop.permute.xlu1 %6557  ;;  %v11826_v9 = vpack.c.bf16 %v6250_v3, %v5881_v6  ;;  %v16570_v41 = vpop.f32.mrb[37].mxu0  ;;  %v11844_v49 = vpack.c.bf16 %v6251_v62, %v5882_v33  ;;  %v11862_v6 = vpack.c.bf16 %v4043_v58, %v17432_v21 }
 0x3aa   : > { %v11842_v24 = vpack.c.bf16 %v6252_v25, %v5883_v34  ;;  %v6618_v16 = vsel %vm6573_vm9, %v16476_v50, %v6558_v7 }
 0x3ab   : > { %11827 = vmatprep.subr.bf16.mxu1 %v11826_v9 }
 0x3ac   : > { %11829 = vmatpush1.bf16.msra.mxu1 %v11828_v37  ;;  %v6560_v23 = vpop.permute.xlu0 %6559  ;;  %11843 = vmatprep.subr.bf16.mxu0 %v11842_v24 }
 0x3ad   : > { %v6562_v53 = vpop.permute.xlu1 %6561  ;;  %11845 = vmatpush1.bf16.msra.mxu0 %v11844_v49  ;;  %v6619_v20 = vsel %vm6573_vm9, %v6558_v7, %v6560_v23  ;;  %v4409_v49 = vsel %vm4360_vm5, %v12726_v36, %v12727_v5 }
 0x3ae   : > { %8787 = vmatprep.subr.mxu1 %v6619_v20  ;;  %v6620_v50 = vsel %vm6573_vm9, %v6560_v23, %v6562_v53  ;;  %v11852_v44 = vpack.c.bf16 %v4778_v57, %v4409_v49  ;;  %v12757_v20 = vunpack.i.h.bf16 %v16527_v39 }
 0x3b0   : > { %8788 = vmatpush1.msra.mxu1 %v6618_v16  ;;  %v16585_v62 = vpop.permute.xlu0 %6563 }
 0x3b1   : > { %v12770_v63 = vpop.permute.xlu1 %12769  ;;  %11430 = vmatmul.mubr.msk.f32.vlgmr.msra.gmra.mrb[48].mxu1 %vm7205_vm10, %v16482_v32  ;;  %11847 = vmatprep.subr.bf16.mxu1 %v11846_v48  ;;  %v6621_v14 = vsel %vm6573_vm9, %v6562_v53, %v16585_v62 }
 0x3b2   : > { %11849 = vmatpush1.bf16.msra.mxu1 %v11848_v51  ;;  %8858 = vmatprep.subr.mxu0 %v6621_v14  ;;  %v12771_v61 = vunpack.i.l.bf16 %v12770_v63  ;;  %v12772_v34 = vunpack.i.h.bf16 %v12770_v63  ;;  %v5515_v63 = vsel %vm5466_vm6, %v12756_v28, %v12757_v20 }
 0x3b3   : > { %8859 = vmatpush1.msra.mxu0 %v6620_v50  ;;  %8977 = vmatprep.mubr.f32.mxu1 %v17235_v18 }
 0x3b4   : > { %v4359_v3 = vpop.permute.xlu0 %4358  ;;  %11431 = vmatmul.mubr.msk.f32.vlgmr.msra.gmra.mrb[50].mxu0 %vm7205_vm10, %v16482_v32  ;;  %11863 = vmatprep.subr.bf16.mxu0 %v11862_v6  ;;  %v4410_v33 = vsel %vm4360_vm5, %v12727_v5, %v12771_v61  ;;  %v4411_v60 = vsel %vm4360_vm5, %v12771_v61, %v12772_v34 }
 0x3b5   : > { %v12775_v21 = vpop.permute.xlu1 %12774  ;;  %11865 = vmatpush1.bf16.msra.mxu0 %v11864_v40  ;;  %9048 = vmatprep.mubr.f32.mxu0 %v17235_v18  ;;  %v4412_v19 = vsel %vm4360_vm5, %v12772_v34, %v4359_v3  ;;  %v5146_v40 = vsel %vm3393_vm2, %v12746_v22, %v12747_v59 }
 0x3b6   : > { %v12777_v25 = vunpack.i.h.bf16 %v12775_v21  ;;  %v12776_v7 = vunpack.i.l.bf16 %v12775_v21  ;;  %v11856_v39 = vpack.c.bf16 %v5515_v63, %v5146_v40 }
 0x3b8   : > { %v4780_v9 = vsel %vm4729_vm4, %v12776_v7, %v12777_v25  ;;  %v4728_v37 = vpop.permute.xlu0 %4727  ;;  %v4779_v24 = vsel %vm4729_vm4, %v12737_v55, %v12776_v7 }
 0x3b9   : > { %v4781_v23 = vsel %vm4729_vm4, %v12777_v25, %v4728_v37  ;;  %v12780_v15 = vpop.permute.xlu1 %12779  ;;  %v11850_v2 = vpack.c.bf16 %v4779_v24, %v4410_v33  ;;  %v11868_v46 = vpack.c.bf16 %v4780_v9, %v4411_v60 }
 0x3ba   : > { %v11866_v53 = vpack.c.bf16 %v4781_v23, %v4412_v19  ;;  %v12781_v58 = vunpack.i.l.bf16 %v12780_v15  ;;  %v12782_v48 = vunpack.i.h.bf16 %v12780_v15 }
 0x3bb   : > { %11851 = vmatprep.subr.bf16.mxu1 %v11850_v2 }
 0x3bc   : > { %11853 = vmatpush1.bf16.msra.mxu1 %v11852_v44  ;;  %v5097_v16 = vpop.permute.xlu0 %5096  ;;  %11867 = vmatprep.subr.bf16.mxu0 %v11866_v53  ;;  %v5147_v50 = vsel %vm3393_vm2, %v12747_v59, %v12781_v58  ;;  %v5148_v28 = vsel %vm3393_vm2, %v12781_v58, %v12782_v48 }
 0x3bd   : > { %v12785_v36 = vpop.permute.xlu1 %12784  ;;  %11869 = vmatpush1.bf16.msra.mxu0 %v11868_v46  ;;  %v5149_v61 = vsel %vm3393_vm2, %v12782_v48, %v5097_v16 }
 0x3be   : > { %v12787_v30 = vunpack.i.h.bf16 %v12785_v36  ;;  %v12786_v51 = vunpack.i.l.bf16 %v12785_v36 }
 0x3c0   : > { %v5517_v14 = vsel %vm5466_vm6, %v12786_v51, %v12787_v30  ;;  %v5465_v6 = vpop.permute.xlu0 %5464  ;;  %v5516_v55 = vsel %vm5466_vm6, %v12757_v20, %v12786_v51 }
 0x3c1   : > { %v5518_v3 = vsel %vm5466_vm6, %v12787_v30, %v5465_v6  ;;  %v12790_v5 = vpop.permute.xlu1 %12789  ;;  %v11854_v21 = vpack.c.bf16 %v5516_v55, %v5147_v50  ;;  %v11872_v25 = vpack.c.bf16 %v5517_v14, %v5148_v28 }
 0x3c2   : > { %v11870_v34 = vpack.c.bf16 %v5518_v3, %v5149_v61  ;;  %v12792_v7 = vunpack.i.h.bf16 %v12790_v5  ;;  %v12791_v57 = vunpack.i.l.bf16 %v12790_v5 }
 0x3c3   : > { %11855 = vmatprep.subr.bf16.mxu1 %v11854_v21 }
 0x3c4   : > { %11857 = vmatpush1.bf16.msra.mxu1 %v11856_v39  ;;  %v12795_v9 = vpop.permute.xlu0 %12794  ;;  %11871 = vmatprep.subr.bf16.mxu0 %v11870_v34  ;;  %v16627_v0 = vpop.f32.mrb[36].mxu1  ;;  %v5884_v23 = vsel %vm5835_vm8, %v16544_v10, %v12791_v57  ;;  %v5885_v44 = vsel %vm5835_vm8, %v12791_v57, %v12792_v7 }
 0x3c5   : > { %v12800_v22 = vpop.permute.xlu1 %12799  ;;  %11873 = vmatpush1.bf16.msra.mxu0 %v11872_v25  ;;  %v7987_v37 = vpop.f32.mrb[37].mxu1  ;;  %v12797_v49 = vunpack.i.h.bf16 %v12795_v9  ;;  %v12796_v19 = vunpack.i.l.bf16 %v12795_v9 }
 0x3c6   : > { %v12802_v33 = vunpack.i.h.bf16 %v12800_v22  ;;  %v12801_v24 = vunpack.i.l.bf16 %v12800_v22 }
 0x3c7   : > { %v5886_v48 = vsel %vm5835_vm8, %v12792_v7, %v12796_v19 }
 0x3c8   : > { %v6253_v15 = vsel %vm6204_vm7, %v16557_v38, %v12801_v24  ;;  %v12805_v2 = vpop.permute.xlu0 %12804  ;;  %v6254_v60 = vsel %vm6204_vm7, %v12801_v24, %v12802_v33  ;;  %v16635_v53 = vpop.f32.mrb[38].mxu0  ;;  %v5887_v38 = vsel %vm5835_vm8, %v12796_v19, %v12797_v49 }
 0x3c9   : > { %v11860_v20 = vpack.c.bf16 %v6253_v15, %v5884_v23  ;;  %v12807_v46 = vunpack.i.h.bf16 %v12805_v2  ;;  %v12806_v58 = vunpack.i.l.bf16 %v12805_v2  ;;  %v6566_v16 = vpop.permute.xlu1 %6565  ;;  %v11858_v59 = vpack.c.bf16 %v6254_v60, %v5885_v44  ;;  %v8058_v36 = vpop.f32.mrb[39].mxu0  ;;  %v9056_v2 = vld [vmem:[#allocation2 + $0x8] sm:$0xff] }
 0x3ca   : > { %v6622_v50 = vsel %vm6573_vm9, %v16585_v62, %v6566_v16 }
 0x3cb   : > { %v6255_v10 = vsel %vm6204_vm7, %v12802_v33, %v12806_v58  ;;  %11859 = vmatprep.subr.bf16.mxu1 %v11858_v59  ;;  %v6256_v30 = vsel %vm6204_vm7, %v12806_v58, %v12807_v46  ;;  %v9055_v59 = vld [vmem:[#allocation2] sm:$0xff] }
 0x3cc   : > { %v11876_v51 = vpack.c.bf16 %v6255_v10, %v5886_v48  ;;  %11861 = vmatpush1.bf16.msra.mxu1 %v11860_v20  ;;  %v6568_v63 = vpop.permute.xlu0 %6567  ;;  %v11874_v14 = vpack.c.bf16 %v6256_v30, %v5887_v38  ;;  %v9058_v20 = vld [vmem:[#allocation2 + $0x18] sm:$0xff]  ;;  %v9057_v10 = vld [vmem:[#allocation2 + $0x10] sm:$0xff]  ;;  %v16700_v38 = vld [vmem:[%s16923_s6] sm:$0x7] }
 0x3cd   : > { %v6623_v6 = vsel %vm6573_vm9, %v6566_v16, %v6568_v63  ;;  %v6570_v55 = vpop.permute.xlu1 %6569 }
 0x3ce   : > { %8929 = vmatprep.subr.mxu1 %v6623_v6  ;;  %11875 = vmatprep.subr.bf16.mxu0 %v11874_v14  ;;  %v6624_v3 = vsel %vm6573_vm9, %v6568_v63, %v6570_v55 }
 0x3cf   : > { %11877 = vmatpush1.bf16.msra.mxu0 %v11876_v51 }
 0x3d0   : > { %8930 = vmatpush1.msra.mxu1 %v6622_v50  ;;  %v6572_v40 = vpop.permute.xlu0 %6571 }
 0x3d1   : > { %11432 = vmatmul.mubr.msk.f32.vlgmr.msra.gmra.mrb[50].mxu1 %vm7205_vm10, %v16482_v32  ;;  %v6625_v61 = vsel %vm6573_vm9, %v6570_v55, %v6572_v40 }
 0x3d2   : > { %9000 = vmatprep.subr.mxu0 %v6625_v61  ;;  %9338 = vmatprep.mubr.f32.mxu1 %v17235_v18 }
 0x3d3   : > { %9001 = vmatpush1.msra.mxu0 %v6624_v3  ;;  %v9062_v3 = vld [vmem:[#allocation2 + $0x38] sm:$0xff] }
 0x3d4   : > { %11433 = vmatmul.mubr.msk.f32.vlgmr.msra.gmra.mrb[52].mxu0 %vm7205_vm10, %v16482_v32 }
 0x3d5   : > { %9409 = vmatprep.mubr.f32.mxu0 %v17235_v18 }
 0x3de   : > { %v16652_v62 = vpop.permute.xlu1 %7202 }
 0x3df   : > { %v7988_v5 = vadd.f32 %v7987_v37, %v16652_v62  ;;  %v7278_v21 = vadd.f32 %v16228_v8, %v16652_v62  ;;  %v7349_v39 = vadd.f32 %v16235_v29, %v16652_v62  ;;  %v7276_v28 = vadd.f32 %v16211_v12, %v16652_v62 }
 0x3e0   : > { %v7347_v34 = vadd.f32 %v16213_v1, %v16652_v62  ;;  %v8059_v32 = vadd.f32 %v8058_v36, %v16652_v62  ;;  %v7420_v8 = vadd.f32 %v16251_v11, %v16652_v62  ;;  %v7491_v12 = vadd.f32 %v16256_v17, %v16652_v62 }
 0x3e1   : > { %12943 = verf.f32 %v7988_v5  ;;  %v7418_v22 = vadd.f32 %v16243_v52, %v16652_v62  ;;  %v7489_v11 = vadd.f32 %v16245_v47, %v16652_v62  ;;  %v7562_v17 = vadd.f32 %v16270_v27, %v16652_v62 }
 0x3e2   : > { %12945 = verf.f32 %v7278_v21  ;;  %v7633_v24 = vadd.f32 %v16272_v43, %v16652_v62  ;;  %v7560_v52 = vadd.f32 %v16259_v35, %v16652_v62  ;;  %v7631_v47 = vadd.f32 %v16261_v4, %v16652_v62 }
 0x3e3   : > { %12947 = verf.f32 %v7349_v39  ;;  %v7704_v44 = vadd.f32 %v16434_v13, %v16652_v62  ;;  %v7775_v35 = vadd.f32 %v16452_v42, %v16652_v62  ;;  %v7702_v36 = vadd.f32 %v16431_v26, %v16652_v62 }
 0x3e4   : > { %v8127_v25 = vpop.f32.mrb[38].mxu1  ;;  %12949 = verf.f32 %v7276_v28  ;;  %v7773_v42 = vadd.f32 %v16445_v56, %v16652_v62  ;;  %v7846_v26 = vadd.f32 %v16549_v45, %v16652_v62  ;;  %v7917_v6 = vadd.f32 %v16570_v41, %v16652_v62  ;;  %v9060_v56 = vld [vmem:[#allocation2 + $0x28] sm:$0xff] }
 0x3e5   : > { %v8128_v7 = vadd.f32 %v8127_v25, %v16652_v62  ;;  %v8129_v57 = vpop.f32.mrb[39].mxu1  ;;  %12951 = verf.f32 %v7347_v34  ;;  %v7844_v40 = vadd.f32 %v16546_v31, %v16652_v62  ;;  %v7915_v41 = vadd.f32 %v16561_v54, %v16652_v62  ;;  %v9059_v54 = vld [vmem:[#allocation2 + $0x20] sm:$0xff] }
 0x3e6   : > { %12953 = verf.f32 %v8059_v32  ;;  %v8130_v29 = vadd.f32 %v8129_v57, %v16652_v62  ;;  %v7986_v31 = vadd.f32 %v16627_v0, %v16652_v62  ;;  %v8057_v34 = vadd.f32 %v16635_v53, %v16652_v62 }
 0x3e7   : > { %12955 = verf.f32 %v8128_v7 }
 0x3e8   : > { %v16670_v1 = vpop.f32.mrb[40].mxu0  ;;  %12957 = verf.f32 %v7420_v8 }
 0x3e9   : > { %v8200_v9 = vpop.f32.mrb[41].mxu0  ;;  %12959 = verf.f32 %v7491_v12  ;;  %v8199_v25 = vadd.f32 %v16670_v1, %v16652_v62  ;;  %v9061_v12 = vld [vmem:[#allocation2 + $0x30] sm:$0xff] }
 0x3ea   : > { %v8201_v37 = vadd.f32 %v8200_v9, %v16652_v62  ;;  %12961 = verf.f32 %v8130_v29 }
 0x3eb   : > { %v16679_v33 = vpop.eup %12943 }
 0x3ec   : > { %12963 = verf.f32 %v8201_v37  ;;  %v12946_v49 = vpop.eup %12945 }
 0x3ed   : > { %12965 = verf.f32 %v7418_v22  ;;  %v12948_v19 = vpop.eup %12947  ;;  %v9160_v23 = vadd.f32 1.0, %v12946_v49  ;;  %v9064_v22 = vld [vmem:[#allocation2 + $0x48] sm:$0xff] }
 0x3ee   : > { %12967 = verf.f32 %v7489_v11  ;;  %v12950_v15 = vpop.eup %12949  ;;  %v9162_v27 = vadd.f32 1.0, %v12948_v19 }
 0x3ef   : > { %12969 = verf.f32 %v7562_v17  ;;  %v12952_v60 = vpop.eup %12951  ;;  %v9212_v43 = vmul.f32 %v9160_v23, %v9056_v2  ;;  %v9159_v46 = vadd.f32 1.0, %v12950_v15  ;;  %v9066_v17 = vld [vmem:[#allocation2 + $0x58] sm:$0xff]  ;;  %v9065_v15 = vld [vmem:[#allocation2 + $0x50] sm:$0xff] }
 0x3f0   : > { %12971 = verf.f32 %v7633_v24  ;;  %v16691_v58 = vpop.eup %12953  ;;  %v9214_v16 = vmul.f32 %v9162_v27, %v9058_v20  ;;  %v9161_v4 = vadd.f32 1.0, %v12952_v60  ;;  %v9068_v60 = vld [vmem:[#allocation2 + $0x68] sm:$0xff] }
 0x3f1   : > { %12973 = verf.f32 %v7560_v52  ;;  %v16695_v48 = vpop.eup %12955  ;;  %9274 = vmatprep.subr.mxu1 %v9212_v43  ;;  %v9211_v13 = vmul.f32 %v9159_v46, %v9055_v59  ;;  %v9063_v52 = vld [vmem:[#allocation2 + $0x40] sm:$0xff] }
 0x3f2   : > { %12975 = verf.f32 %v7631_v47  ;;  %v12958_v30 = vpop.eup %12957  ;;  %9345 = vmatprep.subr.mxu0 %v9214_v16  ;;  %v9213_v51 = vmul.f32 %v9161_v4, %v9057_v10  ;;  %v9180_v4 = vadd.f32 1.0, %v16679_v33 }
 0x3f3   : > { %12977 = verf.f32 %v7704_v44  ;;  %v12960_v63 = vpop.eup %12959  ;;  %9275 = vmatpush1.msra.mxu1 %v9211_v13  ;;  %v9164_v14 = vadd.f32 1.0, %v12958_v30  ;;  %v9067_v13 = vld [vmem:[#allocation2 + $0x60] sm:$0xff] }
 0x3f4   : > { %12979 = verf.f32 %v7775_v35  ;;  %v16708_v50 = vpop.eup %12961  ;;  %9346 = vmatpush1.msra.mxu0 %v9213_v51  ;;  %11434 = vmatmul.mubr.msk.f32.vlgmr.msra.gmra.mrb[52].mxu1 %vm9270_vm12, %v16700_v38  ;;  %v9166_v55 = vadd.f32 1.0, %v12960_v63  ;;  %v9070_v35 = vld [vmem:[#allocation2 + $0x78] sm:$0xff]  ;;  %v9069_v51 = vld [vmem:[#allocation2 + $0x70] sm:$0xff] }
 0x3f5   : > { %12981 = verf.f32 %v7702_v36  ;;  %11435 = vmatmul.mubr.msk.f32.vlgmr.msra.gmra.mrb[54].mxu0 %vm9270_vm12, %v16700_v38  ;;  %v9216_v61 = vmul.f32 %v9164_v14, %v9060_v56  ;;  %9480 = vmatprep.mubr.f32.mxu1 %v17235_v18 }
 0x3f6   : > { %v16714_v45 = vpop.eup %12963  ;;  %12983 = verf.f32 %v7773_v42  ;;  %v9218_v21 = vmul.f32 %v9166_v55, %v9062_v3  ;;  %9551 = vmatprep.mubr.f32.mxu0 %v17235_v18  ;;  %v9182_v55 = vadd.f32 1.0, %v16691_v58 }
 0x3f7   : > { %v12966_v5 = vpop.eup %12965  ;;  %12985 = verf.f32 %v7846_v26  ;;  %9416 = vmatprep.subr.mxu1 %v9216_v61  ;;  %v9074_v61 = vld [vmem:[#allocation2 + $0x98] sm:$0xff] }
 0x3f8   : > { %v12968_v39 = vpop.eup %12967  ;;  %v9163_v28 = vadd.f32 1.0, %v12966_v5  ;;  %12987 = verf.f32 %v7917_v6  ;;  %9487 = vmatprep.subr.mxu0 %v9218_v21  ;;  %v9072_v6 = vld [vmem:[#allocation2 + $0x88] sm:$0xff] }
 0x3f9   : > { %v12970_v32 = vpop.eup %12969  ;;  %v9165_v7 = vadd.f32 1.0, %v12968_v39  ;;  %12989 = verf.f32 %v7844_v40  ;;  %v9071_v39 = vld [vmem:[#allocation2 + $0x80] sm:$0xff] }
 0x3fa   : > { %v12972_v57 = vpop.eup %12971  ;;  %v9215_v8 = vmul.f32 %v9163_v28, %v9059_v54  ;;  %v9168_v29 = vadd.f32 1.0, %v12970_v32  ;;  %12991 = verf.f32 %v7915_v41  ;;  %v9076_v41 = vld [vmem:[#allocation2 + $0xa8] sm:$0xff]  ;;  %v9184_v54 = vadd.f32 1.0, %v16708_v50 }
 0x3fb   : > { %v12974_v0 = vpop.eup %12973  ;;  %v9217_v9 = vmul.f32 %v9165_v7, %v9061_v12  ;;  %v9170_v37 = vadd.f32 1.0, %v12972_v57  ;;  %12993 = verf.f32 %v7986_v31  ;;  %v9073_v57 = vld [vmem:[#allocation2 + $0x90] sm:$0xff] }
 0x3fc   : > { %v12976_v11 = vpop.eup %12975  ;;  %9417 = vmatpush1.msra.mxu1 %v9215_v8  ;;  %v9220_v53 = vmul.f32 %v9168_v29, %v9064_v22  ;;  %v9167_v24 = vadd.f32 1.0, %v12974_v0  ;;  %12995 = verf.f32 %v8057_v34  ;;  %v9232_v34 = vmul.f32 %v9180_v4, %v9076_v41  ;;  %v9078_v22 = vld [vmem:[#allocation2 + $0xb8] sm:$0xff] }
 0x3fd   : > { %v12978_v1 = vpop.eup %12977  ;;  %12997 = verf.f32 %v8199_v25  ;;  %9488 = vmatpush1.msra.mxu0 %v9217_v9  ;;  %v9222_v49 = vmul.f32 %v9170_v37, %v9066_v17  ;;  %11436 = vmatmul.mubr.msk.f32.vlgmr.msra.gmra.mrb[54].mxu1 %vm9270_vm12, %v16700_v38  ;;  %v9169_v19 = vadd.f32 1.0, %v12976_v11  ;;  %v9186_v0 = vadd.f32 1.0, %v16714_v45  ;;  %v9075_v11 = vld [vmem:[#allocation2 + $0xa0] sm:$0xff]  ;;  %v9077_v45 = vld [vmem:[#allocation2 + $0xb0] sm:$0xff] }
 0x3fe   : > { %v12980_v23 = vpop.eup %12979  ;;  %9558 = vmatprep.subr.mxu1 %v9220_v53  ;;  %11437 = vmatmul.mubr.msk.f32.vlgmr.msra.gmra.mrb[56].mxu0 %vm9270_vm12, %v16700_v38  ;;  %v9219_v47 = vmul.f32 %v9167_v24, %v9063_v52  ;;  %v9172_v2 = vadd.f32 1.0, %v12978_v1  ;;  %v9234_v50 = vmul.f32 %v9182_v55, %v9078_v22  ;;  %v9183_v17 = vadd.f32 1.0, %v16695_v48  ;;  %v9080_v1 = vld [vmem:[#allocation2 + $0xc8] sm:$0xff] }
 0x3ff   : > { %v12982_v27 = vpop.eup %12981  ;;  %9629 = vmatprep.subr.mxu0 %v9222_v49  ;;  %v9221_v44 = vmul.f32 %v9169_v19, %v9065_v15  ;;  %v9174_v43 = vadd.f32 1.0, %v12980_v23  ;;  %9622 = vmatprep.mubr.f32.mxu1 %v17235_v18  ;;  %v9082_v15 = vld [vmem:[#allocation2 + $0xd8] sm:$0xff] }
 0x400   : > { %v12984_v20 = vpop.eup %12983  ;;  %9559 = vmatpush1.msra.mxu1 %v9219_v47  ;;  %v9224_v46 = vmul.f32 %v9172_v2, %v9068_v60  ;;  %9693 = vmatprep.mubr.f32.mxu0 %v17235_v18  ;;  %v9171_v16 = vadd.f32 1.0, %v12982_v27  ;;  %v9236_v47 = vmul.f32 %v9184_v54, %v9080_v1  ;;  %v9238_v48 = vmul.f32 %v9186_v0, %v9082_v15  ;;  %v9079_v27 = vld [vmem:[#allocation2 + $0xc0] sm:$0xff]  ;;  %v9081_v60 = vld [vmem:[#allocation2 + $0xd0] sm:$0xff] }
 0x401   : > { %v12986_v59 = vpop.eup %12985  ;;  %9630 = vmatpush1.msra.mxu0 %v9221_v44  ;;  %v9226_v36 = vmul.f32 %v9174_v43, %v9070_v35  ;;  %11438 = vmatmul.mubr.msk.f32.vlgmr.msra.gmra.mrb[56].mxu1 %vm9270_vm12, %v16700_v38  ;;  %v9173_v10 = vadd.f32 1.0, %v12984_v20  ;;  %v9235_v44 = vmul.f32 %v9183_v17, %v9079_v27 }
 0x402   : > { %v12988_v42 = vpop.eup %12987  ;;  %9700 = vmatprep.subr.mxu1 %v9224_v46  ;;  %11439 = vmatmul.mubr.msk.f32.vlgmr.msra.gmra.mrb[58].mxu0 %vm9270_vm12, %v16700_v38  ;;  %v9223_v30 = vmul.f32 %v9171_v16, %v9067_v13  ;;  %v9176_v26 = vadd.f32 1.0, %v12986_v59  ;;  %v9084_v59 = vld [vmem:[#allocation2 + $0xe8] sm:$0xff] }
 0x403   : > { %v12990_v63 = vpop.eup %12989  ;;  %9771 = vmatprep.subr.mxu0 %v9226_v36  ;;  %v9225_v14 = vmul.f32 %v9173_v10, %v9069_v51  ;;  %v9178_v33 = vadd.f32 1.0, %v12988_v42  ;;  %9764 = vmatprep.mubr.f32.mxu1 %v17235_v18  ;;  %v9083_v36 = vld [vmem:[#allocation2 + $0xe0] sm:$0xff] }
 0x404   : > { %v12992_v56 = vpop.eup %12991  ;;  %9701 = vmatpush1.msra.mxu1 %v9223_v30  ;;  %v9228_v40 = vmul.f32 %v9176_v26, %v9072_v6  ;;  %9835 = vmatprep.mubr.f32.mxu0 %v17235_v18  ;;  %v9175_v3 = vadd.f32 1.0, %v12990_v63  ;;  %v8269_v5 = vpop.f32.mrb[40].mxu1  ;;  %v9086_v26 = vld [vmem:[#allocation2 + $0xf8] sm:$0xff]  ;;  %v9085_v63 = vld [vmem:[#allocation2 + $0xf0] sm:$0xff] }
 0x405   : > { %v12994_v21 = vpop.eup %12993  ;;  %9772 = vmatpush1.msra.mxu0 %v9225_v14  ;;  %v9230_v31 = vmul.f32 %v9178_v33, %v9074_v61  ;;  %11440 = vmatmul.mubr.msk.f32.vlgmr.msra.gmra.mrb[58].mxu1 %vm9270_vm12, %v16700_v38  ;;  %v9177_v28 = vadd.f32 1.0, %v12992_v56  ;;  %v8270_v32 = vadd.f32 %v8269_v5, %v16652_v62  ;;  %v8271_v58 = vpop.f32.mrb[41].mxu1 }
 0x406   : > { %v12996_v25 = vpop.eup %12995  ;;  %9842 = vmatprep.subr.mxu1 %v9228_v40  ;;  %11441 = vmatmul.mubr.msk.f32.vlgmr.msra.gmra.mrb[60].mxu0 %vm9270_vm12, %v16700_v38  ;;  %v9227_v7 = vmul.f32 %v9175_v3, %v9071_v39  ;;  %v9179_v8 = vadd.f32 1.0, %v12994_v21  ;;  %v8272_v12 = vadd.f32 %v8271_v58, %v16652_v62  ;;  %v9087_v58 = vld [vmem:[#allocation2 + $0x100] sm:$0xff] }
 0x407   : > { %v12998_v29 = vpop.eup %12997  ;;  %9913 = vmatprep.subr.mxu0 %v9230_v31  ;;  %v9229_v9 = vmul.f32 %v9177_v28, %v9073_v57  ;;  %9906 = vmatprep.mubr.f32.mxu1 %v17235_v18  ;;  %v9181_v37 = vadd.f32 1.0, %v12996_v25  ;;  %12999 = verf.f32 %v8270_v32 }
 0x408   : > { %9843 = vmatpush1.msra.mxu1 %v9227_v7  ;;  %9977 = vmatprep.mubr.f32.mxu0 %v17235_v18  ;;  %13001 = verf.f32 %v8272_v12  ;;  %v8340_v53 = vpop.f32.mrb[42].mxu0  ;;  %v9231_v24 = vmul.f32 %v9179_v8, %v9075_v11  ;;  %v9185_v19 = vadd.f32 1.0, %v12998_v29  ;;  %v9090_v12 = vld [vmem:[#allocation2 + $0x118] sm:$0xff]  ;;  %v9089_v29 = vld [vmem:[#allocation2 + $0x110] sm:$0xff] }
 0x409   : > { %9914 = vmatpush1.msra.mxu0 %v9229_v9  ;;  %9984 = vmatprep.subr.mxu1 %v9232_v34  ;;  %v8341_v49 = vadd.f32 %v8340_v53, %v16652_v62  ;;  %v8342_v52 = vpop.f32.mrb[43].mxu0  ;;  %v9233_v23 = vmul.f32 %v9181_v37, %v9077_v45  ;;  %v9088_v34 = vld [vmem:[#allocation2 + $0x108] sm:$0xff] }
 0x40a   : > { %10055 = vmatprep.subr.mxu0 %v9234_v50  ;;  %11442 = vmatmul.mubr.msk.f32.vlgmr.msra.gmra.mrb[60].mxu1 %vm9270_vm12, %v16700_v38  ;;  %v8343_v2 = vadd.f32 %v8342_v52, %v16652_v62  ;;  %v9237_v43 = vmul.f32 %v9185_v19, %v9081_v60 }
 0x40b   : > { %11443 = vmatmul.mubr.msk.f32.vlgmr.msra.gmra.mrb[62].mxu0 %vm9270_vm12, %v16700_v38  ;;  %9985 = vmatpush1.msra.mxu1 %v9231_v24  ;;  %13003 = verf.f32 %v8341_v49 }
 0x40c   : > { %10056 = vmatpush1.msra.mxu0 %v9233_v23  ;;  %10126 = vmatprep.subr.mxu1 %v9236_v47  ;;  %13005 = verf.f32 %v8343_v2  ;;  %v9092_v47 = vld [vmem:[#allocation2 + $0x128] sm:$0xff]  ;;  %v9091_v2 = vld [vmem:[#allocation2 + $0x120] sm:$0xff] }
 0x40d   : > { %10197 = vmatprep.subr.mxu0 %v9238_v48  ;;  %10048 = vmatprep.mubr.f32.mxu1 %v17235_v18 }
 0x40e   : > { %10119 = vmatprep.mubr.f32.mxu0 %v17235_v18  ;;  %11444 = vmatmul.mubr.msk.f32.vlgmr.msra.gmra.mrb[62].mxu1 %vm9270_vm12, %v16700_v38 }
 0x40f   : > { %11445 = vmatmul.mubr.msk.f32.vlgmr.msra.gmra.mrb[64].mxu0 %vm9270_vm12, %v16700_v38  ;;  %10127 = vmatpush1.msra.mxu1 %v9235_v44 }
 0x410   : > { %10198 = vmatpush1.msra.mxu0 %v9237_v43  ;;  %10190 = vmatprep.mubr.f32.mxu1 %v17235_v18  ;;  %v9094_v43 = vld [vmem:[#allocation2 + $0x138] sm:$0xff] }
 0x411   : > { %v13000_v20 = vpop.eup %12999  ;;  %10261 = vmatprep.mubr.f32.mxu0 %v17235_v18 }
 0x412   : > { %v13002_v46 = vpop.eup %13001  ;;  %v9187_v35 = vadd.f32 1.0, %v13000_v20  ;;  %11446 = vmatmul.mubr.msk.f32.vlgmr.msra.gmra.mrb[64].mxu1 %vm9270_vm12, %v16700_v38  ;;  %v9093_v20 = vld [vmem:[#allocation2 + $0x130] sm:$0xff] }
 0x413   : > { %v9188_v16 = vadd.f32 1.0, %v13002_v46  ;;  %11447 = vmatmul.mubr.msk.f32.vlgmr.msra.gmra.mrb[66].mxu0 %vm9270_vm12, %v16700_v38  ;;  %10332 = vmatprep.mubr.f32.mxu1 %v17235_v18 }
 0x414   : > { %10403 = vmatprep.mubr.f32.mxu0 %v17235_v18  ;;  %v9239_v42 = vmul.f32 %v9187_v35, %v9083_v36 }
 0x415   : > { %v13004_v4 = vpop.eup %13003  ;;  %v9240_v13 = vmul.f32 %v9188_v16, %v9084_v59 }
 0x416   : > { %v13006_v10 = vpop.eup %13005  ;;  %v9189_v30 = vadd.f32 1.0, %v13004_v4 }
 0x417   : > { %v9190_v51 = vadd.f32 1.0, %v13006_v10  ;;  %10268 = vmatprep.subr.mxu1 %v9240_v13 }
 0x418   : > { %10269 = vmatpush1.msra.mxu1 %v9239_v42  ;;  %v9241_v6 = vmul.f32 %v9189_v30, %v9085_v63 }
 0x419   : > { %11448 = vmatmul.mubr.msk.f32.vlgmr.msra.gmra.mrb[66].mxu1 %vm9270_vm12, %v16700_v38  ;;  %v9242_v14 = vmul.f32 %v9190_v51, %v9086_v26 }
 0x41a   : > { %10474 = vmatprep.mubr.f32.mxu1 %v17235_v18 }
 0x41b   : > { %10339 = vmatprep.subr.mxu0 %v9242_v14 }
 0x41c   : > { %10340 = vmatpush1.msra.mxu0 %v9241_v6 }
 0x41d   : > { %11449 = vmatmul.mubr.msk.f32.vlgmr.msra.gmra.mrb[68].mxu0 %vm9270_vm12, %v16700_v38 }
 0x41e   : > { %10545 = vmatprep.mubr.f32.mxu0 %v17235_v18 }
 0x424   : > { %v8411_v33 = vpop.f32.mrb[42].mxu1 }
 0x425   : > { %v8412_v56 = vadd.f32 %v8411_v33, %v16652_v62  ;;  %v8413_v55 = vpop.f32.mrb[43].mxu1  ;;  %v9096_v33 = vld [vmem:[#allocation2 + $0x148] sm:$0xff] }
 0x426   : > { %v8414_v40 = vadd.f32 %v8413_v55, %v16652_v62  ;;  %v9095_v55 = vld [vmem:[#allocation2 + $0x140] sm:$0xff] }
 0x427   : > { %13007 = verf.f32 %v8412_v56 }
 0x428   : > { %13009 = verf.f32 %v8414_v40  ;;  %v8482_v61 = vpop.f32.mrb[44].mxu0 }
 0x429   : > { %v8483_v3 = vadd.f32 %v8482_v61, %v16652_v62  ;;  %v8484_v41 = vpop.f32.mrb[45].mxu0 }
 0x42a   : > { %v8485_v5 = vadd.f32 %v8484_v41, %v16652_v62 }
 0x42b   : > { %13011 = verf.f32 %v8483_v3 }
 0x42c   : > { %13013 = verf.f32 %v8485_v5  ;;  %v9098_v5 = vld [vmem:[#allocation2 + $0x158] sm:$0xff] }
 0x431   : > { %v13008_v21 = vpop.eup %13007 }
 0x432   : > { %v13010_v31 = vpop.eup %13009  ;;  %v9191_v39 = vadd.f32 1.0, %v13008_v21  ;;  %v9097_v21 = vld [vmem:[#allocation2 + $0x150] sm:$0xff] }
 0x433   : > { %v9192_v28 = vadd.f32 1.0, %v13010_v31 }
 0x434   : > { %v9243_v7 = vmul.f32 %v9191_v39, %v9087_v58 }
 0x435   : > { %v13012_v32 = vpop.eup %13011  ;;  %v9244_v25 = vmul.f32 %v9192_v28, %v9088_v34 }
 0x436   : > { %v13014_v54 = vpop.eup %13013  ;;  %v9193_v57 = vadd.f32 1.0, %v13012_v32 }
 0x437   : > { %v9194_v8 = vadd.f32 1.0, %v13014_v54  ;;  %10410 = vmatprep.subr.mxu1 %v9244_v25 }
 0x438   : > { %10411 = vmatpush1.msra.mxu1 %v9243_v7  ;;  %v9245_v9 = vmul.f32 %v9193_v57, %v9089_v29 }
 0x439   : > { %11450 = vmatmul.mubr.msk.f32.vlgmr.msra.gmra.mrb[68].mxu1 %vm9270_vm12, %v16700_v38  ;;  %v9246_v0 = vmul.f32 %v9194_v8, %v9090_v12 }
 0x43a   : > { %10616 = vmatprep.mubr.f32.mxu1 %v17235_v18 }
 0x43b   : > { %10481 = vmatprep.subr.mxu0 %v9246_v0 }
 0x43c   : > { %10482 = vmatpush1.msra.mxu0 %v9245_v9 }
 0x43d   : > { %11451 = vmatmul.mubr.msk.f32.vlgmr.msra.gmra.mrb[70].mxu0 %vm9270_vm12, %v16700_v38 }
 0x43e   : > { %10687 = vmatprep.mubr.f32.mxu0 %v17235_v18 }
 0x444   : > { %v8553_v22 = vpop.f32.mrb[44].mxu1 }
 0x445   : > { %v8554_v37 = vadd.f32 %v8553_v22, %v16652_v62  ;;  %v8555_v50 = vpop.f32.mrb[45].mxu1  ;;  %v9100_v22 = vld [vmem:[#allocation2 + $0x168] sm:$0xff] }
 0x446   : > { %v8556_v11 = vadd.f32 %v8555_v50, %v16652_v62  ;;  %v9099_v50 = vld [vmem:[#allocation2 + $0x160] sm:$0xff] }
 0x447   : > { %13015 = verf.f32 %v8554_v37  ;;  %v8624_v53 = vpop.f32.mrb[46].mxu0 }
 0x448   : > { %13017 = verf.f32 %v8556_v11  ;;  %v8625_v17 = vadd.f32 %v8624_v53, %v16652_v62  ;;  %v8626_v24 = vpop.f32.mrb[47].mxu0 }
 0x449   : > { %v8627_v45 = vadd.f32 %v8626_v24, %v16652_v62 }
 0x44a   : > { %13019 = verf.f32 %v8625_v17 }
 0x44b   : > { %13021 = verf.f32 %v8627_v45  ;;  %v9102_v45 = vld [vmem:[#allocation2 + $0x178] sm:$0xff] }
 0x451   : > { %v13016_v1 = vpop.eup %13015 }
 0x452   : > { %v13018_v49 = vpop.eup %13017  ;;  %v9195_v52 = vadd.f32 1.0, %v13016_v1  ;;  %v9101_v1 = vld [vmem:[#allocation2 + $0x170] sm:$0xff] }
 0x453   : > { %v9196_v19 = vadd.f32 1.0, %v13018_v49 }
 0x454   : > { %v13020_v23 = vpop.eup %13019  ;;  %v9247_v44 = vmul.f32 %v9195_v52, %v9091_v2 }
 0x455   : > { %v13022_v15 = vpop.eup %13021  ;;  %v9197_v48 = vadd.f32 1.0, %v13020_v23  ;;  %v9248_v27 = vmul.f32 %v9196_v19, %v9092_v47 }
 0x456   : > { %v9198_v60 = vadd.f32 1.0, %v13022_v15 }
 0x457   : > { %10552 = vmatprep.subr.mxu1 %v9248_v27  ;;  %v9249_v35 = vmul.f32 %v9197_v48, %v9093_v20 }
 0x458   : > { %10553 = vmatpush1.msra.mxu1 %v9247_v44  ;;  %v9250_v46 = vmul.f32 %v9198_v60, %v9094_v43 }
 0x459   : > { %11452 = vmatmul.mubr.msk.f32.vlgmr.msra.gmra.mrb[70].mxu1 %vm9270_vm12, %v16700_v38 }
 0x45a   : > { %10623 = vmatprep.subr.mxu0 %v9250_v46  ;;  %10758 = vmatprep.mubr.f32.mxu1 %v17235_v18 }
 0x45b   : > { %10624 = vmatpush1.msra.mxu0 %v9249_v35  ;;  %v9104_v35 = vld [vmem:[#allocation2 + $0x188] sm:$0xff] }
 0x45c   : > { %11453 = vmatmul.mubr.msk.f32.vlgmr.msra.gmra.mrb[72].mxu0 %vm9270_vm12, %v16700_v38 }
 0x45d   : > { %10829 = vmatprep.mubr.f32.mxu0 %v17235_v18 }
 0x464   : > { %v8695_v16 = vpop.f32.mrb[46].mxu1 }
 0x465   : > { %v8696_v59 = vadd.f32 %v8695_v16, %v16652_v62  ;;  %v8697_v4 = vpop.f32.mrb[47].mxu1 }
 0x466   : > { %v8698_v36 = vadd.f32 %v8697_v4, %v16652_v62 }
 0x467   : > { %13023 = verf.f32 %v8696_v59  ;;  %v8766_v13 = vpop.f32.mrb[48].mxu0  ;;  %v9103_v59 = vld [vmem:[#allocation2 + $0x180] sm:$0xff] }
 0x468   : > { %13025 = verf.f32 %v8698_v36  ;;  %v8767_v10 = vadd.f32 %v8766_v13, %v16652_v62  ;;  %v8768_v42 = vpop.f32.mrb[49].mxu0 }
 0x469   : > { %v8769_v30 = vadd.f32 %v8768_v42, %v16652_v62  ;;  %v9106_v42 = vld [vmem:[#allocation2 + $0x198] sm:$0xff] }
 0x46a   : > { %13027 = verf.f32 %v8767_v10 }
 0x46b   : > { %13029 = verf.f32 %v8769_v30  ;;  %v9105_v30 = vld [vmem:[#allocation2 + $0x190] sm:$0xff] }
 0x471   : > { %v13024_v51 = vpop.eup %13023 }
 0x472   : > { %v13026_v26 = vpop.eup %13025  ;;  %v9199_v63 = vadd.f32 1.0, %v13024_v51 }
 0x473   : > { %v9200_v14 = vadd.f32 1.0, %v13026_v26  ;;  %v16829_v26 = vpop.permute.xlu0 %9267 }
 0x474   : > { %v13028_v6 = vpop.eup %13027  ;;  %v9251_v3 = vmul.f32 %v9199_v63, %v9095_v55 }
 0x475   : > { %v13030_v56 = vpop.eup %13029  ;;  %v9201_v40 = vadd.f32 1.0, %v13028_v6  ;;  %v9252_v61 = vmul.f32 %v9200_v14, %v9096_v33 }
 0x476   : > { %v9202_v41 = vadd.f32 1.0, %v13030_v56 }
 0x477   : > { %10694 = vmatprep.subr.mxu1 %v9252_v61  ;;  %v9253_v39 = vmul.f32 %v9201_v40, %v9097_v21 }
 0x478   : > { %10695 = vmatpush1.msra.mxu1 %v9251_v3  ;;  %v9254_v31 = vmul.f32 %v9202_v41, %v9098_v5 }
 0x479   : > { %11454 = vmatmul.mubr.msk.f32.vlgmr.msra.gmra.mrb[72].mxu1 %vm9270_vm12, %v16700_v38 }
 0x47a   : > { %10765 = vmatprep.subr.mxu0 %v9254_v31  ;;  %10900 = vmatprep.mubr.f32.mxu1 %v17235_v18 }
 0x47b   : > { %10766 = vmatpush1.msra.mxu0 %v9253_v39 }
 0x47c   : > { %11455 = vmatmul.mubr.msk.f32.vlgmr.msra.gmra.mrb[74].mxu0 %vm9270_vm12, %v16700_v38 }
 0x47d   : > { %10971 = vmatprep.mubr.f32.mxu0 %v17235_v18 }
 0x484   : > { %v8837_v28 = vpop.f32.mrb[48].mxu1 }
 0x485   : > { %v8838_v34 = vadd.f32 %v8837_v28, %v16652_v62  ;;  %v8839_v32 = vpop.f32.mrb[49].mxu1 }
 0x486   : > { %v8840_v58 = vadd.f32 %v8839_v32, %v16652_v62 }
 0x487   : > { %13031 = verf.f32 %v8838_v34  ;;  %v8908_v25 = vpop.f32.mrb[50].mxu0 }
 0x488   : > { %13033 = verf.f32 %v8840_v58  ;;  %v8909_v54 = vadd.f32 %v8908_v25, %v16652_v62  ;;  %v8910_v7 = vpop.f32.mrb[51].mxu0 }
 0x489   : > { %v8911_v57 = vadd.f32 %v8910_v7, %v16652_v62 }
 0x48a   : > { %13035 = verf.f32 %v8909_v54 }
 0x48b   : > { %13037 = verf.f32 %v8911_v57 }
 0x491   : > { %v13032_v8 = vpop.eup %13031 }
 0x492   : > { %v13034_v12 = vpop.eup %13033  ;;  %v9203_v29 = vadd.f32 1.0, %v13032_v8 }
 0x493   : > { %v9204_v0 = vadd.f32 1.0, %v13034_v12 }
 0x494   : > { %v13036_v9 = vpop.eup %13035  ;;  %v9255_v17 = vmul.f32 %v9203_v29, %v9099_v50 }
 0x495   : > { %v13038_v37 = vpop.eup %13037  ;;  %v9205_v11 = vadd.f32 1.0, %v13036_v9  ;;  %v9256_v53 = vmul.f32 %v9204_v0, %v9100_v22 }
 0x496   : > { %v9206_v24 = vadd.f32 1.0, %v13038_v37 }
 0x497   : > { %10836 = vmatprep.subr.mxu1 %v9256_v53  ;;  %v9257_v52 = vmul.f32 %v9205_v11, %v9101_v1 }
 0x498   : > { %10837 = vmatpush1.msra.mxu1 %v9255_v17  ;;  %v9258_v49 = vmul.f32 %v9206_v24, %v9102_v45 }
 0x499   : > { %11456 = vmatmul.mubr.msk.f32.vlgmr.msra.gmra.mrb[74].mxu1 %vm9270_vm12, %v16700_v38 }
 0x49a   : > { %10907 = vmatprep.subr.mxu0 %v9258_v49  ;;  %11042 = vmatprep.mubr.f32.mxu1 %v17235_v18 }
 0x49b   : > { %10908 = vmatpush1.msra.mxu0 %v9257_v52 }
 0x49c   : > { %11457 = vmatmul.mubr.msk.f32.vlgmr.msra.gmra.mrb[76].mxu0 %vm9270_vm12, %v16700_v38 }
 0x49d   : > { %11113 = vmatprep.mubr.f32.mxu0 %v17235_v18 }
 0x4a4   : > { %v8979_v19 = vpop.f32.mrb[50].mxu1 }
 0x4a5   : > { %v8980_v23 = vadd.f32 %v8979_v19, %v16652_v62  ;;  %v8981_v47 = vpop.f32.mrb[51].mxu1 }
 0x4a6   : > { %v8982_v15 = vadd.f32 %v8981_v47, %v16652_v62 }
 0x4a7   : > { %13039 = verf.f32 %v8980_v23  ;;  %v9050_v2 = vpop.f32.mrb[52].mxu0 }
 0x4a8   : > { %13041 = verf.f32 %v8982_v15  ;;  %v9051_v48 = vadd.f32 %v9050_v2, %v16652_v62  ;;  %v9052_v27 = vpop.f32.mrb[53].mxu0 }
 0x4a9   : > { %v9053_v44 = vadd.f32 %v9052_v27, %v16652_v62 }
 0x4aa   : > { %13043 = verf.f32 %v9051_v48 }
 0x4ab   : > { %13045 = verf.f32 %v9053_v44 }
 0x4b1   : > { %v13040_v60 = vpop.eup %13039 }
 0x4b2   : > { %v13042_v43 = vpop.eup %13041  ;;  %v9207_v20 = vadd.f32 1.0, %v13040_v60 }
 0x4b3   : > { %v9208_v18 = vadd.f32 1.0, %v13042_v43 }
 0x4b4   : > { %v13044_v46 = vpop.eup %13043  ;;  %v9259_v13 = vmul.f32 %v9207_v20, %v9103_v59 }
 0x4b5   : > { %v13046_v16 = vpop.eup %13045  ;;  %v9209_v4 = vadd.f32 1.0, %v13044_v46  ;;  %v9260_v36 = vmul.f32 %v9208_v18, %v9104_v35 }
 0x4b6   : > { %v9210_v10 = vadd.f32 1.0, %v13046_v16 }
 0x4b7   : > { %10978 = vmatprep.subr.mxu1 %v9260_v36  ;;  %v9261_v51 = vmul.f32 %v9209_v4, %v9105_v30 }
 0x4b8   : > { %10979 = vmatpush1.msra.mxu1 %v9259_v13  ;;  %v9262_v62 = vmul.f32 %v9210_v10, %v9106_v42 }
 0x4b9   : > { %11458 = vmatmul.mubr.msk.f32.vlgmr.msra.gmra.mrb[76].mxu1 %vm9270_vm12, %v16700_v38 }
 0x4ba   : > { %11049 = vmatprep.subr.mxu0 %v9262_v62 }
 0x4bb   : > { %11050 = vmatpush1.msra.mxu0 %v9261_v51 }
 0x4bc   : > { %11459 = vmatmul.mubr.msk.f32.vlgmr.msra.gmra.mrb[78].mxu0 %vm9270_vm12, %v16700_v38 }
 0x4c7   : > { %v9340_v63 = vpop.f32.mrb[52].mxu1 }
 0x4c8   : > { %v9341_v14 = vadd.f32 %v9340_v63, %v16829_v26  ;;  %v9411_v6 = vpop.f32.mrb[54].mxu0  ;;  %v9342_v33 = vpop.f32.mrb[53].mxu1 }
 0x4c9   : > { %v9412_v56 = vadd.f32 %v9411_v6, %v16829_v26  ;;  %v9343_v55 = vadd.f32 %v9342_v33, %v16829_v26  ;;  %v9413_v40 = vpop.f32.mrb[55].mxu0 }
 0x4ca   : > { %v9414_v38 = vadd.f32 %v9413_v40, %v16829_v26 }
 0x4cb   : > { %v11172_v61 = vcombine.low %v9341_v14, %v9343_v55 }
 0x4cc   : > { %v11173_v3 = vcombine.low %v9412_v56, %v9414_v38 }
 0x4cd   : > { %11224 = vst [vmem:[%s16837_s30] sm:$0x77] %v11172_v61 }
 0x4ce   : > { %11225 = vst [vmem:[%s16837_s30 + $0x8] sm:$0x77] %v11173_v3 }
 0x4d0   : > { %v9482_v41 = vpop.f32.mrb[54].mxu1 }
 0x4d1   : > { %v9483_v5 = vadd.f32 %v9482_v41, %v16829_v26  ;;  %v9553_v21 = vpop.f32.mrb[56].mxu0  ;;  %v9484_v31 = vpop.f32.mrb[55].mxu1 }
 0x4d2   : > { %v9554_v39 = vadd.f32 %v9553_v21, %v16829_v26  ;;  %v9485_v28 = vadd.f32 %v9484_v31, %v16829_v26  ;;  %v9555_v34 = vpop.f32.mrb[57].mxu0 }
 0x4d3   : > { %v9556_v32 = vadd.f32 %v9555_v34, %v16829_v26 }
 0x4d4   : > { %v11174_v58 = vcombine.low %v9483_v5, %v9485_v28  ;;  %v9624_v25 = vpop.f32.mrb[56].mxu1 }
 0x4d5   : > { %v11175_v54 = vcombine.low %v9554_v39, %v9556_v32  ;;  %v9625_v7 = vadd.f32 %v9624_v25, %v16829_v26  ;;  %v9695_v57 = vpop.f32.mrb[58].mxu0  ;;  %v9626_v8 = vpop.f32.mrb[57].mxu1 }
 0x4d6   : > { %11226 = vst [vmem:[%s16837_s30 + $0x10] sm:$0x77] %v11174_v58  ;;  %v9696_v12 = vadd.f32 %v9695_v57, %v16829_v26  ;;  %v9627_v29 = vadd.f32 %v9626_v8, %v16829_v26  ;;  %v9697_v0 = vpop.f32.mrb[59].mxu0 }
 0x4d7   : > { %11227 = vst [vmem:[%s16837_s30 + $0x18] sm:$0x77] %v11175_v54  ;;  %v9698_v9 = vadd.f32 %v9697_v0, %v16829_v26 }
 0x4d8   : > { %v11176_v22 = vcombine.low %v9625_v7, %v9627_v29  ;;  %v9766_v37 = vpop.f32.mrb[58].mxu1 }
 0x4d9   : > { %v11177_v50 = vcombine.low %v9696_v12, %v9698_v9  ;;  %v9767_v11 = vadd.f32 %v9766_v37, %v16829_v26  ;;  %v9837_v53 = vpop.f32.mrb[60].mxu0  ;;  %v9768_v17 = vpop.f32.mrb[59].mxu1 }
 0x4da   : > { %11228 = vst [vmem:[%s16837_s30 + $0x20] sm:$0x77] %v11176_v22  ;;  %v9838_v24 = vadd.f32 %v9837_v53, %v16829_v26  ;;  %v9769_v45 = vadd.f32 %v9768_v17, %v16829_v26  ;;  %v9839_v1 = vpop.f32.mrb[61].mxu0 }
 0x4db   : > { %11229 = vst [vmem:[%s16837_s30 + $0x28] sm:$0x77] %v11177_v50  ;;  %v9840_v49 = vadd.f32 %v9839_v1, %v16829_v26 }
 0x4dc   : > { %v11178_v52 = vcombine.low %v9767_v11, %v9769_v45 }
 0x4dd   : > { %v11179_v19 = vcombine.low %v9838_v24, %v9840_v49  ;;  %v9908_v23 = vpop.f32.mrb[60].mxu1 }
 0x4de   : > { %11230 = vst [vmem:[%s16837_s30 + $0x30] sm:$0x77] %v11178_v52  ;;  %v9909_v47 = vadd.f32 %v9908_v23, %v16829_v26  ;;  %v9979_v15 = vpop.f32.mrb[62].mxu0  ;;  %v9910_v2 = vpop.f32.mrb[61].mxu1 }
 0x4df   : > { %11231 = vst [vmem:[%s16837_s30 + $0x38] sm:$0x77] %v11179_v19  ;;  %v9980_v48 = vadd.f32 %v9979_v15, %v16829_v26  ;;  %v9911_v27 = vadd.f32 %v9910_v2, %v16829_v26  ;;  %v9981_v44 = vpop.f32.mrb[63].mxu0 }
 0x4e0   : > { %v9982_v60 = vadd.f32 %v9981_v44, %v16829_v26 }
 0x4e1   : > { %v11180_v43 = vcombine.low %v9909_v47, %v9911_v27  ;;  %v10050_v20 = vpop.f32.mrb[62].mxu1 }
 0x4e2   : > { %v11181_v18 = vcombine.low %v9980_v48, %v9982_v60  ;;  %v10051_v46 = vadd.f32 %v10050_v20, %v16829_v26  ;;  %v10121_v35 = vpop.f32.mrb[64].mxu0  ;;  %v10052_v16 = vpop.f32.mrb[63].mxu1 }
 0x4e3   : > { %11232 = vst [vmem:[%s16837_s30 + $0x40] sm:$0x77] %v11180_v43  ;;  %v10122_v59 = vadd.f32 %v10121_v35, %v16829_v26  ;;  %v10053_v4 = vadd.f32 %v10052_v16, %v16829_v26  ;;  %v10123_v36 = vpop.f32.mrb[65].mxu0 }
 0x4e4   : > { %11233 = vst [vmem:[%s16837_s30 + $0x48] sm:$0x77] %v11181_v18  ;;  %v10124_v13 = vadd.f32 %v10123_v36, %v16829_v26 }
 0x4e5   : > { %v11182_v10 = vcombine.low %v10051_v46, %v10053_v4  ;;  %v10192_v42 = vpop.f32.mrb[64].mxu1 }
 0x4e6   : > { %v11183_v30 = vcombine.low %v10122_v59, %v10124_v13  ;;  %v10193_v62 = vadd.f32 %v10192_v42, %v16829_v26  ;;  %v10263_v51 = vpop.f32.mrb[66].mxu0  ;;  %v10194_v63 = vpop.f32.mrb[65].mxu1 }
 0x4e7   : > { %11234 = vst [vmem:[%s16837_s30 + $0x50] sm:$0x77] %v11182_v10  ;;  %v10264_v14 = vadd.f32 %v10263_v51, %v16829_v26  ;;  %v10195_v6 = vadd.f32 %v10194_v63, %v16829_v26  ;;  %v10265_v33 = vpop.f32.mrb[67].mxu0 }
 0x4e8   : > { %11235 = vst [vmem:[%s16837_s30 + $0x58] sm:$0x77] %v11183_v30  ;;  %v10266_v56 = vadd.f32 %v10265_v33, %v16829_v26 }
 0x4e9   : > { %v11184_v55 = vcombine.low %v10193_v62, %v10195_v6 }
 0x4ea   : > { %v11185_v40 = vcombine.low %v10264_v14, %v10266_v56 }
 0x4eb   : > { %11236 = vst [vmem:[%s16837_s30 + $0x60] sm:$0x77] %v11184_v55 }
 0x4ec   : > { %11237 = vst [vmem:[%s16837_s30 + $0x68] sm:$0x77] %v11185_v40  ;;  %v10334_v38 = vpop.f32.mrb[66].mxu1 }
 0x4ed   : > { %v10335_v61 = vadd.f32 %v10334_v38, %v16829_v26  ;;  %v10336_v3 = vpop.f32.mrb[67].mxu1 }
 0x4ee   : > { %v10337_v41 = vadd.f32 %v10336_v3, %v16829_v26 }
 0x4f0   : > { %v11186_v5 = vcombine.low %v10335_v61, %v10337_v41  ;;  %v10405_v21 = vpop.f32.mrb[68].mxu0 }
 0x4f1   : > { %v10406_v31 = vadd.f32 %v10405_v21, %v16829_v26  ;;  %v10407_v39 = vpop.f32.mrb[69].mxu0 }
 0x4f2   : > { %11238 = vst [vmem:[%s16837_s30 + $0x70] sm:$0x77] %v11186_v5  ;;  %v10408_v28 = vadd.f32 %v10407_v39, %v16829_v26 }
 0x4f4   : > { %v11187_v34 = vcombine.low %v10406_v31, %v10408_v28 }
 0x4f6   : > { %11239 = vst [vmem:[%s16837_s30 + $0x78] sm:$0x77] %v11187_v34 }
 0x50c   : > { %v10476_v32 = vpop.f32.mrb[68].mxu1 }
 0x50d   : > { %v10477_v58 = vadd.f32 %v10476_v32, %v16829_v26  ;;  %v10478_v25 = vpop.f32.mrb[69].mxu1 }
 0x50e   : > { %v10479_v54 = vadd.f32 %v10478_v25, %v16829_v26 }
 0x510   : > { %v11188_v7 = vcombine.low %v10477_v58, %v10479_v54  ;;  %v10547_v57 = vpop.f32.mrb[70].mxu0 }
 0x511   : > { %v10548_v8 = vadd.f32 %v10547_v57, %v16829_v26  ;;  %v10549_v12 = vpop.f32.mrb[71].mxu0 }
 0x512   : > { %11240 = vst [vmem:[%s16837_s30 + $0x80] sm:$0x77] %v11188_v7  ;;  %v10550_v29 = vadd.f32 %v10549_v12, %v16829_v26 }
 0x514   : > { %v11189_v0 = vcombine.low %v10548_v8, %v10550_v29 }
 0x516   : > { %11241 = vst [vmem:[%s16837_s30 + $0x88] sm:$0x77] %v11189_v0 }
 0x52c   : > { %v10618_v9 = vpop.f32.mrb[70].mxu1 }
 0x52d   : > { %v10619_v22 = vadd.f32 %v10618_v9, %v16829_v26  ;;  %v10620_v37 = vpop.f32.mrb[71].mxu1 }
 0x52e   : > { %v10621_v50 = vadd.f32 %v10620_v37, %v16829_v26 }
 0x52f   : > { %v10689_v11 = vpop.f32.mrb[72].mxu0 }
 0x530   : > { %v11190_v53 = vcombine.low %v10619_v22, %v10621_v50  ;;  %v10690_v17 = vadd.f32 %v10689_v11, %v16829_v26  ;;  %v10691_v24 = vpop.f32.mrb[73].mxu0 }
 0x531   : > { %v10692_v45 = vadd.f32 %v10691_v24, %v16829_v26 }
 0x532   : > { %11242 = vst [vmem:[%s16837_s30 + $0x90] sm:$0x77] %v11190_v53 }
 0x533   : > { %v11191_v1 = vcombine.low %v10690_v17, %v10692_v45 }
 0x535   : > { %11243 = vst [vmem:[%s16837_s30 + $0x98] sm:$0x77] %v11191_v1 }
 0x54c   : > { %v10760_v49 = vpop.f32.mrb[72].mxu1 }
 0x54d   : > { %v10761_v52 = vadd.f32 %v10760_v49, %v16829_v26  ;;  %v10762_v19 = vpop.f32.mrb[73].mxu1 }
 0x54e   : > { %v10763_v23 = vadd.f32 %v10762_v19, %v16829_v26 }
 0x54f   : > { %v10831_v47 = vpop.f32.mrb[74].mxu0 }
 0x550   : > { %v11192_v15 = vcombine.low %v10761_v52, %v10763_v23  ;;  %v10832_v2 = vadd.f32 %v10831_v47, %v16829_v26  ;;  %v10833_v48 = vpop.f32.mrb[75].mxu0 }
 0x551   : > { %v10834_v27 = vadd.f32 %v10833_v48, %v16829_v26 }
 0x552   : > { %11244 = vst [vmem:[%s16837_s30 + $0xa0] sm:$0x77] %v11192_v15 }
 0x553   : > { %v11193_v44 = vcombine.low %v10832_v2, %v10834_v27 }
 0x555   : > { %11245 = vst [vmem:[%s16837_s30 + $0xa8] sm:$0x77] %v11193_v44 }
 0x56c   : > { %v10902_v60 = vpop.f32.mrb[74].mxu1 }
 0x56d   : > { %v10903_v43 = vadd.f32 %v10902_v60, %v16829_v26  ;;  %v10904_v20 = vpop.f32.mrb[75].mxu1 }
 0x56e   : > { %v10905_v18 = vadd.f32 %v10904_v20, %v16829_v26 }
 0x56f   : > { %v10973_v46 = vpop.f32.mrb[76].mxu0 }
 0x570   : > { %v11194_v35 = vcombine.low %v10903_v43, %v10905_v18  ;;  %v10974_v16 = vadd.f32 %v10973_v46, %v16829_v26  ;;  %v10975_v59 = vpop.f32.mrb[77].mxu0 }
 0x571   : > { %v10976_v4 = vadd.f32 %v10975_v59, %v16829_v26 }
 0x572   : > { %11246 = vst [vmem:[%s16837_s30 + $0xb0] sm:$0x77] %v11194_v35 }
 0x573   : > { %v11195_v36 = vcombine.low %v10974_v16, %v10976_v4 }
 0x575   : > { %11247 = vst [vmem:[%s16837_s30 + $0xb8] sm:$0x77] %v11195_v36 }
 0x58c   : > { %v11044_v13 = vpop.f32.mrb[76].mxu1 }
 0x58d   : > { %v11045_v10 = vadd.f32 %v11044_v13, %v16829_v26  ;;  %v11046_v42 = vpop.f32.mrb[77].mxu1 }
 0x58e   : > { %v11047_v30 = vadd.f32 %v11046_v42, %v16829_v26 }
 0x58f   : > { %v11115_v62 = vpop.f32.mrb[78].mxu0 }
 0x590   : > { %v11196_v51 = vcombine.low %v11045_v10, %v11047_v30  ;;  %v11116_v63 = vadd.f32 %v11115_v62, %v16829_v26  ;;  %v11117_v14 = vpop.f32.mrb[79].mxu0 }
 0x591   : > { %v11118_v6 = vadd.f32 %v11117_v14, %v16829_v26 }
 0x592   : > { %11248 = vst [vmem:[%s16837_s30 + $0xc0] sm:$0x77] %v11196_v51 }
 0x593   : > { %v11197_v33 = vcombine.low %v11116_v63, %v11118_v6 }
 0x595   : > { %11249 = vst [vmem:[%s16837_s30 + $0xc8] sm:$0x77] %v11197_v33 }
 0x596 PF: > { %s18_s27 = sadd.s32 1, %s13072_s27  }
 0x597   : > { %p15_p6 = scmp.ge.s32.totalorder %s18_s27, 4  }
 0x599   :  { %17 = sbr.rel (!%p15_p6) target bundleno = 1 (0x1), region = 85 }

</bundles_post_ra>
